<compile_context>
chip_gen: v5e
topology: v5e:2x2
jax: 0.10.0
libtpu: 0.0.40
codegen_flags: <defaults>
</compile_context>

<pallas_src>
import functools
import math

import jax
import jax.numpy as jnp
from jax import lax
from jax.experimental import pallas as pl
from jax.experimental.pallas import tpu as pltpu

H1 = 150            # encoder1 output width
H2 = 50             # encoder2 output width
D_MODEL = H1 + H2   # nz = 200 (true d_model)
DP = 256            # lane-padded d_model (multiple of 128)
D_FF = 1024         # dim_feedforward
N_CLS = 10
N_CLS_PAD = 128     # lane-padded classifier width
LN_EPS = 1e-5       # PyTorch layer_norm_eps default

# Static lane offsets inside the packed transformer-side bias buffer.
_BQ = 0
_BO = DP
_G1 = 2 * DP
_BE1 = 3 * DP
_BF1 = 4 * DP
_BF2 = 4 * DP + D_FF
_G2 = 5 * DP + D_FF
_BE2 = 6 * DP + D_FF
_BC = 7 * DP + D_FF
_BIAS_TRANS_LEN = 7 * DP + D_FF + N_CLS_PAD   # 2944


def _layer_norm_masked(x, gamma, beta, mask):
    """LayerNorm over the true D_MODEL features of a DP-padded tensor.

    Assumes the padded lanes of `x` are exactly zero (guaranteed by the
    zero-padded weights/biases); gamma/beta are zero in padded lanes, so the
    output padding stays zero.
    """
    mean = jnp.sum(x, axis=-1, keepdims=True) * (1.0 / D_MODEL)
    diff = (x - mean) * mask                      # kill (-mean) in padded lanes
    var = jnp.sum(diff * diff, axis=-1, keepdims=True) * (1.0 / D_MODEL)
    return diff * lax.rsqrt(var + LN_EPS) * gamma + beta


# --------------------------- kernel 1: encoders + K/V -----------------------
def encode_kv_kernel(x1_ref, x2_ref, w_enc1_ref, w_enc2_ref, w_kv_ref,
                     bias_ref, src_ref, k_ref, v_ref):
    f32, bf16 = jnp.float32, jnp.bfloat16

    x1 = x1_ref[...]                                       # bf16 (TB, input_A)
    x2 = x2_ref[...]                                       # bf16 (TB, input_B)

    # encoder1: real cols [0:150) of the 256-lane padded d_model; relu(0)=0.
    h1 = jnp.maximum(
        jnp.dot(x1, w_enc1_ref[...], preferred_element_type=f32), 0.0)
    # encoder2: real cols [150:200); padded lanes stay exactly 0 (tanh(0)=0).
    h2 = jnp.tanh(
        jnp.dot(x2, w_enc2_ref[...], preferred_element_type=f32)
        + bias_ref[:, 0:DP])

    # concat-free torch.cat((h1,h2),2): disjoint non-zero lanes -> plain add.
    src = h1 + h2                                          # (TB, 256) f32
    src_ref[...] = src

    # Fused K/V projection: one (TB,256) @ (256,512) matmul.
    kv = (jnp.dot(src.astype(bf16), w_kv_ref[...], preferred_element_type=f32)
          + bias_ref[:, DP:3 * DP])
    k_ref[...] = kv[:, :DP].astype(bf16)
    v_ref[...] = kv[:, DP:].astype(bf16)


# ----------------- kernel 2: attention + FFN + LN + classifier --------------
def transformer_cls_kernel(src_ref, k_ref, v_ref, w_q_ref, w_o_ref,
                           w_f1_ref, w_f2_ref, w_c_ref, bias_ref, y_ref,
                           *, n_rows):
    f32, bf16 = jnp.float32, jnp.bfloat16

    lane_mask = (lax.broadcasted_iota(jnp.int32, (1, DP), 1)
                 < D_MODEL).astype(f32)

    src = src_ref[...]                                     # (TB, 256) f32
    k = k_ref[...]                                         # (KV, 256) bf16
    v = v_ref[...]                                         # (KV, 256) bf16

    # q projection; the 1/sqrt(d_head) scale is folded into w_q / bq.
    q = (jnp.dot(src.astype(bf16), w_q_ref[...], preferred_element_type=f32)
         + bias_ref[:, _BQ:_BQ + DP])

    # scores = q @ k^T, contraction on the last dims (no materialized k.T).
    scores = lax.dot_general(q.astype(bf16), k,
                             dimension_numbers=(((1,), (1,)), ((), ())),
                             preferred_element_type=f32)   # (TB, KV)

    # Mask padded key rows (rows >= n_rows are batch padding).
    kv_len = k.shape[0]
    key_valid = lax.broadcasted_iota(jnp.int32, (1, kv_len), 1) < n_rows
    scores = jnp.where(key_valid, scores, -1e30)

    scores = scores - jnp.max(scores, axis=-1, keepdims=True)
    p = jnp.exp(scores)
    attn = p * pl.reciprocal(jnp.sum(p, axis=-1, keepdims=True), approx=True)

    ctx = jnp.dot(attn.astype(bf16), v, preferred_element_type=f32)  # (TB,256)
    attn_out = (jnp.dot(ctx.astype(bf16), w_o_ref[...],
                        preferred_element_type=f32)
                + bias_ref[:, _BO:_BO + DP])

    x = _layer_norm_masked(src + attn_out,
                           bias_ref[:, _G1:_G1 + DP],
                           bias_ref[:, _BE1:_BE1 + DP], lane_mask)

    ff = jnp.maximum(
        jnp.dot(x.astype(bf16), w_f1_ref[...], preferred_element_type=f32)
        + bias_ref[:, _BF1:_BF1 + D_FF], 0.0)
    ff = (jnp.dot(ff.astype(bf16), w_f2_ref[...], preferred_element_type=f32)
          + bias_ref[:, _BF2:_BF2 + DP])

    x = _layer_norm_masked(x + ff,
                           bias_ref[:, _G2:_G2 + DP],
                           bias_ref[:, _BE2:_BE2 + DP], lane_mask)

    # x.transpose(0,1).mean(dim=0): mean over a size-1 dim -> identity.

    # cls_layer: Linear(nz,10)+Sigmoid; output lane-padded to 128 for unmasked
    # vector stores (padded cols = sigmoid(0)=0.5, sliced off in the wrapper).
    logits = (jnp.dot(x.astype(bf16), w_c_ref[...], preferred_element_type=f32)
              + bias_ref[:, _BC:_BC + N_CLS_PAD])
    y_ref[...] = jax.nn.sigmoid(logits)


# ----------------------------------- wrapper --------------------------------
def _round_up(n, m):
    return (n + m - 1) // m * m


@functools.partial(jax.jit, static_argnames=("block_rows",))
def net4hw_forward(x1, x2, params, block_rows=256):
    bf16 = jnp.bfloat16
    B = x1.shape[0]

    tb = min(block_rows, _round_up(B, 16))    # bf16 sublane tile = 16 rows
    b_pad = _round_up(B, tb)
    grid = (b_pad // tb,)

    # Pad rows and cast inputs to bf16 in the wrapper (half-width input DMAs).
    x1p = jnp.zeros((b_pad, x1.shape[1]), bf16).at[:B].set(x1.astype(bf16))
    x2p = jnp.zeros((b_pad, x2.shape[1]), bf16).at[:B].set(x2.astype(bf16))

    def resident(shape):
        # Whole array as one block with a constant index_map: fetched once,
        # kept VMEM-resident across all grid steps.
        return pl.BlockSpec(shape, lambda i: (0, 0))

    def row_block(cols):
        return pl.BlockSpec((tb, cols), lambda i: (i, 0))

    cparams = pltpu.CompilerParams(
        dimension_semantics=("parallel",),    # v7x: shard rows over both TCs
        vmem_limit_bytes=32 << 20)

    # ---- kernel 1: encoders + fused K/V projection (row-blocked) ----
    src, k, v = pl.pallas_call(
        encode_kv_kernel,
        grid=grid,
        out_shape=(jax.ShapeDtypeStruct((b_pad, DP), jnp.float32),
                   jax.ShapeDtypeStruct((b_pad, DP), bf16),
                   jax.ShapeDtypeStruct((b_pad, DP), bf16)),
        in_specs=[row_block(x1.shape[1]), row_block(x2.shape[1]),
                  resident(params["w_enc1"].shape),
                  resident(params["w_enc2"].shape),
                  resident(params["w_kv"].shape),
                  resident(params["bias_enc"].shape)],
        out_specs=(row_block(DP), row_block(DP), row_block(DP)),
        compiler_params=cparams,
    )(x1p, x2p, params["w_enc1"], params["w_enc2"], params["w_kv"],
      params["bias_enc"])

    # ---- kernel 2: attention over full K/V + FFN + LN + classifier ----
    y_pad = pl.pallas_call(
        functools.partial(transformer_cls_kernel, n_rows=B),
        grid=grid,
        out_shape=jax.ShapeDtypeStruct((b_pad, N_CLS_PAD), jnp.float32),
        in_specs=[row_block(DP),
                  resident((b_pad, DP)), resident((b_pad, DP)),
                  resident(params["w_q"].shape),
                  resident(params["w_o"].shape),
                  resident(params["w_f1"].shape),
                  resident(params["w_f2"].shape),
                  resident(params["w_c"].shape),
                  resident(params["bias_trans"].shape)],
        out_specs=row_block(N_CLS_PAD),
        compiler_params=cparams,
    )(src, k, v, params["w_q"], params["w_o"], params["w_f1"],
      params["w_f2"], params["w_c"], params["bias_trans"])

    return y_pad[:B, :N_CLS]


# ------------------------------ parameter packing ---------------------------
def _pad_to(w, rows, cols, r0=0, c0=0, dtype=jnp.float32):
    """Embed w into a zeros(rows, cols) array at offset (r0, c0)."""
    buf = jnp.zeros((rows, cols), jnp.float32)
    buf = buf.at[r0:r0 + w.shape[0], c0:c0 + w.shape[1]].set(w)
    return buf.astype(dtype)


def make_raw_params(key, input_A, input_B):
    """Deterministic kaiming-style init, unpadded f32, (in, out) layout.

    A PyTorch state_dict import would transpose every nn.Linear weight into
    this layout before calling pack_params().
    """
    ks = jax.random.split(key, 9)

    def w(k, fin, fout):
        return (jax.random.normal(k, (fin, fout), jnp.float32)
                * math.sqrt(2.0 / fin))

    z = lambda n: jnp.zeros((n,), jnp.float32)
    return {
        "w_enc1": w(ks[0], input_A, H1),
        "w_enc2": w(ks[1], input_B, H2), "b_enc2": z(H2),
        "wq": w(ks[2], D_MODEL, D_MODEL), "bq": z(D_MODEL),
        "wk": w(ks[3], D_MODEL, D_MODEL), "bk": z(D_MODEL),
        "wv": w(ks[4], D_MODEL, D_MODEL), "bv": z(D_MODEL),
        "wo": w(ks[5], D_MODEL, D_MODEL), "bo": z(D_MODEL),
        "g1": jnp.ones((D_MODEL,), jnp.float32), "be1": z(D_MODEL),
        "wf1": w(ks[6], D_MODEL, D_FF), "bf1": z(D_FF),
        "wf2": w(ks[7], D_FF, D_MODEL), "bf2": z(D_MODEL),
        "g2": jnp.ones((D_MODEL,), jnp.float32), "be2": z(D_MODEL),
        "wc": w(ks[8], D_MODEL, N_CLS), "bc": z(N_CLS),
    }


def pack_params(raw):
    """Pad/cast weights for the kernels and pack all small vectors into two
    f32 buffers (2 DMAs instead of ~13). All padded rows/cols are zero —
    required by the masked LayerNorm."""
    bf16 = jnp.bfloat16
    scale = 1.0 / math.sqrt(D_MODEL)       # head_dim = d_model / nhead = 200
    input_A = raw["w_enc1"].shape[0]
    input_B = raw["w_enc2"].shape[0]

    def lane_pad(vec, width, off=0):
        return jnp.zeros((1, width), jnp.float32).at[0, off:off + vec.shape[0]].set(vec)

    return {
        # Encoder outputs pre-placed at disjoint lanes -> concat becomes an add.
        "w_enc1": _pad_to(raw["w_enc1"], input_A, DP, 0, 0, bf16),
        "w_enc2": _pad_to(raw["w_enc2"], input_B, DP, 0, H1, bf16),
        "w_kv": jnp.concatenate(
            [_pad_to(raw["wk"], DP, DP), _pad_to(raw["wv"], DP, DP)],
            axis=1).astype(bf16),
        "w_q": _pad_to(raw["wq"] * scale, DP, DP, dtype=bf16),   # scale folded
        "w_o": _pad_to(raw["wo"], DP, DP, dtype=bf16),
        "w_f1": _pad_to(raw["wf1"], DP, D_FF, dtype=bf16),
        "w_f2": _pad_to(raw["wf2"], D_FF, DP, dtype=bf16),
        "w_c": _pad_to(raw["wc"], DP, N_CLS_PAD, dtype=bf16),
        # Packed encoder-side vectors: [b_enc2 @ lanes 150:200 | bk | bv].
        "bias_enc": jnp.concatenate(
            [lane_pad(raw["b_enc2"], DP, H1),
             lane_pad(raw["bk"], DP),
             lane_pad(raw["bv"], DP)], axis=1),
        # Packed transformer/classifier vectors:
        # [bq*scale | bo | g1 | be1 | bf1 | bf2 | g2 | be2 | bc].
        "bias_trans": jnp.concatenate(
            [lane_pad(raw["bq"] * scale, DP), lane_pad(raw["bo"], DP),
             lane_pad(raw["g1"], DP), lane_pad(raw["be1"], DP),
             lane_pad(raw["bf1"], D_FF), lane_pad(raw["bf2"], DP),
             lane_pad(raw["g2"], DP), lane_pad(raw["be2"], DP),
             lane_pad(raw["bc"], N_CLS_PAD)], axis=1),
    }


# ------------------------------ f32 reference -------------------------------
def _ln_ref(x, g, b):
    m = jnp.mean(x, axis=-1, keepdims=True)
    var = jnp.mean((x - m) ** 2, axis=-1, keepdims=True)
    return (x - m) * lax.rsqrt(var + LN_EPS) * g + b


def reference_forward(x1, x2, raw):
    h1 = jnp.maximum(x1 @ raw["w_enc1"], 0.0)
    h2 = jnp.tanh(x2 @ raw["w_enc2"] + raw["b_enc2"])
    src = jnp.concatenate([h1, h2], axis=-1)
    q = src @ raw["wq"] + raw["bq"]
    k = src @ raw["wk"] + raw["bk"]
    v = src @ raw["wv"] + raw["bv"]
    attn = jax.nn.softmax(q @ k.T * (1.0 / math.sqrt(D_MODEL)), axis=-1)
    attn_out = (attn @ v) @ raw["wo"] + raw["bo"]
    x = _ln_ref(src + attn_out, raw["g1"], raw["be1"])
    ff = jnp.maximum(x @ raw["wf1"] + raw["bf1"], 0.0) @ raw["wf2"] + raw["bf2"]
    x = _ln_ref(x + ff, raw["g2"], raw["be2"])
    return jax.nn.sigmoid(x @ raw["wc"] + raw["bc"])


if __name__ == "__main__":
    input_A, input_B, batch = 64, 32, 8

    key = jax.random.PRNGKey(0)
    kx1, kx2, kp = jax.random.split(key, 3)
    x1 = jax.random.normal(kx1, (batch, input_A), jnp.float32)
    x2 = jax.random.normal(kx2, (batch, input_B), jnp.float32)

    raw = make_raw_params(kp, input_A, input_B)
    params = pack_params(raw)

    y = net4hw_forward(x1, x2, params)
    jax.block_until_ready(y)

    assert y.shape == (batch, N_CLS)
    assert bool(jnp.all(jnp.isfinite(y)))
    assert bool(jnp.all((y >= 0.0) & (y <= 1.0)))   # sigmoid output range

    # Loose tolerance: kernel uses bf16 weights/activations with f32 accumulate.
    y_ref = reference_forward(x1, x2, raw)
    max_err = float(jnp.max(jnp.abs(y - y_ref)))
    assert max_err < 0.1, max_err

    print("KERNEL_OK")
</pallas_src>

<mosaic_0001>
module attributes {stable_mosaic.version = 11 : i64} {
  func.func @encode_kv_kernel(%arg0: i32, %arg1: memref<16x64xbf16, #tpu.memory_space<vmem>>, %arg2: memref<16x32xbf16, #tpu.memory_space<vmem>>, %arg3: memref<64x256xbf16, #tpu.memory_space<vmem>>, %arg4: memref<32x256xbf16, #tpu.memory_space<vmem>>, %arg5: memref<256x512xbf16, #tpu.memory_space<vmem>>, %arg6: memref<1x768xf32, #tpu.memory_space<vmem>>, %arg7: memref<16x256xf32, #tpu.memory_space<vmem>>, %arg8: memref<16x256xbf16, #tpu.memory_space<vmem>>, %arg9: memref<16x256xbf16, #tpu.memory_space<vmem>>) attributes {dimension_semantics = [#tpu.dimension_semantics<parallel>], iteration_bounds = array<i64: 1>, scalar_prefetch = 0 : i64, scratch_operands = 0 : i64, tpu.core_type = #tpu.core_type<tc>, window_params = [{transform_indices = @transform_0, window_bounds = array<i64: 16, 64>}, {transform_indices = @transform_1, window_bounds = array<i64: 16, 32>}, {pipeline_mode = #tpu.pipeline_mode<synchronous>, transform_indices = @transform_2, window_bounds = array<i64: 64, 256>}, {pipeline_mode = #tpu.pipeline_mode<synchronous>, transform_indices = @transform_3, window_bounds = array<i64: 32, 256>}, {pipeline_mode = #tpu.pipeline_mode<synchronous>, transform_indices = @transform_4, window_bounds = array<i64: 256, 512>}, {pipeline_mode = #tpu.pipeline_mode<synchronous>, transform_indices = @transform_5, window_bounds = array<i64: 1, 768>}, {transform_indices = @transform_6, window_bounds = array<i64: 16, 256>}, {transform_indices = @transform_7, window_bounds = array<i64: 16, 256>}, {transform_indices = @transform_8, window_bounds = array<i64: 16, 256>}]} {
    %c0 = arith.constant 0 : index
    %c0_0 = arith.constant 0 : index
    %0 = vector.load %arg1[%c0, %c0_0] : memref<16x64xbf16, #tpu.memory_space<vmem>>, vector<16x64xbf16>
    %c0_1 = arith.constant 0 : index
    %c0_2 = arith.constant 0 : index
    %1 = vector.load %arg2[%c0_1, %c0_2] : memref<16x32xbf16, #tpu.memory_space<vmem>>, vector<16x32xbf16>
    %c0_3 = arith.constant 0 : index
    %c0_4 = arith.constant 0 : index
    %2 = vector.load %arg3[%c0_3, %c0_4] : memref<64x256xbf16, #tpu.memory_space<vmem>>, vector<64x256xbf16>
    %cst = arith.constant dense<0.000000e+00> : vector<16x256xf32>
    %3 = tpu.matmul %0, %2, %cst {dimension_numbers = #tpu.dot_dimension_numbers<[1], [0], [0], [1], [0, 0, 1, 1], [], []>} : vector<16x64xbf16>, vector<64x256xbf16>, vector<16x256xf32> -> vector<16x256xf32>
    %cst_5 = arith.constant 0.000000e+00 : f32
    %4 = vector.broadcast %cst_5 : f32 to vector<16x256xf32>
    %5 = arith.maximumf %3, %4 : vector<16x256xf32>
    %c0_6 = arith.constant 0 : index
    %c0_7 = arith.constant 0 : index
    %6 = vector.load %arg4[%c0_6, %c0_7] : memref<32x256xbf16, #tpu.memory_space<vmem>>, vector<32x256xbf16>
    %cst_8 = arith.constant dense<0.000000e+00> : vector<16x256xf32>
    %7 = tpu.matmul %1, %6, %cst_8 {dimension_numbers = #tpu.dot_dimension_numbers<[1], [0], [0], [1], [0, 0, 1, 1], [], []>} : vector<16x32xbf16>, vector<32x256xbf16>, vector<16x256xf32> -> vector<16x256xf32>
    %c0_9 = arith.constant 0 : index
    %c0_10 = arith.constant 0 : index
    %8 = vector.load %arg6[%c0_9, %c0_10] : memref<1x768xf32, #tpu.memory_space<vmem>>, vector<1x256xf32>
    %9 = vector.broadcast %8 : vector<1x256xf32> to vector<16x256xf32>
    %10 = arith.addf %7, %9 : vector<16x256xf32>
    %11 = math.tanh %10 : vector<16x256xf32>
    %12 = arith.addf %5, %11 : vector<16x256xf32>
    %c0_11 = arith.constant 0 : index
    %c0_12 = arith.constant 0 : index
    %13 = vector.load %arg7[%c0_11, %c0_12] : memref<16x256xf32, #tpu.memory_space<vmem>>, vector<16x256xf32>
    tpu.vector_store %arg7[%c0_11, %c0_12], %12 {strides = array<i32>} : memref<16x256xf32, #tpu.memory_space<vmem>>, vector<16x256xf32>,
    %14 = arith.truncf %12 : vector<16x256xf32> to vector<16x256xbf16>
    %c0_13 = arith.constant 0 : index
    %c0_14 = arith.constant 0 : index
    %15 = vector.load %arg5[%c0_13, %c0_14] : memref<256x512xbf16, #tpu.memory_space<vmem>>, vector<256x512xbf16>
    %cst_15 = arith.constant dense<0.000000e+00> : vector<16x512xf32>
    %16 = tpu.matmul %14, %15, %cst_15 {dimension_numbers = #tpu.dot_dimension_numbers<[1], [0], [0], [1], [0, 0, 1, 1], [], []>} : vector<16x256xbf16>, vector<256x512xbf16>, vector<16x512xf32> -> vector<16x512xf32>
    %c0_16 = arith.constant 0 : index
    %c256 = arith.constant 256 : index
    %17 = vector.load %arg6[%c0_16, %c256] : memref<1x768xf32, #tpu.memory_space<vmem>>, vector<1x512xf32>
    %18 = vector.broadcast %17 : vector<1x512xf32> to vector<16x512xf32>
    %19 = arith.addf %16, %18 : vector<16x512xf32>
    %20 = vector.extract_strided_slice %19 {offsets = [0, 0], sizes = [16, 256], strides = [1, 1]} : vector<16x512xf32> to vector<16x256xf32>
    %21 = arith.truncf %20 : vector<16x256xf32> to vector<16x256xbf16>
    %c0_17 = arith.constant 0 : index
    %c0_18 = arith.constant 0 : index
    %22 = vector.load %arg8[%c0_17, %c0_18] : memref<16x256xbf16, #tpu.memory_space<vmem>>, vector<16x256xbf16>
    tpu.vector_store %arg8[%c0_17, %c0_18], %21 {strides = array<i32>} : memref<16x256xbf16, #tpu.memory_space<vmem>>, vector<16x256xbf16>,
    %23 = vector.extract_strided_slice %19 {offsets = [0, 256], sizes = [16, 256], strides = [1, 1]} : vector<16x512xf32> to vector<16x256xf32>
    %24 = arith.truncf %23 : vector<16x256xf32> to vector<16x256xbf16>
    %c0_19 = arith.constant 0 : index
    %c0_20 = arith.constant 0 : index
    %25 = vector.load %arg9[%c0_19, %c0_20] : memref<16x256xbf16, #tpu.memory_space<vmem>>, vector<16x256xbf16>
    tpu.vector_store %arg9[%c0_19, %c0_20], %24 {strides = array<i32>} : memref<16x256xbf16, #tpu.memory_space<vmem>>, vector<16x256xbf16>,
    return
  }
  func.func @transform_0(%arg0: i32) -> (i32, i32) {
    %c0_i32 = arith.constant 0 : i32
    %c0_i32_0 = arith.constant 0 : i32
    return %arg0, %c0_i32 : i32, i32
  }
  func.func @transform_1(%arg0: i32) -> (i32, i32) {
    %c0_i32 = arith.constant 0 : i32
    %c0_i32_0 = arith.constant 0 : i32
    return %arg0, %c0_i32 : i32, i32
  }
  func.func @transform_2(%arg0: i32) -> (i32, i32) {
    %c0_i32 = arith.constant 0 : i32
    %c0_i32_0 = arith.constant 0 : i32
    %c0_i32_1 = arith.constant 0 : i32
    return %c0_i32, %c0_i32_0 : i32, i32
  }
  func.func @transform_3(%arg0: i32) -> (i32, i32) {
    %c0_i32 = arith.constant 0 : i32
    %c0_i32_0 = arith.constant 0 : i32
    %c0_i32_1 = arith.constant 0 : i32
    return %c0_i32, %c0_i32_0 : i32, i32
  }
  func.func @transform_4(%arg0: i32) -> (i32, i32) {
    %c0_i32 = arith.constant 0 : i32
    %c0_i32_0 = arith.constant 0 : i32
    %c0_i32_1 = arith.constant 0 : i32
    return %c0_i32, %c0_i32_0 : i32, i32
  }
  func.func @transform_5(%arg0: i32) -> (i32, i32) {
    %c0_i32 = arith.constant 0 : i32
    %c0_i32_0 = arith.constant 0 : i32
    %c0_i32_1 = arith.constant 0 : i32
    return %c0_i32, %c0_i32_0 : i32, i32
  }
  func.func @transform_6(%arg0: i32) -> (i32, i32) {
    %c0_i32 = arith.constant 0 : i32
    %c0_i32_0 = arith.constant 0 : i32
    return %arg0, %c0_i32 : i32, i32
  }
  func.func @transform_7(%arg0: i32) -> (i32, i32) {
    %c0_i32 = arith.constant 0 : i32
    %c0_i32_0 = arith.constant 0 : i32
    return %arg0, %c0_i32 : i32, i32
  }
  func.func @transform_8(%arg0: i32) -> (i32, i32) {
    %c0_i32 = arith.constant 0 : i32
    %c0_i32_0 = arith.constant 0 : i32
    return %arg0, %c0_i32 : i32, i32
  }
}

module attributes {stable_mosaic.version = 11 : i64} {
  func.func @transformer_cls_kernel(%arg0: i32, %arg1: memref<16x256xf32, #tpu.memory_space<vmem>>, %arg2: memref<16x256xbf16, #tpu.memory_space<vmem>>, %arg3: memref<16x256xbf16, #tpu.memory_space<vmem>>, %arg4: memref<256x256xbf16, #tpu.memory_space<vmem>>, %arg5: memref<256x256xbf16, #tpu.memory_space<vmem>>, %arg6: memref<256x1024xbf16, #tpu.memory_space<vmem>>, %arg7: memref<1024x256xbf16, #tpu.memory_space<vmem>>, %arg8: memref<256x128xbf16, #tpu.memory_space<vmem>>, %arg9: memref<1x2944xf32, #tpu.memory_space<vmem>>, %arg10: memref<16x128xf32, #tpu.memory_space<vmem>>) attributes {dimension_semantics = [#tpu.dimension_semantics<parallel>], iteration_bounds = array<i64: 1>, scalar_prefetch = 0 : i64, scratch_operands = 0 : i64, tpu.core_type = #tpu.core_type<tc>, window_params = [{transform_indices = @transform_0, window_bounds = array<i64: 16, 256>}, {pipeline_mode = #tpu.pipeline_mode<synchronous>, transform_indices = @transform_1, window_bounds = array<i64: 16, 256>}, {pipeline_mode = #tpu.pipeline_mode<synchronous>, transform_indices = @transform_2, window_bounds = array<i64: 16, 256>}, {pipeline_mode = #tpu.pipeline_mode<synchronous>, transform_indices = @transform_3, window_bounds = array<i64: 256, 256>}, {pipeline_mode = #tpu.pipeline_mode<synchronous>, transform_indices = @transform_4, window_bounds = array<i64: 256, 256>}, {pipeline_mode = #tpu.pipeline_mode<synchronous>, transform_indices = @transform_5, window_bounds = array<i64: 256, 1024>}, {pipeline_mode = #tpu.pipeline_mode<synchronous>, transform_indices = @transform_6, window_bounds = array<i64: 1024, 256>}, {pipeline_mode = #tpu.pipeline_mode<synchronous>, transform_indices = @transform_7, window_bounds = array<i64: 256, 128>}, {pipeline_mode = #tpu.pipeline_mode<synchronous>, transform_indices = @transform_8, window_bounds = array<i64: 1, 2944>}, {transform_indices = @transform_9, window_bounds = array<i64: 16, 128>}]} {
    %0 = tpu.iota {dimensions = array<i32: 1>} : vector<1x256xi32>
    %c200_i32 = arith.constant 200 : i32
    %1 = vector.broadcast %c200_i32 : i32 to vector<1x256xi32>
    %2 = arith.cmpi slt, %0, %1 : vector<1x256xi32>
    %3 = arith.extui %2 : vector<1x256xi1> to vector<1x256xi32>
    %4 = arith.sitofp %3 : vector<1x256xi32> to vector<1x256xf32>
    %c0 = arith.constant 0 : index
    %c0_0 = arith.constant 0 : index
    %5 = vector.load %arg1[%c0, %c0_0] : memref<16x256xf32, #tpu.memory_space<vmem>>, vector<16x256xf32>
    %c0_1 = arith.constant 0 : index
    %c0_2 = arith.constant 0 : index
    %6 = vector.load %arg2[%c0_1, %c0_2] : memref<16x256xbf16, #tpu.memory_space<vmem>>, vector<16x256xbf16>
    %c0_3 = arith.constant 0 : index
    %c0_4 = arith.constant 0 : index
    %7 = vector.load %arg3[%c0_3, %c0_4] : memref<16x256xbf16, #tpu.memory_space<vmem>>, vector<16x256xbf16>
    %8 = arith.truncf %5 : vector<16x256xf32> to vector<16x256xbf16>
    %c0_5 = arith.constant 0 : index
    %c0_6 = arith.constant 0 : index
    %9 = vector.load %arg4[%c0_5, %c0_6] : memref<256x256xbf16, #tpu.memory_space<vmem>>, vector<256x256xbf16>
    %cst = arith.constant dense<0.000000e+00> : vector<16x256xf32>
    %10 = tpu.matmul %8, %9, %cst {dimension_numbers = #tpu.dot_dimension_numbers<[1], [0], [0], [1], [0, 0, 1, 1], [], []>} : vector<16x256xbf16>, vector<256x256xbf16>, vector<16x256xf32> -> vector<16x256xf32>
    %c0_7 = arith.constant 0 : index
    %c0_8 = arith.constant 0 : index
    %11 = vector.load %arg9[%c0_7, %c0_8] : memref<1x2944xf32, #tpu.memory_space<vmem>>, vector<1x256xf32>
    %12 = vector.broadcast %11 : vector<1x256xf32> to vector<16x256xf32>
    %13 = arith.addf %10, %12 : vector<16x256xf32>
    %14 = arith.truncf %13 : vector<16x256xf32> to vector<16x256xbf16>
    %cst_9 = arith.constant dense<0.000000e+00> : vector<16x16xf32>
    %15 = tpu.matmul %14, %6, %cst_9 {dimension_numbers = #tpu.dot_dimension_numbers<[1], [1], [0], [0], [0, 0, 1, 0], [], []>} : vector<16x256xbf16>, vector<16x256xbf16>, vector<16x16xf32> -> vector<16x16xf32>
    %16 = tpu.iota {dimensions = array<i32: 1>} : vector<1x16xi32>
    %c8_i32 = arith.constant 8 : i32
    %17 = vector.broadcast %c8_i32 : i32 to vector<1x16xi32>
    %18 = arith.cmpi slt, %16, %17 : vector<1x16xi32>
    %cst_10 = arith.constant -1.000000e+30 : f32
    %19 = vector.shape_cast %18 : vector<1x16xi1> to vector<1x16xi1>
    %20 = vector.broadcast %19 : vector<1x16xi1> to vector<16x16xi1>
    %21 = vector.broadcast %cst_10 : f32 to vector<16x16xf32>
    %22 = arith.select %20, %15, %21 : vector<16x16xi1>, vector<16x16xf32>
    %cst_11 = arith.constant dense<0xFF800000> : vector<16xf32>
    %23 = vector.multi_reduction <maximumf>, %22, %cst_11 [1] : vector<16x16xf32> to vector<16xf32>
    %24 = vector.shape_cast %23 : vector<16xf32> to vector<16x1xf32>
    %25 = vector.broadcast %24 : vector<16x1xf32> to vector<16x16xf32>
    %26 = arith.subf %22, %25 : vector<16x16xf32>
    %27 = math.exp %26 : vector<16x16xf32>
    %cst_12 = arith.constant dense<0.000000e+00> : vector<16xf32>
    %28 = vector.multi_reduction <add>, %27, %cst_12 [1] : vector<16x16xf32> to vector<16xf32>
    %29 = vector.shape_cast %28 : vector<16xf32> to vector<16x1xf32>
    %30 = tpu.reciprocal %29 {approx = true} : vector<16x1xf32> -> vector<16x1xf32>
    %31 = vector.broadcast %30 : vector<16x1xf32> to vector<16x16xf32>
    %32 = arith.mulf %27, %31 : vector<16x16xf32>
    %33 = arith.truncf %32 : vector<16x16xf32> to vector<16x16xbf16>
    %cst_13 = arith.constant dense<0.000000e+00> : vector<16x256xf32>
    %34 = tpu.matmul %33, %7, %cst_13 {dimension_numbers = #tpu.dot_dimension_numbers<[1], [0], [0], [1], [0, 0, 1, 1], [], []>} : vector<16x16xbf16>, vector<16x256xbf16>, vector<16x256xf32> -> vector<16x256xf32>
    %35 = arith.truncf %34 : vector<16x256xf32> to vector<16x256xbf16>
    %c0_14 = arith.constant 0 : index
    %c0_15 = arith.constant 0 : index
    %36 = vector.load %arg5[%c0_14, %c0_15] : memref<256x256xbf16, #tpu.memory_space<vmem>>, vector<256x256xbf16>
    %cst_16 = arith.constant dense<0.000000e+00> : vector<16x256xf32>
    %37 = tpu.matmul %35, %36, %cst_16 {dimension_numbers = #tpu.dot_dimension_numbers<[1], [0], [0], [1], [0, 0, 1, 1], [], []>} : vector<16x256xbf16>, vector<256x256xbf16>, vector<16x256xf32> -> vector<16x256xf32>
    %c0_17 = arith.constant 0 : index
    %c256 = arith.constant 256 : index
    %38 = vector.load %arg9[%c0_17, %c256] : memref<1x2944xf32, #tpu.memory_space<vmem>>, vector<1x256xf32>
    %39 = vector.broadcast %38 : vector<1x256xf32> to vector<16x256xf32>
    %40 = arith.addf %37, %39 : vector<16x256xf32>
    %41 = arith.addf %5, %40 : vector<16x256xf32>
    %c0_18 = arith.constant 0 : index
    %c512 = arith.constant 512 : index
    %42 = vector.load %arg9[%c0_18, %c512] : memref<1x2944xf32, #tpu.memory_space<vmem>>, vector<1x256xf32>
    %c0_19 = arith.constant 0 : index
    %c768 = arith.constant 768 : index
    %43 = vector.load %arg9[%c0_19, %c768] : memref<1x2944xf32, #tpu.memory_space<vmem>>, vector<1x256xf32>
    %cst_20 = arith.constant dense<0.000000e+00> : vector<16xf32>
    %44 = vector.multi_reduction <add>, %41, %cst_20 [1] : vector<16x256xf32> to vector<16xf32>
    %45 = vector.shape_cast %44 : vector<16xf32> to vector<16x1xf32>
    %cst_21 = arith.constant 5.000000e-03 : f32
    %46 = vector.broadcast %cst_21 : f32 to vector<16x1xf32>
    %47 = arith.mulf %45, %46 : vector<16x1xf32>
    %48 = vector.broadcast %47 : vector<16x1xf32> to vector<16x256xf32>
    %49 = arith.subf %41, %48 : vector<16x256xf32>
    %50 = vector.broadcast %4 : vector<1x256xf32> to vector<16x256xf32>
    %51 = arith.mulf %49, %50 : vector<16x256xf32>
    %52 = arith.mulf %51, %51 : vector<16x256xf32>
    %cst_22 = arith.constant dense<0.000000e+00> : vector<16xf32>
    %53 = vector.multi_reduction <add>, %52, %cst_22 [1] : vector<16x256xf32> to vector<16xf32>
    %54 = vector.shape_cast %53 : vector<16xf32> to vector<16x1xf32>
    %cst_23 = arith.constant 5.000000e-03 : f32
    %55 = vector.broadcast %cst_23 : f32 to vector<16x1xf32>
    %56 = arith.mulf %54, %55 : vector<16x1xf32>
    %cst_24 = arith.constant 9.99999974E-6 : f32
    %57 = vector.broadcast %cst_24 : f32 to vector<16x1xf32>
    %58 = arith.addf %56, %57 : vector<16x1xf32>
    %59 = math.rsqrt %58 : vector<16x1xf32>
    %60 = vector.broadcast %59 : vector<16x1xf32> to vector<16x256xf32>
    %61 = arith.mulf %51, %60 : vector<16x256xf32>
    %62 = vector.broadcast %42 : vector<1x256xf32> to vector<16x256xf32>
    %63 = arith.mulf %61, %62 : vector<16x256xf32>
    %64 = vector.broadcast %43 : vector<1x256xf32> to vector<16x256xf32>
    %65 = arith.addf %63, %64 : vector<16x256xf32>
    %66 = arith.truncf %65 : vector<16x256xf32> to vector<16x256xbf16>
    %c0_25 = arith.constant 0 : index
    %c0_26 = arith.constant 0 : index
    %67 = vector.load %arg6[%c0_25, %c0_26] : memref<256x1024xbf16, #tpu.memory_space<vmem>>, vector<256x1024xbf16>
    %cst_27 = arith.constant dense<0.000000e+00> : vector<16x1024xf32>
    %68 = tpu.matmul %66, %67, %cst_27 {dimension_numbers = #tpu.dot_dimension_numbers<[1], [0], [0], [1], [0, 0, 1, 1], [], []>} : vector<16x256xbf16>, vector<256x1024xbf16>, vector<16x1024xf32> -> vector<16x1024xf32>
    %c0_28 = arith.constant 0 : index
    %c1024 = arith.constant 1024 : index
    %69 = vector.load %arg9[%c0_28, %c1024] : memref<1x2944xf32, #tpu.memory_space<vmem>>, vector<1x1024xf32>
    %70 = vector.broadcast %69 : vector<1x1024xf32> to vector<16x1024xf32>
    %71 = arith.addf %68, %70 : vector<16x1024xf32>
    %cst_29 = arith.constant 0.000000e+00 : f32
    %72 = vector.broadcast %cst_29 : f32 to vector<16x1024xf32>
    %73 = arith.maximumf %71, %72 : vector<16x1024xf32>
    %74 = arith.truncf %73 : vector<16x1024xf32> to vector<16x1024xbf16>
    %c0_30 = arith.constant 0 : index
    %c0_31 = arith.constant 0 : index
    %75 = vector.load %arg7[%c0_30, %c0_31] : memref<1024x256xbf16, #tpu.memory_space<vmem>>, vector<1024x256xbf16>
    %cst_32 = arith.constant dense<0.000000e+00> : vector<16x256xf32>
    %76 = tpu.matmul %74, %75, %cst_32 {dimension_numbers = #tpu.dot_dimension_numbers<[1], [0], [0], [1], [0, 0, 1, 1], [], []>} : vector<16x1024xbf16>, vector<1024x256xbf16>, vector<16x256xf32> -> vector<16x256xf32>
    %c0_33 = arith.constant 0 : index
    %c2048 = arith.constant 2048 : index
    %77 = vector.load %arg9[%c0_33, %c2048] : memref<1x2944xf32, #tpu.memory_space<vmem>>, vector<1x256xf32>
    %78 = vector.broadcast %77 : vector<1x256xf32> to vector<16x256xf32>
    %79 = arith.addf %76, %78 : vector<16x256xf32>
    %80 = arith.addf %65, %79 : vector<16x256xf32>
    %c0_34 = arith.constant 0 : index
    %c2304 = arith.constant 2304 : index
    %81 = vector.load %arg9[%c0_34, %c2304] : memref<1x2944xf32, #tpu.memory_space<vmem>>, vector<1x256xf32>
    %c0_35 = arith.constant 0 : index
    %c2560 = arith.constant 2560 : index
    %82 = vector.load %arg9[%c0_35, %c2560] : memref<1x2944xf32, #tpu.memory_space<vmem>>, vector<1x256xf32>
    %cst_36 = arith.constant dense<0.000000e+00> : vector<16xf32>
    %83 = vector.multi_reduction <add>, %80, %cst_36 [1] : vector<16x256xf32> to vector<16xf32>
    %84 = vector.shape_cast %83 : vector<16xf32> to vector<16x1xf32>
    %cst_37 = arith.constant 5.000000e-03 : f32
    %85 = vector.broadcast %cst_37 : f32 to vector<16x1xf32>
    %86 = arith.mulf %84, %85 : vector<16x1xf32>
    %87 = vector.broadcast %86 : vector<16x1xf32> to vector<16x256xf32>
    %88 = arith.subf %80, %87 : vector<16x256xf32>
    %89 = vector.broadcast %4 : vector<1x256xf32> to vector<16x256xf32>
    %90 = arith.mulf %88, %89 : vector<16x256xf32>
    %91 = arith.mulf %90, %90 : vector<16x256xf32>
    %cst_38 = arith.constant dense<0.000000e+00> : vector<16xf32>
    %92 = vector.multi_reduction <add>, %91, %cst_38 [1] : vector<16x256xf32> to vector<16xf32>
    %93 = vector.shape_cast %92 : vector<16xf32> to vector<16x1xf32>
    %cst_39 = arith.constant 5.000000e-03 : f32
    %94 = vector.broadcast %cst_39 : f32 to vector<16x1xf32>
    %95 = arith.mulf %93, %94 : vector<16x1xf32>
    %cst_40 = arith.constant 9.99999974E-6 : f32
    %96 = vector.broadcast %cst_40 : f32 to vector<16x1xf32>
    %97 = arith.addf %95, %96 : vector<16x1xf32>
    %98 = math.rsqrt %97 : vector<16x1xf32>
    %99 = vector.broadcast %98 : vector<16x1xf32> to vector<16x256xf32>
    %100 = arith.mulf %90, %99 : vector<16x256xf32>
    %101 = vector.broadcast %81 : vector<1x256xf32> to vector<16x256xf32>
    %102 = arith.mulf %100, %101 : vector<16x256xf32>
    %103 = vector.broadcast %82 : vector<1x256xf32> to vector<16x256xf32>
    %104 = arith.addf %102, %103 : vector<16x256xf32>
    %105 = arith.truncf %104 : vector<16x256xf32> to vector<16x256xbf16>
    %c0_41 = arith.constant 0 : index
    %c0_42 = arith.constant 0 : index
    %106 = vector.load %arg8[%c0_41, %c0_42] : memref<256x128xbf16, #tpu.memory_space<vmem>>, vector<256x128xbf16>
    %cst_43 = arith.constant dense<0.000000e+00> : vector<16x128xf32>
    %107 = tpu.matmul %105, %106, %cst_43 {dimension_numbers = #tpu.dot_dimension_numbers<[1], [0], [0], [1], [0, 0, 1, 1], [], []>} : vector<16x256xbf16>, vector<256x128xbf16>, vector<16x128xf32> -> vector<16x128xf32>
    %c0_44 = arith.constant 0 : index
    %c2816 = arith.constant 2816 : index
    %108 = vector.load %arg9[%c0_44, %c2816] : memref<1x2944xf32, #tpu.memory_space<vmem>>, vector<1x128xf32>
    %109 = vector.broadcast %108 : vector<1x128xf32> to vector<16x128xf32>
    %110 = arith.addf %107, %109 : vector<16x128xf32>
    %111 = arith.negf %110 : vector<16x128xf32>
    %112 = math.exp %111 : vector<16x128xf32>
    %cst_45 = arith.constant 1.000000e+00 : f32
    %113 = vector.broadcast %cst_45 : f32 to vector<16x128xf32>
    %114 = arith.addf %113, %112 : vector<16x128xf32>
    %115 = arith.divf %113, %114 : vector<16x128xf32>
    %c0_46 = arith.constant 0 : index
    %c0_47 = arith.constant 0 : index
    %116 = vector.load %arg10[%c0_46, %c0_47] : memref<16x128xf32, #tpu.memory_space<vmem>>, vector<16x128xf32>
    tpu.vector_store %arg10[%c0_46, %c0_47], %115 {strides = array<i32>} : memref<16x128xf32, #tpu.memory_space<vmem>>, vector<16x128xf32>,
    return
  }
  func.func @transform_0(%arg0: i32) -> (i32, i32) {
    %c0_i32 = arith.constant 0 : i32
    %c0_i32_0 = arith.constant 0 : i32
    return %arg0, %c0_i32 : i32, i32
  }
  func.func @transform_1(%arg0: i32) -> (i32, i32) {
    %c0_i32 = arith.constant 0 : i32
    %c0_i32_0 = arith.constant 0 : i32
    %c0_i32_1 = arith.constant 0 : i32
    return %c0_i32, %c0_i32_0 : i32, i32
  }
  func.func @transform_2(%arg0: i32) -> (i32, i32) {
    %c0_i32 = arith.constant 0 : i32
    %c0_i32_0 = arith.constant 0 : i32
    %c0_i32_1 = arith.constant 0 : i32
    return %c0_i32, %c0_i32_0 : i32, i32
  }
  func.func @transform_3(%arg0: i32) -> (i32, i32) {
    %c0_i32 = arith.constant 0 : i32
    %c0_i32_0 = arith.constant 0 : i32
    %c0_i32_1 = arith.constant 0 : i32
    return %c0_i32, %c0_i32_0 : i32, i32
  }
  func.func @transform_4(%arg0: i32) -> (i32, i32) {
    %c0_i32 = arith.constant 0 : i32
    %c0_i32_0 = arith.constant 0 : i32
    %c0_i32_1 = arith.constant 0 : i32
    return %c0_i32, %c0_i32_0 : i32, i32
  }
  func.func @transform_5(%arg0: i32) -> (i32, i32) {
    %c0_i32 = arith.constant 0 : i32
    %c0_i32_0 = arith.constant 0 : i32
    %c0_i32_1 = arith.constant 0 : i32
    return %c0_i32, %c0_i32_0 : i32, i32
  }
  func.func @transform_6(%arg0: i32) -> (i32, i32) {
    %c0_i32 = arith.constant 0 : i32
    %c0_i32_0 = arith.constant 0 : i32
    %c0_i32_1 = arith.constant 0 : i32
    return %c0_i32, %c0_i32_0 : i32, i32
  }
  func.func @transform_7(%arg0: i32) -> (i32, i32) {
    %c0_i32 = arith.constant 0 : i32
    %c0_i32_0 = arith.constant 0 : i32
    %c0_i32_1 = arith.constant 0 : i32
    return %c0_i32, %c0_i32_0 : i32, i32
  }
  func.func @transform_8(%arg0: i32) -> (i32, i32) {
    %c0_i32 = arith.constant 0 : i32
    %c0_i32_0 = arith.constant 0 : i32
    %c0_i32_1 = arith.constant 0 : i32
    return %c0_i32, %c0_i32_0 : i32, i32
  }
  func.func @transform_9(%arg0: i32) -> (i32, i32) {
    %c0_i32 = arith.constant 0 : i32
    %c0_i32_0 = arith.constant 0 : i32
    return %arg0, %c0_i32 : i32, i32
  }
}

</mosaic_0001>

<bundles_post_ra>
// kernel: net4hw_forward.2
= control target key start
LH: loop header
LB: loop body
LE: loop exit
PB: predicated region body
PF: predicated region fallthrough
CT: control target
= control target key end

     0   :  { %14 = vsyncpa [#allocation3], 0  ;;  %s1366_s0 = inlined_call_operand.vmem [shape: bf16[16,64], index: 0, kind: input, shape index: {}]   ;;  %s1367_s1 = inlined_call_operand.vmem [shape: bf16[16,32], index: 1, kind: input, shape index: {}]   ;;  %s1368_s2 = inlined_call_operand.hbm [shape: bf16[64,256], index: 2, kind: input, shape index: {}]   ;;  %s1369_s3 = inlined_call_operand.hbm [shape: bf16[32,256], index: 3, kind: input, shape index: {}]   ;;  %s1370_s4 = inlined_call_operand.hbm [shape: bf16[256,512], index: 4, kind: input, shape index: {}]   ;;  %s1371_s5 = inlined_call_operand.vmem [shape: f32[1,768], index: 5, kind: input, shape index: {}]   ;;  %s1372_s6 = inlined_call_operand.vmem [shape: f32[16,256], index: 6, kind: output, shape index: {0}]   ;;  %s1373_s7 = inlined_call_operand.vmem [shape: bf16[16,256], index: 7, kind: output, shape index: {1}]   ;;  %s1374_s8 = inlined_call_operand.vmem [shape: bf16[16,256], index: 8, kind: output, shape index: {2}]  }
   0x1   :  { %15 = vsyncpa [#allocation5], 0  ;;  %s37_s29 = sshll.u32 %s1369_s3, 4  ;;  %s1261_s30 = smov [#allocation4]   ;;  %s38_s29 = int_to_ptr.hbm [resolvable:$true] %s37_s29 }
   0x2   :  { %s39_s9 = sshll.u32 %s1261_s30, 4  ;;  %s24_s12 = sshll.u32 %s1368_s2, 4  ;;  %s40_s9 = int_to_ptr.vmem [resolvable:$true] %s39_s9  ;;  %s25_s12 = int_to_ptr.hbm [resolvable:$true] %s24_s12 }
   0x3   :  { %s1262_s13 = smov 128   ;;  %s1263_s14 = smov 8  }
   0x4   :  { %45 = dma.hbm_to_vmem [thread:$0]  %s38_s29, 512, %s40_s9, [#allocation5], %s1262_s13, %s1262_s13, %s1263_s14  }
   0x5   :  { %s1264_s15 = smov [#allocation2]   ;;  %s50_s19 = sshll.u32 %s1370_s4, 4  ;;  %s51_s19 = int_to_ptr.hbm [resolvable:$true] %s50_s19 }
   0x6   :  { %s26_s16 = sshll.u32 %s1264_s15, 4  ;;  %s1265_s3 = smov [#allocation6]   ;;  %s27_s16 = int_to_ptr.vmem [resolvable:$true] %s26_s16 }
   0x7   :  { %32 = dma.hbm_to_vmem [thread:$0]  %s25_s12, 1024, %s27_s16, [#allocation3], %s1262_s13, %s1262_s13, %s1263_s14  }
   0x8   :  { %s52_s20 = sshll.u32 %s1265_s3, 4  ;;  %s1266_s21 = smov 256   ;;  %s53_s20 = int_to_ptr.vmem [resolvable:$true] %s52_s20 }
   0x9   :  { %s1267_s22 = smov 16  }
   0xa   :  { %58 = dma.hbm_to_vmem [thread:$0]  %s51_s19, 8192, %s53_s20, [#allocation5], %s1266_s21, %s1266_s21, %s1267_s22  }
   0xb   :  { %1257 = dma.done.wait [#allocation3], 1024  }
   0xc   :  { %1258 = vsyncadd [#allocation3], 4294966272 }
   0xd   :  { %1259 = dma.done.wait [#allocation5], 8704  }
   0xe   :  { %1260 = vsyncadd [#allocation5], 4294958592  ;;  %v806_v0 = vld [vmem:[#allocation2 + $0x30] sm:$0xf]  ;;  %v1101_v1 = vld [vmem:[#allocation2 + $0x34] sm:$0xf0] }
   0xf   :  { %v1100_v2 = vld [vmem:[#allocation2 + $0x34] sm:$0xf]  ;;  %v807_v3 = vor.u32 %v1101_v1, %v806_v0  ;;  %v808_v4 = vld [vmem:[#allocation2 + $0x38] sm:$0xf0]  ;;  %v828_v5 = vld [vmem:[#allocation4 + $0x10] sm:$0xf] }
  0x10   :  { %v1105_v6 = vld [vmem:[#allocation4 + $0x14] sm:$0xf0]  ;;  %v811_v7 = vor.u32 %v1100_v2, %v808_v4  ;;  %v1104_v9 = vld [vmem:[#allocation4 + $0x14] sm:$0xf]  ;;  %v830_v10 = vld [vmem:[#allocation4 + $0x18] sm:$0xf0] }
  0x11   :  { %v829_v8 = vor.u32 %v1105_v6, %v828_v5  ;;  %v798_v11 = vld [vmem:[#allocation2 + $0x20] sm:$0xf]  ;;  %139 = vmatpush.bf16.msra.mxu0 %v807_v3  ;;  %v833_v12 = vor.u32 %v1104_v9, %v830_v10  ;;  %v1099_v13 = vld [vmem:[#allocation2 + $0x24] sm:$0xf0]  ;;  %v1098_v14 = vld [vmem:[#allocation2 + $0x24] sm:$0xf] }
  0x12   :  { %v800_v15 = vld [vmem:[#allocation2 + $0x28] sm:$0xf0]  ;;  %153 = vmatpush.bf16.msra.mxu1 %v811_v7  ;;  %v799_v16 = vor.u32 %v1099_v13, %v798_v11  ;;  %v820_v18 = vld [vmem:[#allocation4] sm:$0xf]  ;;  %v1103_v19 = vld [vmem:[#allocation4 + $0x4] sm:$0xf0] }
  0x13   :  { %212 = vmatpush.bf16.msra.mxu2 %v829_v8  ;;  %v803_v17 = vor.u32 %v1098_v14, %v800_v15  ;;  %v1102_v20 = vld [vmem:[#allocation4 + $0x4] sm:$0xf]  ;;  %226 = vmatpush.bf16.msra.mxu3 %v833_v12  ;;  %v821_v21 = vor.u32 %v1103_v19, %v820_v18  ;;  %v822_v22 = vld [vmem:[#allocation4 + $0x8] sm:$0xf0]  ;;  %v790_v23 = vld [vmem:[#allocation2 + $0x10] sm:$0xf] }
  0x14   :  { %v825_v24 = vor.u32 %v1102_v20, %v822_v22  ;;  %v1097_v25 = vld [vmem:[#allocation2 + $0x14] sm:$0xf0]  ;;  %v1096_v26 = vld [vmem:[#allocation2 + $0x14] sm:$0xf]  ;;  %v792_v27 = vld [vmem:[#allocation2 + $0x18] sm:$0xf0] }
  0x15   :  { %140 = vmatpush.bf16.msra.mxu0 %v799_v16  ;;  %v1093_v28 = vld [vmem:[%s1367_s1] sm:$0xff]  ;;  %vm202_vm0 = vcmask 261120   ;;  %v791_v29 = vor.u32 %v1097_v25, %v790_v23  ;;  %v1095_v31 = vld [vmem:[#allocation2 + $0x4] sm:$0xf0]  ;;  %v795_v32 = vor.u32 %v1096_v26, %v792_v27  ;;  %v784_v34 = vld [vmem:[#allocation2 + $0x8] sm:$0xf0] }
  0x16   :  { %v782_v30 = vld [vmem:[#allocation2] sm:$0xf]  ;;  %154 = vmatpush.bf16.msra.mxu1 %v803_v17  ;;  %v1094_v33 = vld [vmem:[#allocation2 + $0x4] sm:$0xf]  ;;  %v1136_v36 = vld [vmem:[#allocation6 + $0xec] sm:$0xf0] }
  0x17   :  { %213 = vmatpush.bf16.msra.mxu2 %v821_v21  ;;  %v950_v35 = vld [vmem:[#allocation6 + $0xe0] sm:$0xf]  ;;  %227 = vmatpush.bf16.msra.mxu3 %v825_v24  ;;  %v1168_v38 = vld [vmem:[#allocation6 + $0x1ec] sm:$0xf0]  ;;  %v1134_v41 = vld [vmem:[#allocation6 + $0xe4] sm:$0xf]  ;;  %v783_v44 = vor.u32 %v1095_v31, %v782_v30  ;;  %v787_v48 = vor.u32 %v1094_v33, %v784_v34 }
  0x18   :  { %v1078_v37 = vld [vmem:[#allocation6 + $0x1e0] sm:$0xf]  ;;  %v951_v39 = vor.u32 %v1136_v36, %v950_v35  ;;  %v952_v42 = vld [vmem:[#allocation6 + $0xf0] sm:$0xf0]  ;;  %v1166_v43 = vld [vmem:[#allocation6 + $0x1e4] sm:$0xf] }
  0x19   :  { %v1079_v40 = vor.u32 %v1168_v38, %v1078_v37  ;;  %141 = vmatpush.bf16.msra.mxu0 %v791_v29  ;;  %v1080_v45 = vld [vmem:[#allocation6 + $0x1f0] sm:$0xf0]  ;;  %v934_v46 = vld [vmem:[#allocation6 + $0xc0] sm:$0xf]  ;;  %v1132_v47 = vld [vmem:[#allocation6 + $0xcc] sm:$0xf0]  ;;  %v955_v50 = vor.u32 %v1134_v41, %v952_v42 }
  0x1a   :  { %834 = vmatmul.msk.bf16.vlgmr.msra.gmra.mxu2 %vm202_vm0, %v1093_v28  ;;  %835 = vmatmul.msk.bf16.vlgmr.msra.gmra.mxu3 %vm202_vm0, %v1093_v28  ;;  %v1092_v49 = vld [vmem:[%s1366_s0] sm:$0xff]  ;;  %v1164_v52 = vld [vmem:[#allocation6 + $0x1cc] sm:$0xf0]  ;;  %v1083_v53 = vor.u32 %v1166_v43, %v1080_v45  ;;  %v935_v54 = vor.u32 %v1132_v47, %v934_v46  ;;  %v936_v56 = vld [vmem:[#allocation6 + $0xd0] sm:$0xf0]  ;;  %vm131_vm1 = vcmask 523264  }
  0x1b   :  { %155 = vmatpush.bf16.msra.mxu1 %v795_v32  ;;  %v1062_v51 = vld [vmem:[#allocation6 + $0x1c0] sm:$0xf]  ;;  %642 = vmatpush.bf16.msrb.mxu2 %v951_v39  ;;  %v1130_v55 = vld [vmem:[#allocation6 + $0xc4] sm:$0xf]  ;;  %v1064_v59 = vld [vmem:[#allocation6 + $0x1d0] sm:$0xf0] }
  0x1c   :  { %656 = vmatpush.bf16.msrb.mxu3 %v1079_v40  ;;  %v1162_v57 = vld [vmem:[#allocation6 + $0x1c4] sm:$0xf]  ;;  %v1063_v58 = vor.u32 %v1164_v52, %v1062_v51  ;;  %v918_v60 = vld [vmem:[#allocation6 + $0xa0] sm:$0xf]  ;;  %v1128_v61 = vld [vmem:[#allocation6 + $0xac] sm:$0xf0]  ;;  %v939_v0 = vor.u32 %v1130_v55, %v936_v56 }
  0x1d   :  { %142 = vmatpush.bf16.msra.mxu0 %v783_v44  ;;  %v1046_v62 = vld [vmem:[#allocation6 + $0x1a0] sm:$0xf]  ;;  %v1160_v63 = vld [vmem:[#allocation6 + $0x1ac] sm:$0xf0]  ;;  %v1067_v1 = vor.u32 %v1162_v57, %v1064_v59  ;;  %v919_v2 = vor.u32 %v1128_v61, %v918_v60  ;;  %v1126_v3 = vld [vmem:[#allocation6 + $0xa4] sm:$0xf] }
  0x1e   :  { %v920_v4 = vld [vmem:[#allocation6 + $0xb0] sm:$0xf0]  ;;  %v1158_v5 = vld [vmem:[#allocation6 + $0x1a4] sm:$0xf]  ;;  %v1047_v6 = vor.u32 %v1160_v63, %v1046_v62  ;;  %v902_v8 = vld [vmem:[#allocation6 + $0x80] sm:$0xf] }
  0x1f   :  { %156 = vmatpush.bf16.msra.mxu1 %v787_v48  ;;  %643 = vmatpush.bf16.msrb.mxu2 %v935_v54  ;;  %v1048_v7 = vld [vmem:[#allocation6 + $0x1b0] sm:$0xf0]  ;;  %v1124_v9 = vld [vmem:[#allocation6 + $0x8c] sm:$0xf0]  ;;  %v1030_v10 = vld [vmem:[#allocation6 + $0x180] sm:$0xf]  ;;  %v923_v12 = vor.u32 %v1126_v3, %v920_v4 }
  0x20   :  { %812 = vmatmul.msk.bf16.vlgmr.msra.gmra.mxu0 %vm131_vm1, %v1092_v49  ;;  %657 = vmatpush.bf16.msrb.mxu3 %v1063_v58  ;;  %v1156_v11 = vld [vmem:[#allocation6 + $0x18c] sm:$0xf0]  ;;  %v1051_v13 = vor.u32 %v1158_v5, %v1048_v7  ;;  %v903_v14 = vor.u32 %v1124_v9, %v902_v8  ;;  %v1122_v15 = vld [vmem:[#allocation6 + $0x84] sm:$0xf]  ;;  %v904_v16 = vld [vmem:[#allocation6 + $0x90] sm:$0xf0] }
  0x21   :  { %670 = vmatpush.bf16.msrb.mxu0 %v955_v50  ;;  %v1154_v17 = vld [vmem:[#allocation6 + $0x184] sm:$0xf]  ;;  %v1031_v18 = vor.u32 %v1156_v11, %v1030_v10  ;;  %v1032_v19 = vld [vmem:[#allocation6 + $0x190] sm:$0xf0]  ;;  %v886_v20 = vld [vmem:[#allocation6 + $0x60] sm:$0xf]  ;;  %v907_v24 = vor.u32 %v1122_v15, %v904_v16 }
  0x22   :  { %813 = vmatmul.msk.bf16.vlgmr.msra.gmra.mxu1 %vm131_vm1, %v1092_v49  ;;  %v1120_v21 = vld [vmem:[#allocation6 + $0x6c] sm:$0xf0]  ;;  %v1014_v22 = vld [vmem:[#allocation6 + $0x160] sm:$0xf]  ;;  %v1035_v25 = vor.u32 %v1154_v17, %v1032_v19  ;;  %v1118_v27 = vld [vmem:[#allocation6 + $0x64] sm:$0xf] }
  0x23   :  { %684 = vmatpush.bf16.msrb.mxu1 %v1083_v53  ;;  %644 = vmatpush.bf16.msrb.mxu2 %v919_v2  ;;  %v1152_v23 = vld [vmem:[#allocation6 + $0x16c] sm:$0xf0]  ;;  %v887_v26 = vor.u32 %v1120_v21, %v886_v20  ;;  %v888_v28 = vld [vmem:[#allocation6 + $0x70] sm:$0xf0]  ;;  %v1150_v29 = vld [vmem:[#allocation6 + $0x164] sm:$0xf] }
  0x24   :  { %658 = vmatpush.bf16.msrb.mxu3 %v1047_v6  ;;  %v1015_v30 = vor.u32 %v1152_v23, %v1014_v22  ;;  %v1016_v31 = vld [vmem:[#allocation6 + $0x170] sm:$0xf0]  ;;  %v870_v32 = vld [vmem:[#allocation6 + $0x40] sm:$0xf]  ;;  %v1116_v33 = vld [vmem:[#allocation6 + $0x4c] sm:$0xf0]  ;;  %v891_v36 = vor.u32 %v1118_v27, %v888_v28 }
  0x25   :  { %671 = vmatpush.bf16.msrb.mxu0 %v939_v0  ;;  %v998_v34 = vld [vmem:[#allocation6 + $0x140] sm:$0xf]  ;;  %v1148_v35 = vld [vmem:[#allocation6 + $0x14c] sm:$0xf0]  ;;  %v1019_v37 = vor.u32 %v1150_v29, %v1016_v31  ;;  %v871_v38 = vor.u32 %v1116_v33, %v870_v32  ;;  %v1114_v39 = vld [vmem:[#allocation6 + $0x44] sm:$0xf] }
  0x26   :  { %v872_v40 = vld [vmem:[#allocation6 + $0x50] sm:$0xf0]  ;;  %v999_v41 = vor.u32 %v1148_v35, %v998_v34  ;;  %v1146_v42 = vld [vmem:[#allocation6 + $0x144] sm:$0xf]  ;;  %v854_v46 = vld [vmem:[#allocation6 + $0x20] sm:$0xf] }
  0x27   :  { %685 = vmatpush.bf16.msrb.mxu1 %v1067_v1  ;;  %645 = vmatpush.bf16.msrb.mxu2 %v903_v14  ;;  %v1000_v43 = vld [vmem:[#allocation6 + $0x150] sm:$0xf0]  ;;  %v875_v44 = vor.u32 %v1114_v39, %v872_v40  ;;  %v1112_v47 = vld [vmem:[#allocation6 + $0x2c] sm:$0xf0]  ;;  %v982_v48 = vld [vmem:[#allocation6 + $0x120] sm:$0xf] }
  0x28   :  { %659 = vmatpush.bf16.msrb.mxu3 %v1031_v18  ;;  %v1003_v45 = vor.u32 %v1146_v42, %v1000_v43  ;;  %v855_v49 = vor.u32 %v1112_v47, %v854_v46  ;;  %v1144_v50 = vld [vmem:[#allocation6 + $0x12c] sm:$0xf0]  ;;  %v1110_v51 = vld [vmem:[#allocation6 + $0x24] sm:$0xf]  ;;  %v856_v52 = vld [vmem:[#allocation6 + $0x30] sm:$0xf0] }
  0x29   :  { %672 = vmatpush.bf16.msrb.mxu0 %v923_v12  ;;  %v983_v53 = vor.u32 %v1144_v50, %v982_v48  ;;  %v859_v54 = vor.u32 %v1110_v51, %v856_v52  ;;  %v1142_v55 = vld [vmem:[#allocation6 + $0x124] sm:$0xf]  ;;  %v984_v56 = vld [vmem:[#allocation6 + $0x130] sm:$0xf0]  ;;  %v838_v58 = vld [vmem:[#allocation6] sm:$0xf] }
  0x2a   :  { %v987_v57 = vor.u32 %v1142_v55, %v984_v56  ;;  %v1108_v59 = vld [vmem:[#allocation6 + $0xc] sm:$0xf0]  ;;  %v966_v60 = vld [vmem:[#allocation6 + $0x100] sm:$0xf]  ;;  %v1106_v63 = vld [vmem:[#allocation6 + $0x4] sm:$0xf] }
  0x2b   :  { %686 = vmatpush.bf16.msrb.mxu1 %v1051_v13  ;;  %646 = vmatpush.bf16.msrb.mxu2 %v887_v26  ;;  %v839_v61 = vor.u32 %v1108_v59, %v838_v58  ;;  %v1140_v62 = vld [vmem:[#allocation6 + $0x10c] sm:$0xf0]  ;;  %v840_v0 = vld [vmem:[#allocation6 + $0x10] sm:$0xf0]  ;;  %v1138_v3 = vld [vmem:[#allocation6 + $0x104] sm:$0xf] }
  0x2c   :  { %660 = vmatpush.bf16.msrb.mxu3 %v1015_v30  ;;  %v967_v1 = vor.u32 %v1140_v62, %v966_v60  ;;  %v843_v2 = vor.u32 %v1106_v63, %v840_v0  ;;  %v968_v4 = vld [vmem:[#allocation6 + $0x110] sm:$0xf0]  ;;  %v958_v5 = vld [vmem:[#allocation6 + $0xe8] sm:$0xf]  ;;  %v1137_v7 = vld [vmem:[#allocation6 + $0xf4] sm:$0xf0] }
  0x2d   :  { %673 = vmatpush.bf16.msrb.mxu0 %v907_v24  ;;  %v971_v6 = vor.u32 %v1138_v3, %v968_v4  ;;  %v1086_v8 = vld [vmem:[#allocation6 + $0x1e8] sm:$0xf]  ;;  %v1169_v9 = vld [vmem:[#allocation6 + $0x1f4] sm:$0xf0]  ;;  %v959_v10 = vor.u32 %v1137_v7, %v958_v5  ;;  %v1135_v12 = vld [vmem:[#allocation6 + $0xec] sm:$0xf] }
  0x2e   :  { %v1087_v11 = vor.u32 %v1169_v9, %v1086_v8  ;;  %v960_v13 = vld [vmem:[#allocation6 + $0xf8] sm:$0xf0]  ;;  %v1167_v14 = vld [vmem:[#allocation6 + $0x1ec] sm:$0xf]  ;;  %v942_v17 = vld [vmem:[#allocation6 + $0xc8] sm:$0xf] }
  0x2f   :  { %687 = vmatpush.bf16.msrb.mxu1 %v1035_v25  ;;  %647 = vmatpush.bf16.msrb.mxu2 %v871_v38  ;;  %v963_v15 = vor.u32 %v1135_v12, %v960_v13  ;;  %v1088_v16 = vld [vmem:[#allocation6 + $0x1f8] sm:$0xf0]  ;;  %v1133_v18 = vld [vmem:[#allocation6 + $0xd4] sm:$0xf0]  ;;  %v1070_v21 = vld [vmem:[#allocation6 + $0x1c8] sm:$0xf] }
  0x30   :  { %661 = vmatpush.bf16.msrb.mxu3 %v999_v41  ;;  %v1091_v19 = vor.u32 %v1167_v14, %v1088_v16  ;;  %v943_v20 = vor.u32 %v1133_v18, %v942_v17  ;;  %v1165_v22 = vld [vmem:[#allocation6 + $0x1d4] sm:$0xf0]  ;;  %v1131_v23 = vld [vmem:[#allocation6 + $0xcc] sm:$0xf]  ;;  %v944_v25 = vld [vmem:[#allocation6 + $0xd8] sm:$0xf0] }
  0x31   :  { %674 = vmatpush.bf16.msrb.mxu0 %v891_v36  ;;  %v1071_v24 = vor.u32 %v1165_v22, %v1070_v21  ;;  %v1163_v26 = vld [vmem:[#allocation6 + $0x1cc] sm:$0xf]  ;;  %v1072_v27 = vld [vmem:[#allocation6 + $0x1d8] sm:$0xf0]  ;;  %v947_v28 = vor.u32 %v1131_v23, %v944_v25  ;;  %v926_v30 = vld [vmem:[#allocation6 + $0xa8] sm:$0xf] }
  0x32   :  { %v1075_v29 = vor.u32 %v1163_v26, %v1072_v27  ;;  %v1129_v31 = vld [vmem:[#allocation6 + $0xb4] sm:$0xf0]  ;;  %v1054_v32 = vld [vmem:[#allocation6 + $0x1a8] sm:$0xf]  ;;  %v1127_v35 = vld [vmem:[#allocation6 + $0xac] sm:$0xf] }
  0x33   :  { %688 = vmatpush.bf16.msrb.mxu1 %v1019_v37  ;;  %648 = vmatpush.bf16.msrb.mxu2 %v855_v49  ;;  %v927_v33 = vor.u32 %v1129_v31, %v926_v30  ;;  %v1161_v34 = vld [vmem:[#allocation6 + $0x1b4] sm:$0xf0]  ;;  %v928_v36 = vld [vmem:[#allocation6 + $0xb8] sm:$0xf0]  ;;  %v1159_v39 = vld [vmem:[#allocation6 + $0x1ac] sm:$0xf] }
  0x34   :  { %662 = vmatpush.bf16.msrb.mxu3 %v983_v53  ;;  %v1055_v37 = vor.u32 %v1161_v34, %v1054_v32  ;;  %v931_v38 = vor.u32 %v1127_v35, %v928_v36  ;;  %v1056_v40 = vld [vmem:[#allocation6 + $0x1b8] sm:$0xf0]  ;;  %v910_v42 = vld [vmem:[#allocation6 + $0x88] sm:$0xf]  ;;  %v1125_v43 = vld [vmem:[#allocation6 + $0x94] sm:$0xf0] }
  0x35   :  { %675 = vmatpush.bf16.msrb.mxu0 %v875_v44  ;;  %v1059_v41 = vor.u32 %v1159_v39, %v1056_v40  ;;  %v1038_v44 = vld [vmem:[#allocation6 + $0x188] sm:$0xf]  ;;  %v1157_v46 = vld [vmem:[#allocation6 + $0x194] sm:$0xf0]  ;;  %v1123_v47 = vld [vmem:[#allocation6 + $0x8c] sm:$0xf] }
  0x36   :  { %v912_v48 = vld [vmem:[#allocation6 + $0x98] sm:$0xf0]  ;;  %v1039_v49 = vor.u32 %v1157_v46, %v1038_v44  ;;  %v1155_v51 = vld [vmem:[#allocation6 + $0x18c] sm:$0xf]  ;;  %v1121_v55 = vld [vmem:[#allocation6 + $0x74] sm:$0xf0] }
  0x37   :  { %689 = vmatpush.bf16.msrb.mxu1 %v1003_v45  ;;  %649 = vmatpush.bf16.msrb.mxu2 %v839_v61  ;;  %v911_v45 = vor.u32 %v1125_v43, %v910_v42  ;;  %v915_v50 = vor.u32 %v1123_v47, %v912_v48  ;;  %v1040_v52 = vld [vmem:[#allocation6 + $0x198] sm:$0xf0]  ;;  %v1022_v56 = vld [vmem:[#allocation6 + $0x168] sm:$0xf]  ;;  %v1153_v58 = vld [vmem:[#allocation6 + $0x174] sm:$0xf0] }
  0x38   :  { %663 = vmatpush.bf16.msrb.mxu3 %v967_v1  ;;  %v1043_v53 = vor.u32 %v1155_v51, %v1040_v52  ;;  %v1119_v59 = vld [vmem:[#allocation6 + $0x6c] sm:$0xf]  ;;  %v896_v60 = vld [vmem:[#allocation6 + $0x78] sm:$0xf0]  ;;  %v1023_v61 = vor.u32 %v1153_v58, %v1022_v56  ;;  %v878_v1 = vld [vmem:[#allocation6 + $0x48] sm:$0xf] }
  0x39   :  { %676 = vmatpush.bf16.msrb.mxu0 %v859_v54  ;;  %v894_v54 = vld [vmem:[#allocation6 + $0x68] sm:$0xf]  ;;  %v899_v62 = vor.u32 %v1119_v59, %v896_v60  ;;  %v1151_v63 = vld [vmem:[#allocation6 + $0x16c] sm:$0xf]  ;;  %v1024_v0 = vld [vmem:[#allocation6 + $0x178] sm:$0xf0] }
  0x3a   :  { %v1117_v3 = vld [vmem:[#allocation6 + $0x54] sm:$0xf0]  ;;  %v1006_v4 = vld [vmem:[#allocation6 + $0x148] sm:$0xf]  ;;  %v880_v7 = vld [vmem:[#allocation6 + $0x58] sm:$0xf0] }
  0x3b   :  { %690 = vmatpush.bf16.msrb.mxu1 %v987_v57  ;;  %698 = vmatpush.bf16.msra.mxu2 %v959_v10  ;;  %v895_v57 = vor.u32 %v1121_v55, %v894_v54  ;;  %v1149_v5 = vld [vmem:[#allocation6 + $0x154] sm:$0xf0]  ;;  %v1147_v8 = vld [vmem:[#allocation6 + $0x14c] sm:$0xf]  ;;  %v1335_v9 = vld [vmem:[%s1371_s5] sm:$0x3]  ;;  %v879_v10 = vor.u32 %v1117_v3, %v878_v1 }
  0x3c   :  { %712 = vmatpush.bf16.msra.mxu3 %v1087_v11  ;;  %v1007_v11 = vor.u32 %v1149_v5, %v1006_v4  ;;  %v1008_v12 = vld [vmem:[#allocation6 + $0x158] sm:$0xf0]  ;;  %v862_v13 = vld [vmem:[#allocation6 + $0x28] sm:$0xf]  ;;  %v1145_v17 = vld [vmem:[#allocation6 + $0x134] sm:$0xf0] }
  0x3d   :  { %677 = vmatpush.bf16.msrb.mxu0 %v843_v2  ;;  %v1027_v2 = vor.u32 %v1151_v63, %v1024_v0  ;;  %v990_v16 = vld [vmem:[#allocation6 + $0x128] sm:$0xf]  ;;  %v1011_v18 = vor.u32 %v1147_v8, %v1008_v12  ;;  %v173_v21 = vperm.slane %v1335_v9, 0  ;;  %v1143_v22 = vld [vmem:[#allocation6 + $0x12c] sm:$0xf] }
  0x3e   :  { %v992_v23 = vld [vmem:[#allocation6 + $0x138] sm:$0xf0]  ;;  %v991_v26 = vor.u32 %v1145_v17, %v990_v16  ;;  %v846_v27 = vld [vmem:[#allocation6 + $0x8] sm:$0xf]  ;;  %v1141_v31 = vld [vmem:[#allocation6 + $0x114] sm:$0xf0] }
  0x3f   :  { %691 = vmatpush.bf16.msrb.mxu1 %v971_v6  ;;  %699 = vmatpush.bf16.msra.mxu2 %v943_v20  ;;  %v1115_v6 = vld [vmem:[#allocation6 + $0x4c] sm:$0xf]  ;;  %v864_v20 = vld [vmem:[#allocation6 + $0x38] sm:$0xf0]  ;;  %v974_v30 = vld [vmem:[#allocation6 + $0x108] sm:$0xf] }
  0x40   :  { %713 = vmatpush.bf16.msra.mxu3 %v1071_v24  ;;  %v883_v14 = vor.u32 %v1115_v6, %v880_v7  ;;  %v174_v24 = vperm.slane %v1335_v9, 1  ;;  %v1107_v34 = vld [vmem:[#allocation6 + $0xc] sm:$0xf]  ;;  %v848_v35 = vld [vmem:[#allocation6 + $0x18] sm:$0xf0]  ;;  %v975_v42 = vor.u32 %v1141_v31, %v974_v30 }
  0x41   :  { %726 = vmatpush.bf16.msra.mxu0 %v963_v15  ;;  %v1113_v15 = vld [vmem:[#allocation6 + $0x34] sm:$0xf0]  ;;  %v976_v39 = vld [vmem:[#allocation6 + $0x118] sm:$0xf0]  ;;  %v851_v44 = vor.u32 %v1107_v34, %v848_v35  ;;  %v312_v3 = vld [vmem:[%s1371_s5 + $0x2] sm:$0xf] }
  0x42   :  { %v863_v25 = vor.u32 %v1113_v15, %v862_v13  ;;  %v315_v5 = vperm.slane %v312_v3, 1  ;;  %v314_v7 = vperm.slane %v312_v3, 0 }
  0x43   :  { %740 = vmatpush.bf16.msra.mxu1 %v1091_v19  ;;  %700 = vmatpush.bf16.msra.mxu2 %v927_v33  ;;  %v1111_v19 = vld [vmem:[#allocation6 + $0x2c] sm:$0xf]  ;;  %v995_v33 = vor.u32 %v1143_v22, %v992_v23 }
  0x44   :  { %714 = vmatpush.bf16.msra.mxu3 %v1055_v37 }
  0x45   :  { %727 = vmatpush.bf16.msra.mxu0 %v947_v28  ;;  %v867_v28 = vor.u32 %v1111_v19, %v864_v20 }
  0x47   :  { %741 = vmatpush.bf16.msra.mxu1 %v1075_v29  ;;  %701 = vmatpush.bf16.msra.mxu2 %v911_v45  ;;  %v1109_v29 = vld [vmem:[#allocation6 + $0x14] sm:$0xf0] }
  0x48   :  { %715 = vmatpush.bf16.msra.mxu3 %v1039_v49 }
  0x49   :  { %728 = vmatpush.bf16.msra.mxu0 %v931_v38  ;;  %v1139_v38 = vld [vmem:[#allocation6 + $0x10c] sm:$0xf] }
  0x4a   :  { %v979_v46 = vor.u32 %v1139_v38, %v976_v39 }
  0x4b   :  { %742 = vmatpush.bf16.msra.mxu1 %v1059_v41  ;;  %702 = vmatpush.bf16.msra.mxu2 %v895_v57  ;;  %v847_v41 = vor.u32 %v1109_v29, %v846_v27 }
  0x4c   :  { %716 = vmatpush.bf16.msra.mxu3 %v1023_v61 }
  0x4d   :  { %729 = vmatpush.bf16.msra.mxu0 %v915_v50 }
  0x4f   :  { %743 = vmatpush.bf16.msra.mxu1 %v1043_v53  ;;  %703 = vmatpush.bf16.msra.mxu2 %v879_v10 }
  0x50   :  { %717 = vmatpush.bf16.msra.mxu3 %v1007_v11 }
  0x51   :  { %730 = vmatpush.bf16.msra.mxu0 %v899_v62 }
  0x53   :  { %744 = vmatpush.bf16.msra.mxu1 %v1027_v2  ;;  %704 = vmatpush.bf16.msra.mxu2 %v863_v25 }
  0x54   :  { %718 = vmatpush.bf16.msra.mxu3 %v991_v26  ;;  %v316_v26 = vperm.slane %v312_v3, 2 }
  0x55   :  { %731 = vmatpush.bf16.msra.mxu0 %v883_v14 }
  0x57   :  { %745 = vmatpush.bf16.msra.mxu1 %v1011_v18  ;;  %705 = vmatpush.bf16.msra.mxu2 %v847_v41 }
  0x58   :  { %719 = vmatpush.bf16.msra.mxu3 %v975_v42 }
  0x59   :  { %732 = vmatpush.bf16.msra.mxu0 %v867_v28 }
  0x5b   :  { %746 = vmatpush.bf16.msra.mxu1 %v995_v33 }
  0x5d   :  { %733 = vmatpush.bf16.msra.mxu0 %v851_v44 }
  0x5f   :  { %747 = vmatpush.bf16.msra.mxu1 %v979_v46 }
  0x9d   :  { %v215_v32 = vpop.f32.mrf.mxu2  ;;  %v229_v37 = vpop.f32.mrf.mxu3 }
  0x9e   :  { %v216_v36 = vadd.f32 %v215_v32, %v173_v21  ;;  %v230_v40 = vadd.f32 %v229_v37, %v174_v24  ;;  %v144_v43 = vpop.f32.mrf.mxu0 }
  0x9f   :  { %v158_v45 = vpop.f32.mrf.mxu1  ;;  %v163_v47 = vmax.f32 %v144_v43, 0.0 }
  0xa0   :  { %1177 = vtanh.f32 %v216_v36  ;;  %v164_v48 = vmax.f32 %v158_v45, 0.0 }
  0xa1   :  { %1179 = vtanh.f32 %v230_v40 }
  0xa5   :  { %v217_v49 = vpop.f32.mrf.mxu2  ;;  %v231_v52 = vpop.f32.mrf.mxu3 }
  0xa6   :  { %v1178_v50 = vpop.eup %1177  ;;  %v218_v51 = vadd.f32 %v217_v49, %v173_v21  ;;  %v232_v55 = vadd.f32 %v231_v52, %v174_v24  ;;  %v146_v57 = vpop.f32.mrf.mxu0  ;;  %v317_v24 = vperm.slane %v312_v3, 3 }
  0xa7   :  { %v1180_v53 = vpop.eup %1179  ;;  %v238_v54 = vadd.f32 %v1178_v50, %v163_v47  ;;  %v160_v58 = vpop.f32.mrf.mxu1  ;;  %v165_v59 = vmax.f32 %v146_v57, 0.0 }
  0xa8   :  { %v239_v56 = vadd.f32 %v1180_v53, %v164_v48  ;;  %1181 = vtanh.f32 %v218_v51  ;;  %v166_v61 = vmax.f32 %v160_v58, 0.0 }
  0xa9   :  { %242 = vst [vmem:[%s1372_s6] sm:$0xff] %v238_v54  ;;  %1183 = vtanh.f32 %v232_v55 }
  0xaa   :  { %243 = vst [vmem:[%s1372_s6 + $0x8] sm:$0xff] %v239_v56 }
  0xae   :  { %v1182_v60 = vpop.eup %1181 }
  0xaf   :  { %v1184_v62 = vpop.eup %1183  ;;  %v240_v63 = vadd.f32 %v1182_v60, %v165_v59 }
  0xb0   :  { %v241_v0 = vadd.f32 %v1184_v62, %v166_v61 }
  0xb1   :  { %244 = vst [vmem:[%s1372_s6 + $0x10] sm:$0xff] %v240_v63  ;;  %v246_v1 = vpack.c.bf16 %v240_v63, %v238_v54 }
  0xb2   :  { %245 = vst [vmem:[%s1372_s6 + $0x18] sm:$0xff] %v241_v0  ;;  %v247_v2 = vpack.c.bf16 %v241_v0, %v239_v56 }
  0xb3   :  { %650 = vmatmul.bf16.vlgmr.msrb.gmra.mxu2 %v246_v1  ;;  %678 = vmatmul.bf16.vlgmr.msrb.gmra.mxu0 %v246_v1 }
  0xb4   :  { %664 = vmatmul.bf16.vlgmr.msrb.gmra.mxu3 %v247_v2  ;;  %692 = vmatmul.bf16.vlgmr.msrb.gmra.mxu1 %v247_v2 }
  0xc3   :  { %706 = vmatmul.bf16.vlgmr.msra.gmra.mxu2 %v246_v1  ;;  %734 = vmatmul.bf16.vlgmr.msra.gmra.mxu0 %v246_v1 }
  0xc4   :  { %720 = vmatmul.bf16.vlgmr.msra.gmra.mxu3 %v247_v2  ;;  %748 = vmatmul.bf16.vlgmr.msra.gmra.mxu1 %v247_v2 }
 0x130   :  { %v679_v4 = vpop.f32.mrf.mxu0 }
 0x131   :  { %v693_v6 = vpop.f32.mrf.mxu1  ;;  %v680_v8 = vadd.f32 %v679_v4, %v315_v5 }
 0x133   :  { %v694_v13 = vadd.f32 %v693_v6, %v680_v8 }
 0x136   :  { %v651_v9 = vpop.f32.mrf.mxu2 }
 0x137   :  { %v652_v10 = vadd.f32 %v651_v9, %v314_v7  ;;  %v665_v11 = vpop.f32.mrf.mxu3 }
 0x138   :  { %v681_v12 = vpop.f32.mrf.mxu0 }
 0x139   :  { %v666_v14 = vadd.f32 %v665_v11, %v652_v10  ;;  %v695_v16 = vpop.f32.mrf.mxu1  ;;  %v682_v17 = vadd.f32 %v681_v12, %v315_v5 }
 0x13b   :  { %v754_v15 = vpack.c.bf16 %v694_v13, %v666_v14  ;;  %v696_v22 = vadd.f32 %v695_v16, %v682_v17 }
 0x13d   :  { %756 = vst [vmem:[%s1373_s7] sm:$0xff] %v754_v15 }
 0x13e   :  { %v653_v18 = vpop.f32.mrf.mxu2 }
 0x13f   :  { %v654_v19 = vadd.f32 %v653_v18, %v314_v7  ;;  %v667_v20 = vpop.f32.mrf.mxu3 }
 0x140   :  { %v735_v21 = vpop.f32.mrf.mxu0 }
 0x141   :  { %v668_v23 = vadd.f32 %v667_v20, %v654_v19  ;;  %v736_v27 = vadd.f32 %v735_v21, %v317_v24  ;;  %v749_v28 = vpop.f32.mrf.mxu1 }
 0x143   :  { %v755_v25 = vpack.c.bf16 %v696_v22, %v668_v23  ;;  %v750_v32 = vadd.f32 %v749_v28, %v736_v27 }
 0x145   :  { %757 = vst [vmem:[%s1373_s7 + $0x8] sm:$0xff] %v755_v25 }
 0x146   :  { %v707_v29 = vpop.f32.mrf.mxu2 }
 0x147   :  { %v708_v30 = vadd.f32 %v707_v29, %v316_v26  ;;  %v721_v31 = vpop.f32.mrf.mxu3 }
 0x148   :  { %v737_v34 = vpop.f32.mrf.mxu0 }
 0x149   :  { %v722_v33 = vadd.f32 %v721_v31, %v708_v30  ;;  %v738_v36 = vadd.f32 %v737_v34, %v317_v24  ;;  %v751_v39 = vpop.f32.mrf.mxu1 }
 0x14b   :  { %v758_v35 = vpack.c.bf16 %v750_v32, %v722_v33  ;;  %v752_v41 = vadd.f32 %v751_v39, %v738_v36 }
 0x14d   :  { %760 = vst [vmem:[%s1374_s8] sm:$0xff] %v758_v35 }
 0x14e   :  { %v709_v37 = vpop.f32.mrf.mxu2 }
 0x14f   :  { %v710_v38 = vadd.f32 %v709_v37, %v316_v26  ;;  %v723_v40 = vpop.f32.mrf.mxu3 }
 0x151   :  { %v724_v42 = vadd.f32 %v723_v40, %v710_v38 }
 0x153   :  { %v759_v43 = vpack.c.bf16 %v752_v41, %v724_v42 }
 0x155   :  { %761 = vst [vmem:[%s1374_s8 + $0x8] sm:$0xff] %v759_v43 }
 0x156   :  { %774 = vsyncpa [#allocation3], 1 }
 0x157   :  { %775 = vsyncpa [#allocation5], 1 }

// kernel: net4hw_forward.3
= control target key start
LH: loop header
LB: loop body
LE: loop exit
PB: predicated region body
PF: predicated region fallthrough
CT: control target
= control target key end

     0   :  { %14 = vsyncpa [#allocation3], 0  ;;  %s5338_s0 = inlined_call_operand.vmem [shape: f32[16,256], index: 0, kind: input, shape index: {}]   ;;  %s5339_s1 = inlined_call_operand.vmem [shape: bf16[16,256], index: 1, kind: input, shape index: {}]   ;;  %s5340_s2 = inlined_call_operand.vmem [shape: bf16[16,256], index: 2, kind: input, shape index: {}]   ;;  %s5341_s3 = inlined_call_operand.hbm [shape: bf16[256,256], index: 3, kind: input, shape index: {}]   ;;  %s5342_s4 = inlined_call_operand.hbm [shape: bf16[256,256], index: 4, kind: input, shape index: {}]   ;;  %s5343_s5 = inlined_call_operand.hbm [shape: bf16[256,1024], index: 5, kind: input, shape index: {}]   ;;  %s5344_s6 = inlined_call_operand.hbm [shape: bf16[1024,256], index: 6, kind: input, shape index: {}]   ;;  %s5345_s7 = inlined_call_operand.hbm [shape: bf16[256,128], index: 7, kind: input, shape index: {}]   ;;  %s5346_s8 = inlined_call_operand.vmem [shape: f32[1,2944], index: 8, kind: input, shape index: {}]   ;;  %s5347_s9 = inlined_call_operand.vmem [shape: f32[16,128], index: 9, kind: output, shape index: {}]  }
   0x1   :  { %15 = vsyncpa [#allocation5], 0 }
   0x2   :  { %16 = vsyncpa [#allocation8], 0  ;;  %s40_s11 = sshll.u32 %s5342_s4, 4  ;;  %s5017_s12 = smov [#allocation4]   ;;  %s41_s11 = int_to_ptr.hbm [resolvable:$true] %s40_s11 }
   0x3   :  { %s42_s13 = sshll.u32 %s5017_s12, 4  ;;  %s66_s16 = sshll.u32 %s5344_s6, 4  ;;  %s43_s13 = int_to_ptr.vmem [resolvable:$true] %s42_s13  ;;  %s67_s16 = int_to_ptr.hbm [resolvable:$true] %s66_s16 }
   0x4   :  { %s5018_s17 = smov 128   ;;  %s5019_s18 = smov 8  }
   0x5   :  { %48 = dma.hbm_to_vmem [thread:$0]  %s41_s11, 4096, %s43_s13, [#allocation5], %s5018_s17, %s5018_s17, %s5019_s18  }
   0x6   :  { %s5020_s19 = smov [#allocation7]   ;;  %s27_s23 = sshll.u32 %s5341_s3, 4  ;;  %s28_s23 = int_to_ptr.hbm [resolvable:$true] %s27_s23 }
   0x7   :  { %s68_s20 = sshll.u32 %s5020_s19, 4  ;;  %s53_s25 = sshll.u32 %s5343_s5, 4  ;;  %s69_s20 = int_to_ptr.vmem [resolvable:$true] %s68_s20  ;;  %s54_s25 = int_to_ptr.hbm [resolvable:$true] %s53_s25 }
   0x8   :  { %74 = dma.hbm_to_vmem [thread:$0]  %s67_s16, 16384, %s69_s20, [#allocation8], %s5018_s17, %s5018_s17, %s5019_s18  }
   0x9   :  { %s5021_s26 = smov [#allocation2]   ;;  %s5022_s6 = smov [#allocation6]  }
   0xa   :  { %s29_s27 = sshll.u32 %s5021_s26, 4  ;;  %s55_s28 = sshll.u32 %s5022_s6, 4  ;;  %s30_s27 = int_to_ptr.vmem [resolvable:$true] %s29_s27  ;;  %s56_s28 = int_to_ptr.vmem [resolvable:$true] %s55_s28 }
   0xb   :  { %35 = dma.hbm_to_vmem [thread:$0]  %s28_s23, 4096, %s30_s27, [#allocation3], %s5018_s17, %s5018_s17, %s5019_s18  }
   0xc   :  { %s5023_s29 = smov 512   ;;  %s5024_s30 = smov 32  }
   0xd   :  { %61 = dma.hbm_to_vmem [thread:$0]  %s54_s25, 16384, %s56_s28, [#allocation5], %s5023_s29, %s5023_s29, %s5024_s30  }
   0xe   :  { %s79_s11 = sshll.u32 %s5345_s7, 4  ;;  %s5025_s12 = smov [#allocation9]   ;;  %s80_s11 = int_to_ptr.hbm [resolvable:$true] %s79_s11 }
   0xf   :  { %s81_s13 = sshll.u32 %s5025_s12, 4  ;;  %s5026_s5 = smov 64   ;;  %s82_s13 = int_to_ptr.vmem [resolvable:$true] %s81_s13 }
  0x10   :  { %s5027_s14 = smov 4  }
  0x11   :  { %87 = dma.hbm_to_vmem [thread:$0]  %s80_s11, 2048, %s82_s13, [#allocation8], %s5026_s5, %s5026_s5, %s5027_s14  }
  0x12   :  { %5011 = dma.done.wait [#allocation3], 4096  }
  0x13   :  { %5012 = vsyncadd [#allocation3], 4294963200 }
  0x14   :  { %5013 = dma.done.wait [#allocation5], 20480  }
  0x15   :  { %5014 = vsyncadd [#allocation5], 4294946816 }
  0x16   :  { %5015 = dma.done.wait [#allocation8], 18432  }
  0x17   :  { %5016 = vsyncadd [#allocation8], 4294948864  ;;  %v3208_v0 = vld [vmem:[#allocation2 + $0x70] sm:$0xf]  ;;  %v4533_v1 = vld [vmem:[#allocation2 + $0x74] sm:$0xf0] }
  0x18   :  { %v3272_v2 = vld [vmem:[#allocation2 + $0xf0] sm:$0xf]  ;;  %v3209_v3 = vor.u32 %v4533_v1, %v3208_v0  ;;  %v4549_v4 = vld [vmem:[#allocation2 + $0xf4] sm:$0xf0]  ;;  %v4532_v5 = vld [vmem:[#allocation2 + $0x74] sm:$0xf] }
  0x19   :  { %v3210_v6 = vld [vmem:[#allocation2 + $0x78] sm:$0xf0]  ;;  %v3273_v7 = vor.u32 %v4549_v4, %v3272_v2  ;;  %v4548_v9 = vld [vmem:[#allocation2 + $0xf4] sm:$0xf]  ;;  %v3200_v11 = vld [vmem:[#allocation2 + $0x60] sm:$0xf] }
  0x1a   :  { %v3213_v8 = vor.u32 %v4532_v5, %v3210_v6  ;;  %v3274_v10 = vld [vmem:[#allocation2 + $0xf8] sm:$0xf0]  ;;  %328 = vmatpush.bf16.msra.mxu0 %v3209_v3  ;;  %v4531_v13 = vld [vmem:[#allocation2 + $0x64] sm:$0xf0]  ;;  %v3264_v14 = vld [vmem:[#allocation2 + $0xe0] sm:$0xf] }
  0x1b   :  { %v3277_v12 = vor.u32 %v4548_v9, %v3274_v10  ;;  %v4547_v15 = vld [vmem:[#allocation2 + $0xe4] sm:$0xf0]  ;;  %342 = vmatpush.bf16.msra.mxu1 %v3273_v7  ;;  %v3201_v16 = vor.u32 %v4531_v13, %v3200_v11  ;;  %v4530_v18 = vld [vmem:[#allocation2 + $0x64] sm:$0xf]  ;;  %v3202_v19 = vld [vmem:[#allocation2 + $0x68] sm:$0xf0] }
  0x1c   :  { %356 = vmatpush.bf16.msra.mxu2 %v3213_v8  ;;  %v3265_v17 = vor.u32 %v4547_v15, %v3264_v14  ;;  %v4546_v20 = vld [vmem:[#allocation2 + $0xe4] sm:$0xf]  ;;  %v3205_v21 = vor.u32 %v4530_v18, %v3202_v19  ;;  %v3266_v22 = vld [vmem:[#allocation2 + $0xe8] sm:$0xf0]  ;;  %v3192_v23 = vld [vmem:[#allocation2 + $0x50] sm:$0xf] }
  0x1d   :  { %370 = vmatpush.bf16.msra.mxu3 %v3277_v12  ;;  %v4529_v24 = vld [vmem:[#allocation2 + $0x54] sm:$0xf0]  ;;  %v3269_v25 = vor.u32 %v4546_v20, %v3266_v22  ;;  %v3256_v26 = vld [vmem:[#allocation2 + $0xd0] sm:$0xf]  ;;  %v4528_v28 = vld [vmem:[#allocation2 + $0x54] sm:$0xf] }
  0x1e   :  { %v4545_v27 = vld [vmem:[#allocation2 + $0xd4] sm:$0xf0]  ;;  %329 = vmatpush.bf16.msra.mxu0 %v3201_v16  ;;  %v3193_v29 = vor.u32 %v4529_v24, %v3192_v23  ;;  %v3194_v30 = vld [vmem:[#allocation2 + $0x58] sm:$0xf0]  ;;  %v4544_v31 = vld [vmem:[#allocation2 + $0xd4] sm:$0xf] }
  0x1f   :  { %v3258_v32 = vld [vmem:[#allocation2 + $0xd8] sm:$0xf0]  ;;  %343 = vmatpush.bf16.msra.mxu1 %v3265_v17  ;;  %v3257_v33 = vor.u32 %v4545_v27, %v3256_v26  ;;  %v3197_v34 = vor.u32 %v4528_v28, %v3194_v30  ;;  %v3184_v35 = vld [vmem:[#allocation2 + $0x40] sm:$0xf]  ;;  %v4527_v36 = vld [vmem:[#allocation2 + $0x44] sm:$0xf0] }
  0x20   :  { %357 = vmatpush.bf16.msra.mxu2 %v3205_v21  ;;  %v3248_v37 = vld [vmem:[#allocation2 + $0xc0] sm:$0xf]  ;;  %v3261_v38 = vor.u32 %v4544_v31, %v3258_v32  ;;  %v4543_v39 = vld [vmem:[#allocation2 + $0xc4] sm:$0xf0]  ;;  %v4526_v40 = vld [vmem:[#allocation2 + $0x44] sm:$0xf]  ;;  %v3185_v44 = vor.u32 %v4527_v36, %v3184_v35 }
  0x21   :  { %371 = vmatpush.bf16.msra.mxu3 %v3269_v25  ;;  %v3186_v41 = vld [vmem:[#allocation2 + $0x48] sm:$0xf0]  ;;  %v4542_v42 = vld [vmem:[#allocation2 + $0xc4] sm:$0xf]  ;;  %v3249_v45 = vor.u32 %v4543_v39, %v3248_v37  ;;  %v3176_v47 = vld [vmem:[#allocation2 + $0x30] sm:$0xf] }
  0x22   :  { %v3250_v43 = vld [vmem:[#allocation2 + $0xc8] sm:$0xf0]  ;;  %330 = vmatpush.bf16.msra.mxu0 %v3193_v29  ;;  %v3189_v46 = vor.u32 %v4526_v40, %v3186_v41  ;;  %v4525_v48 = vld [vmem:[#allocation2 + $0x34] sm:$0xf0]  ;;  %v3240_v49 = vld [vmem:[#allocation2 + $0xb0] sm:$0xf] }
  0x23   :  { %344 = vmatpush.bf16.msra.mxu1 %v3257_v33  ;;  %v3253_v50 = vor.u32 %v4542_v42, %v3250_v43  ;;  %v4541_v51 = vld [vmem:[#allocation2 + $0xb4] sm:$0xf0]  ;;  %v4524_v52 = vld [vmem:[#allocation2 + $0x34] sm:$0xf]  ;;  %v3178_v53 = vld [vmem:[#allocation2 + $0x38] sm:$0xf0]  ;;  %v3177_v56 = vor.u32 %v4525_v48, %v3176_v47 }
  0x24   :  { %358 = vmatpush.bf16.msra.mxu2 %v3197_v34  ;;  %v4540_v54 = vld [vmem:[#allocation2 + $0xb4] sm:$0xf]  ;;  %v3242_v55 = vld [vmem:[#allocation2 + $0xb8] sm:$0xf0]  ;;  %v3241_v57 = vor.u32 %v4541_v51, %v3240_v49  ;;  %v3181_v58 = vor.u32 %v4524_v52, %v3178_v53  ;;  %v3168_v59 = vld [vmem:[#allocation2 + $0x20] sm:$0xf] }
  0x25   :  { %372 = vmatpush.bf16.msra.mxu3 %v3261_v38  ;;  %v4523_v60 = vld [vmem:[#allocation2 + $0x24] sm:$0xf0]  ;;  %v3232_v61 = vld [vmem:[#allocation2 + $0xa0] sm:$0xf]  ;;  %v3245_v62 = vor.u32 %v4540_v54, %v3242_v55  ;;  %v4522_v0 = vld [vmem:[#allocation2 + $0x24] sm:$0xf] }
  0x26   :  { %331 = vmatpush.bf16.msra.mxu0 %v3185_v44  ;;  %v4539_v63 = vld [vmem:[#allocation2 + $0xa4] sm:$0xf0]  ;;  %v3170_v1 = vld [vmem:[#allocation2 + $0x28] sm:$0xf0]  ;;  %v4538_v2 = vld [vmem:[#allocation2 + $0xa4] sm:$0xf]  ;;  %v3169_v4 = vor.u32 %v4523_v60, %v3168_v59 }
  0x27   :  { %345 = vmatpush.bf16.msra.mxu1 %v3249_v45  ;;  %v3234_v3 = vld [vmem:[#allocation2 + $0xa8] sm:$0xf0]  ;;  %v3233_v5 = vor.u32 %v4539_v63, %v3232_v61  ;;  %v3173_v6 = vor.u32 %v4522_v0, %v3170_v1  ;;  %v3160_v7 = vld [vmem:[#allocation2 + $0x10] sm:$0xf]  ;;  %v4521_v8 = vld [vmem:[#allocation2 + $0x14] sm:$0xf0]  ;;  %v111_v1 = vlaneseq }
  0x28   :  { %359 = vmatpush.bf16.msra.mxu2 %v3189_v46  ;;  %v3224_v9 = vld [vmem:[#allocation2 + $0x90] sm:$0xf]  ;;  %v3237_v10 = vor.u32 %v4538_v2, %v3234_v3  ;;  %v4537_v11 = vld [vmem:[#allocation2 + $0x94] sm:$0xf0]  ;;  %v4520_v12 = vld [vmem:[#allocation2 + $0x14] sm:$0xf]  ;;  %v3161_v16 = vor.u32 %v4521_v8, %v3160_v7 }
  0x29   :  { %373 = vmatpush.bf16.msra.mxu3 %v3253_v50  ;;  %v3162_v13 = vld [vmem:[#allocation2 + $0x18] sm:$0xf0]  ;;  %v4536_v14 = vld [vmem:[#allocation2 + $0x94] sm:$0xf]  ;;  %v3225_v17 = vor.u32 %v4537_v11, %v3224_v9  ;;  %v3152_v19 = vld [vmem:[#allocation2] sm:$0xf] }
  0x2a   :  { %332 = vmatpush.bf16.msra.mxu0 %v3177_v56  ;;  %v3226_v15 = vld [vmem:[#allocation2 + $0x98] sm:$0xf0]  ;;  %v3165_v18 = vor.u32 %v4520_v12, %v3162_v13  ;;  %v4519_v20 = vld [vmem:[#allocation2 + $0x4] sm:$0xf0]  ;;  %v3216_v21 = vld [vmem:[#allocation2 + $0x80] sm:$0xf] }
  0x2b   :  { %346 = vmatpush.bf16.msra.mxu1 %v3241_v57  ;;  %v3229_v22 = vor.u32 %v4536_v14, %v3226_v15  ;;  %v4535_v23 = vld [vmem:[#allocation2 + $0x84] sm:$0xf0]  ;;  %v4518_v24 = vld [vmem:[#allocation2 + $0x4] sm:$0xf]  ;;  %v3154_v25 = vld [vmem:[#allocation2 + $0x8] sm:$0xf0]  ;;  %v3153_v28 = vor.u32 %v4519_v20, %v3152_v19 }
  0x2c   :  { %360 = vmatpush.bf16.msra.mxu2 %v3181_v58  ;;  %v4534_v26 = vld [vmem:[#allocation2 + $0x84] sm:$0xf]  ;;  %v3218_v27 = vld [vmem:[#allocation2 + $0x88] sm:$0xf0]  ;;  %v5102_v30 = vld [vmem:[%s5338_s0 + $0x10] sm:$0xff]  ;;  %v3217_v31 = vor.u32 %v4535_v23, %v3216_v21  ;;  %v3157_v32 = vor.u32 %v4518_v24, %v3154_v25  ;;  %v5133_v2 = vand.u32 127, %v111_v1 }
  0x2d   :  { %374 = vmatpush.bf16.msra.mxu3 %v3245_v62  ;;  %v5097_v29 = vld [vmem:[%s5338_s0] sm:$0xff]  ;;  %v5107_v33 = vld [vmem:[%s5338_s0 + $0x8] sm:$0xff]  ;;  %v5112_v34 = vld [vmem:[%s5338_s0 + $0x18] sm:$0xff]  ;;  %v3221_v35 = vor.u32 %v4534_v26, %v3218_v27  ;;  %vm429_vm1 = vcmask 130048  }
  0x2e   :  { %333 = vmatpush.bf16.msra.mxu0 %v3169_v4  ;;  %v128_v36 = vpack.c.bf16 %v5102_v30, %v5097_v29  ;;  %v129_v37 = vpack.c.bf16 %v5112_v34, %v5107_v33  ;;  %v3280_v38 = vld [vmem:[%s5339_s1] sm:$0xf]  ;;  %v4515_v39 = vld [vmem:[%s5339_s1 + $0x4] sm:$0xf0]  ;;  %v4514_v41 = vld [vmem:[%s5339_s1 + $0x4] sm:$0xf] }
  0x2f   :  { %347 = vmatpush.bf16.msra.mxu1 %v3233_v5  ;;  %v3281_v40 = vor.u32 %v4515_v39, %v3280_v38  ;;  %v3282_v42 = vld [vmem:[%s5339_s1 + $0x8] sm:$0xf0]  ;;  %v162_v44 = vld [vmem:[%s5346_s8] sm:$0x3]  ;;  %vm424_vm0 = vcmp.lt.s32.totalorder %v5133_v2, 8 }
  0x30   :  { %361 = vmatpush.bf16.msra.mxu2 %v3173_v6  ;;  %v3285_v43 = vor.u32 %v4514_v41, %v3282_v42  ;;  %v164_v47 = vperm.slane %v162_v44, 0  ;;  %v165_v53 = vperm.slane %v162_v44, 1  ;;  %v3288_v23 = vld [vmem:[%s5340_s2] sm:$0xf]  ;;  %v4517_v24 = vld [vmem:[%s5340_s2 + $0x4] sm:$0xf0] }
  0x31   :  { %375 = vmatpush.bf16.msra.mxu3 %v3237_v10  ;;  %v4516_v25 = vld [vmem:[%s5340_s2 + $0x4] sm:$0xf]  ;;  %v3289_v26 = vor.u32 %v4517_v24, %v3288_v23  ;;  %v3290_v27 = vld [vmem:[%s5340_s2 + $0x8] sm:$0xf0]  ;;  %v4564_v38 = vld [vmem:[#allocation4 + $0x74] sm:$0xf] }
  0x32   :  { %334 = vmatpush.bf16.msra.mxu0 %v3161_v16  ;;  %v3356_v39 = vld [vmem:[#allocation4 + $0x78] sm:$0xf0]  ;;  %v4580_v42 = vld [vmem:[#allocation4 + $0xf4] sm:$0xf]  ;;  %v3346_v44 = vld [vmem:[#allocation4 + $0x60] sm:$0xf] }
  0x33   :  { %348 = vmatpush.bf16.msra.mxu1 %v3225_v17  ;;  %v3359_v41 = vor.u32 %v4564_v38, %v3356_v39  ;;  %v3404_v1 = vld [vmem:[#allocation4 + $0xd8] sm:$0xf0]  ;;  %v4573_v24 = vld [vmem:[#allocation4 + $0xb4] sm:$0xf0] }
  0x34   :  { %362 = vmatpush.bf16.msra.mxu2 %v3165_v18 }
  0x35   :  { %376 = vmatpush.bf16.msra.mxu3 %v3229_v22 }
  0x36   :  { %335 = vmatpush.bf16.msra.mxu0 %v3153_v28  ;;  %v3293_v28 = vor.u32 %v4516_v25, %v3290_v27  ;;  %v4556_v25 = vld [vmem:[#allocation4 + $0x34] sm:$0xf] }
  0x37   :  { %349 = vmatpush.bf16.msra.mxu1 %v3217_v31  ;;  %v3354_v31 = vld [vmem:[#allocation4 + $0x70] sm:$0xf]  ;;  %v4572_v27 = vld [vmem:[#allocation4 + $0xb4] sm:$0xf] }
  0x38   :  { %363 = vmatpush.bf16.msra.mxu2 %v3157_v32  ;;  %v4565_v32 = vld [vmem:[#allocation4 + $0x74] sm:$0xf0] }
  0x39   :  { %377 = vmatpush.bf16.msra.mxu3 %v3221_v35  ;;  %336 = vmatmul.bf16.vlgmr.msra.gmra.mxu0 %v128_v36  ;;  %v3418_v35 = vld [vmem:[#allocation4 + $0xf0] sm:$0xf] }
  0x3a   :  { %350 = vmatmul.bf16.vlgmr.msra.gmra.mxu1 %v129_v37 }
  0x3b   :  { %364 = vmatmul.bf16.vlgmr.msra.gmra.mxu2 %v128_v36  ;;  %v3355_v36 = vor.u32 %v4565_v32, %v3354_v31 }
  0x3c   :  { %378 = vmatmul.bf16.vlgmr.msra.gmra.mxu3 %v129_v37  ;;  %403 = vmatpush.bf16.xpose.msrb.mxu2 %v3281_v40  ;;  %v4581_v37 = vld [vmem:[#allocation4 + $0xf4] sm:$0xf0] }
  0x3d   :  { %417 = vmatpush.bf16.xpose.msrb.mxu3 %v3285_v43  ;;  %v3419_v40 = vor.u32 %v4581_v37, %v3418_v35  ;;  %v3420_v43 = vld [vmem:[#allocation4 + $0xf8] sm:$0xf0]  ;;  %694 = vmatpush.bf16.msrb.mxu0 %v3355_v36 }
  0x3f   :  { %708 = vmatpush.bf16.msrb.mxu1 %v3419_v40 }
  0x44   :  { %473 = vmatpush.bf16.msra.mxu2 %v3289_v26  ;;  %v3324_v26 = vld [vmem:[#allocation4 + $0x38] sm:$0xf0] }
  0x45   :  { %487 = vmatpush.bf16.msra.mxu3 %v3293_v28  ;;  %v3388_v28 = vld [vmem:[#allocation4 + $0xb8] sm:$0xf0]  ;;  %v3327_v35 = vor.u32 %v4556_v25, %v3324_v26 }
  0x46   :  { %v3391_v36 = vor.u32 %v4572_v27, %v3388_v28 }
  0xb6   :  { %v337_v45 = vpop.f32.mrf.mxu0 }
  0xb7   :  { %v351_v46 = vpop.f32.mrf.mxu1  ;;  %v338_v48 = vadd.f32 %v337_v45, %v164_v47  ;;  %v3423_v45 = vor.u32 %v4580_v42, %v3420_v43  ;;  %v3314_v43 = vld [vmem:[#allocation4 + $0x20] sm:$0xf] }
  0xb9   :  { %v352_v55 = vadd.f32 %v351_v46, %v338_v48  ;;  %v4563_v46 = vld [vmem:[#allocation4 + $0x64] sm:$0xf0] }
  0xba   :  { %v4579_v48 = vld [vmem:[#allocation4 + $0xe4] sm:$0xf0] }
  0xbe   :  { %v365_v49 = vpop.f32.mrf.mxu2  ;;  %v339_v51 = vpop.f32.mrf.mxu0 }
  0xbf   :  { %v379_v50 = vpop.f32.mrf.mxu3  ;;  %v340_v52 = vadd.f32 %v339_v51, %v164_v47  ;;  %v353_v54 = vpop.f32.mrf.mxu1  ;;  %v366_v58 = vadd.f32 %v365_v49, %v165_v53  ;;  %v3410_v47 = vld [vmem:[#allocation4 + $0xe0] sm:$0xf]  ;;  %v3347_v49 = vor.u32 %v4563_v46, %v3346_v44  ;;  %v4562_v51 = vld [vmem:[#allocation4 + $0x64] sm:$0xf]  ;;  %v4555_v44 = vld [vmem:[#allocation4 + $0x24] sm:$0xf0] }
  0xc0   :  { %v3315_v46 = vor.u32 %v4555_v44, %v3314_v43 }
  0xc1   :  { %v354_v56 = vadd.f32 %v353_v54, %v340_v52  ;;  %v380_v62 = vadd.f32 %v379_v50, %v366_v58  ;;  %v3411_v50 = vor.u32 %v4579_v48, %v3410_v47  ;;  %v3348_v52 = vld [vmem:[#allocation4 + $0x68] sm:$0xf0]  ;;  %695 = vmatpush.bf16.msrb.mxu0 %v3347_v49  ;;  %v4571_v47 = vld [vmem:[#allocation4 + $0xa4] sm:$0xf0]  ;;  %v4554_v48 = vld [vmem:[#allocation4 + $0x24] sm:$0xf] }
  0xc2   :  { %v3351_v54 = vor.u32 %v4562_v51, %v3348_v52  ;;  %v3316_v49 = vld [vmem:[#allocation4 + $0x28] sm:$0xf0]  ;;  %v4570_v52 = vld [vmem:[#allocation4 + $0xa4] sm:$0xf] }
  0xc3   :  { %v384_v57 = vpack.c.bf16 %v354_v56, %v352_v55  ;;  %v3412_v55 = vld [vmem:[#allocation4 + $0xe8] sm:$0xf0]  ;;  %v3338_v56 = vld [vmem:[#allocation4 + $0x50] sm:$0xf]  ;;  %709 = vmatpush.bf16.msrb.mxu1 %v3411_v50  ;;  %v3319_v51 = vor.u32 %v4554_v48, %v3316_v49 }
  0xc5   :  { %404 = vmatmul.bf16.vlgmr.msrb.gmra.mxu2 %v384_v57  ;;  %v4561_v57 = vld [vmem:[#allocation4 + $0x54] sm:$0xf0] }
  0xc6   :  { %v367_v59 = vpop.f32.mrf.mxu2  ;;  %722 = vmatpush.bf16.msrb.mxu2 %v3359_v41 }
  0xc7   :  { %v368_v60 = vadd.f32 %v367_v59, %v165_v53  ;;  %v381_v61 = vpop.f32.mrf.mxu3  ;;  %v4578_v53 = vld [vmem:[#allocation4 + $0xe4] sm:$0xf]  ;;  %v3402_v59 = vld [vmem:[#allocation4 + $0xd0] sm:$0xf] }
  0xc8   :  { %v3415_v58 = vor.u32 %v4578_v53, %v3412_v55  ;;  %v3380_v53 = vld [vmem:[#allocation4 + $0xa8] sm:$0xf0]  ;;  %v3370_v55 = vld [vmem:[#allocation4 + $0x90] sm:$0xf] }
  0xc9   :  { %v382_v63 = vadd.f32 %v381_v61, %v368_v60  ;;  %v4577_v60 = vld [vmem:[#allocation4 + $0xd4] sm:$0xf0]  ;;  %v4560_v61 = vld [vmem:[#allocation4 + $0x54] sm:$0xf] }
  0xca   :  { %723 = vmatpush.bf16.msrb.mxu2 %v3351_v54  ;;  %v3306_v54 = vld [vmem:[#allocation4 + $0x10] sm:$0xf] }
  0xcb   :  { %v385_v0 = vpack.c.bf16 %v382_v63, %v380_v62  ;;  %v3339_v62 = vor.u32 %v4561_v57, %v3338_v56  ;;  %v3340_v63 = vld [vmem:[#allocation4 + $0x58] sm:$0xf0]  ;;  %v4569_v56 = vld [vmem:[#allocation4 + $0x94] sm:$0xf0] }
  0xcd   :  { %418 = vmatmul.bf16.vlgmr.msrb.gmra.mxu3 %v385_v0  ;;  %v4576_v0 = vld [vmem:[#allocation4 + $0xd4] sm:$0xf]  ;;  %696 = vmatpush.bf16.msrb.mxu0 %v3339_v62 }
  0xce   :  { %736 = vmatpush.bf16.msrb.mxu3 %v3423_v45  ;;  %v3378_v45 = vld [vmem:[#allocation4 + $0xa0] sm:$0xf] }
  0xcf   :  { %v3379_v50 = vor.u32 %v4571_v47, %v3378_v45 }
  0xd2   :  { %737 = vmatpush.bf16.msrb.mxu3 %v3415_v58  ;;  %v3371_v58 = vor.u32 %v4569_v56, %v3370_v55  ;;  %v4702_v56 = vld [vmem:[#allocation6 + $0x3c4] sm:$0xf] }
 0x148   :  { %v405_v3 = vpop.f32.mrf.mxu2 }
 0x150   :  { %v419_v4 = vpop.f32.mrf.mxu3  ;;  %v407_v8 = vpop.f32.mrf.mxu2 }
 0x151   :  { %v420_v5 = vadd.f32 %v419_v4, %v405_v3  ;;  %v3403_v3 = vor.u32 %v4577_v60, %v3402_v59  ;;  %v3343_v4 = vor.u32 %v4560_v61, %v3340_v63  ;;  %v4552_v59 = vld [vmem:[#allocation4 + $0x14] sm:$0xf]  ;;  %v3308_v60 = vld [vmem:[#allocation4 + $0x18] sm:$0xf0] }
 0x152   :  { %v4568_v61 = vld [vmem:[#allocation4 + $0x94] sm:$0xf]  ;;  %v3311_v62 = vor.u32 %v4552_v59, %v3308_v60  ;;  %v3372_v63 = vld [vmem:[#allocation4 + $0x98] sm:$0xf0]  ;;  %v4634_v59 = vld [vmem:[#allocation6 + $0x19c] sm:$0xf0] }
 0x153   :  { %v427_v6 = vsel %vm424_vm0, %v420_v5, -1e+30  ;;  %v3330_v5 = vld [vmem:[#allocation4 + $0x40] sm:$0xf]  ;;  %710 = vmatpush.bf16.msrb.mxu1 %v3403_v3  ;;  %724 = vmatpush.bf16.msrb.mxu2 %v3343_v4  ;;  %v4551_v3 = vld [vmem:[#allocation4 + $0x4] sm:$0xf0] }
 0x154   :  { %v430_v7 = vsel %vm429_vm1, %v427_v6, -inf  ;;  %v3362_v4 = vld [vmem:[#allocation4 + $0x80] sm:$0xf] }
 0x155   :  { %431 = vmax.xlane.f32.xlu0 %v430_v7  ;;  %v3394_v7 = vld [vmem:[#allocation4 + $0xc0] sm:$0xf] }
 0x156   :  { %v3874_v60 = vld [vmem:[#allocation6 + $0x380] sm:$0xf] }
 0x158   :  { %v421_v9 = vpop.f32.mrf.mxu3 }
 0x159   :  { %v422_v10 = vadd.f32 %v421_v9, %v407_v8  ;;  %v3407_v8 = vor.u32 %v4576_v0, %v3404_v1  ;;  %v4575_v9 = vld [vmem:[#allocation4 + $0xc4] sm:$0xf0]  ;;  %v3375_v0 = vor.u32 %v4568_v61, %v3372_v63  ;;  %v3298_v1 = vld [vmem:[#allocation4] sm:$0xf]  ;;  %v4630_v63 = vld [vmem:[#allocation6 + $0x184] sm:$0xf] }
 0x15a   :  { %v4698_v61 = vld [vmem:[#allocation6 + $0x39c] sm:$0xf0] }
 0x15b   :  { %v428_v11 = vsel %vm424_vm0, %v422_v10, -1e+30  ;;  %v4558_v10 = vld [vmem:[#allocation4 + $0x44] sm:$0xf]  ;;  %738 = vmatpush.bf16.msrb.mxu3 %v3407_v8  ;;  %v3300_v8 = vld [vmem:[#allocation4 + $0x8] sm:$0xf0] }
 0x15c   :  { %v433_v12 = vsel %vm429_vm1, %v428_v11, -inf }
 0x15d   :  { %434 = vmax.xlane.f32.xlu0 %v433_v12  ;;  %v4574_v12 = vld [vmem:[#allocation4 + $0xc4] sm:$0xf] }
 0x1c8   :  { %v432_v13 = vpop.xlane.xlu0 %431 }
 0x1c9   :  { %v436_v14 = vsub.f32 %v427_v6, %v432_v13  ;;  %v4559_v6 = vld [vmem:[#allocation4 + $0x44] sm:$0xf0]  ;;  %v3396_v13 = vld [vmem:[#allocation4 + $0xc8] sm:$0xf0] }
 0x1ca   :  { %v3399_v23 = vor.u32 %v4574_v12, %v3396_v13  ;;  %v3364_v12 = vld [vmem:[#allocation4 + $0x88] sm:$0xf0] }
 0x1cb   :  { %v438_v15 = vmul.f32 1.442695, %v436_v14  ;;  %v3331_v14 = vor.u32 %v4559_v6, %v3330_v5  ;;  %v3299_v5 = vor.u32 %v4551_v3, %v3298_v1  ;;  %v4567_v6 = vld [vmem:[#allocation4 + $0x84] sm:$0xf0]  ;;  %v4694_v1 = vld [vmem:[#allocation6 + $0x384] sm:$0xf] }
 0x1cc   :  { %739 = vmatpush.bf16.msrb.mxu3 %v3399_v23 }
 0x1cd   :  { %4867 = vpow2.f32 %v438_v15  ;;  %697 = vmatpush.bf16.msrb.mxu0 %v3331_v14 }
 0x1d0   :  { %v435_v16 = vpop.xlane.xlu0 %434  ;;  %740 = vmatpush.bf16.msrb.mxu3 %v3391_v36 }
 0x1d1   :  { %v437_v17 = vsub.f32 %v428_v11, %v435_v16  ;;  %v3332_v11 = vld [vmem:[#allocation4 + $0x48] sm:$0xf0]  ;;  %v3395_v16 = vor.u32 %v4575_v9, %v3394_v7  ;;  %v4550_v7 = vld [vmem:[#allocation4 + $0x4] sm:$0xf]  ;;  %v3363_v9 = vor.u32 %v4567_v6, %v3362_v4  ;;  %v4626_v6 = vld [vmem:[#allocation6 + $0x15c] sm:$0xf0] }
 0x1d2   :  { %v3876_v4 = vld [vmem:[#allocation6 + $0x3a0] sm:$0xf0] }
 0x1d3   :  { %v5138_v18 = vpop.eup %4867  ;;  %v440_v19 = vmul.f32 1.442695, %v437_v17  ;;  %v3335_v17 = vor.u32 %v4558_v10, %v3332_v11  ;;  %711 = vmatpush.bf16.msrb.mxu1 %v3395_v16  ;;  %v3303_v10 = vor.u32 %v4550_v7, %v3300_v8  ;;  %v4566_v11 = vld [vmem:[#allocation4 + $0x84] sm:$0xf]  ;;  %v3879_v7 = vor.u32 %v4694_v1, %v3876_v4  ;;  %v3842_v8 = vld [vmem:[#allocation6 + $0x340] sm:$0xf] }
 0x1d4   :  { %v442_v20 = vsel %vm429_vm1, %v5138_v18, 0.0  ;;  %v3367_v13 = vor.u32 %v4566_v11, %v3364_v12  ;;  %v3588_v12 = vld [vmem:[#allocation6 + $0x160] sm:$0xf0] }
 0x1d5   :  { %4869 = vpow2.f32 %v440_v19  ;;  %443 = vadd.xlane.f32.xlu1 %v442_v20  ;;  %v3322_v19 = vld [vmem:[#allocation4 + $0x30] sm:$0xf]  ;;  %v4557_v20 = vld [vmem:[#allocation4 + $0x34] sm:$0xf0]  ;;  %725 = vmatpush.bf16.msrb.mxu2 %v3335_v17  ;;  %v4598_v1 = vld [vmem:[#allocation6 + $0x84] sm:$0xf] }
 0x1d6   :  { %v3323_v31 = vor.u32 %v4557_v20, %v3322_v19 }
 0x1d8   :  { %698 = vmatpush.bf16.msrb.mxu0 %v3323_v31 }
 0x1d9   :  { %726 = vmatpush.bf16.msrb.mxu2 %v3327_v35 }
 0x1db   :  { %v5142_v21 = vpop.eup %4869 }
 0x1dc   :  { %v445_v22 = vsel %vm429_vm1, %v5142_v21, 0.0  ;;  %699 = vmatpush.bf16.msrb.mxu0 %v3315_v46 }
 0x1dd   :  { %446 = vadd.xlane.f32.xlu1 %v445_v22  ;;  %v3386_v22 = vld [vmem:[#allocation4 + $0xb0] sm:$0xf]  ;;  %727 = vmatpush.bf16.msrb.mxu2 %v3319_v51  ;;  %v4642_v51 = vld [vmem:[#allocation6 + $0x1dc] sm:$0xf0] }
 0x1de   :  { %v3387_v32 = vor.u32 %v4573_v24, %v3386_v22  ;;  %v528_v22 = vld [vmem:[%s5346_s8 + $0x2] sm:$0x3] }
 0x1df   :  { %v530_v23 = vperm.slane %v528_v22, 0  ;;  %v531_v26 = vperm.slane %v528_v22, 1 }
 0x1e0   :  { %712 = vmatpush.bf16.msrb.mxu1 %v3387_v32 }
 0x1e1   :  { %728 = vmatpush.bf16.msrb.mxu2 %v3311_v62  ;;  %v3875_v62 = vor.u32 %v4698_v61, %v3874_v60 }
 0x1e4   :  { %713 = vmatpush.bf16.msrb.mxu1 %v3379_v50  ;;  %v3650_v50 = vld [vmem:[#allocation6 + $0x1c0] sm:$0xf] }
 0x1e5   :  { %729 = vmatpush.bf16.msrb.mxu2 %v3303_v10  ;;  %v4622_v10 = vld [vmem:[#allocation6 + $0x144] sm:$0xf] }
 0x1e8   :  { %714 = vmatpush.bf16.msrb.mxu1 %v3371_v58 }
 0x1ec   :  { %715 = vmatpush.bf16.msrb.mxu1 %v3363_v9  ;;  %v4690_v9 = vld [vmem:[#allocation6 + $0x35c] sm:$0xf0] }
 0x248   :  { %v444_v15 = vpop.xlane.xlu1 %443 }
 0x249   :  { %4871 = vrcp.f32 %v444_v15 }
 0x24f   :  { %v4872_v38 = vpop.eup %4871 }
 0x250   :  { %v447_v37 = vpop.xlane.xlu1 %446  ;;  %v450_v40 = vmul.f32 %v4872_v38, %v5138_v18  ;;  %v3383_v18 = vor.u32 %v4570_v52, %v3380_v53  ;;  %v3906_v52 = vld [vmem:[#allocation6 + $0x3c0] sm:$0xf]  ;;  %v3651_v53 = vor.u32 %v4642_v51, %v3650_v50 }
 0x251   :  { %4873 = vrcp.f32 %v447_v37 }
 0x252   :  { %741 = vmatpush.bf16.msrb.mxu3 %v3383_v18  ;;  %v4638_v18 = vld [vmem:[#allocation6 + $0x1c4] sm:$0xf] }
 0x256   :  { %742 = vmatpush.bf16.msrb.mxu3 %v3375_v0  ;;  %v3620_v0 = vld [vmem:[#allocation6 + $0x1a0] sm:$0xf0] }
 0x257   :  { %v4874_v39 = vpop.eup %4873  ;;  %v3623_v3 = vor.u32 %v4630_v63, %v3620_v0  ;;  %v3746_v63 = vld [vmem:[#allocation6 + $0x280] sm:$0xf] }
 0x258   :  { %v451_v41 = vmul.f32 %v4874_v39, %v5142_v21  ;;  %v4553_v21 = vld [vmem:[#allocation4 + $0x14] sm:$0xf0] }
 0x259   :  { %v3307_v57 = vor.u32 %v4553_v21, %v3306_v54  ;;  %v4706_v54 = vld [vmem:[#allocation6 + $0x3dc] sm:$0xf0]  ;;  %v3652_v21 = vld [vmem:[#allocation6 + $0x1e0] sm:$0xf0] }
 0x25a   :  { %v452_v42 = vpack.c.bf16 %v451_v41, %v450_v40  ;;  %743 = vmatpush.bf16.msrb.mxu3 %v3367_v13  ;;  %v3907_v55 = vor.u32 %v4706_v54, %v3906_v52  ;;  %v4686_v13 = vld [vmem:[#allocation6 + $0x344] sm:$0xf] }
 0x25b   :  { %700 = vmatpush.bf16.msrb.mxu0 %v3307_v57  ;;  %v3908_v57 = vld [vmem:[#allocation6 + $0x3e0] sm:$0xf0] }
 0x25c   :  { %3294 = vmatmul.msk.bf16.vlgmr.msra.gmra.mxu2 %vm429_vm1, %v452_v42  ;;  %3295 = vmatmul.msk.bf16.vlgmr.msra.gmra.mxu3 %vm429_vm1, %v452_v42  ;;  %v3911_v58 = vor.u32 %v4702_v56, %v3908_v57 }
 0x25d   :  { %1630 = vmatpush.bf16.msra.mxu1 %v3907_v55 }
 0x25e   :  { %1658 = vmatpush.bf16.msra.mxu3 %v3911_v58 }
 0x25f   :  { %701 = vmatpush.bf16.msrb.mxu0 %v3299_v5  ;;  %v3586_v5 = vld [vmem:[#allocation6 + $0x140] sm:$0xf] }
 0x260   :  { %v3587_v11 = vor.u32 %v4626_v6, %v3586_v5  ;;  %v4662_v5 = vld [vmem:[#allocation6 + $0x284] sm:$0xf] }
 0x261   :  { %1631 = vmatpush.bf16.msra.mxu1 %v3875_v62  ;;  %v4602_v62 = vld [vmem:[#allocation6 + $0x9c] sm:$0xf0]  ;;  %v3748_v6 = vld [vmem:[#allocation6 + $0x2a0] sm:$0xf0] }
 0x262   :  { %1659 = vmatpush.bf16.msra.mxu3 %v3879_v7  ;;  %v3751_v7 = vor.u32 %v4662_v5, %v3748_v6  ;;  %v4687_v6 = vld [vmem:[#allocation6 + $0x34c] sm:$0xf] }
 0x263   :  { %1616 = vmatpush.bf16.msra.mxu0 %v3651_v53 }
 0x2df   :  { %v475_v14 = vpop.f32.mrf.mxu2  ;;  %v489_v15 = vpop.f32.mrf.mxu3 }
 0x2e7   :  { %v477_v16 = vpop.f32.mrf.mxu2  ;;  %v491_v17 = vpop.f32.mrf.mxu3 }
 0x2e8   :  { %v494_v19 = vpack.c.bf16 %v477_v16, %v475_v14  ;;  %v495_v20 = vpack.c.bf16 %v491_v17, %v489_v15  ;;  %v3844_v14 = vld [vmem:[#allocation6 + $0x360] sm:$0xf0]  ;;  %v3843_v15 = vor.u32 %v4690_v9, %v3842_v8  ;;  %v3591_v16 = vor.u32 %v4622_v10, %v3588_v12  ;;  %v3554_v17 = vld [vmem:[#allocation6 + $0x100] sm:$0xf] }
 0x2e9   :  { %v3847_v22 = vor.u32 %v4686_v13, %v3844_v14  ;;  %v3458_v8 = vld [vmem:[#allocation6 + $0x40] sm:$0xf]  ;;  %v4590_v13 = vld [vmem:[#allocation6 + $0x44] sm:$0xf] }
 0x2ea   :  { %702 = vmatmul.bf16.vlgmr.msrb.gmra.mxu0 %v494_v19  ;;  %716 = vmatmul.bf16.vlgmr.msrb.gmra.mxu1 %v495_v20  ;;  %v4594_v9 = vld [vmem:[#allocation6 + $0x5c] sm:$0xf0]  ;;  %v3460_v14 = vld [vmem:[#allocation6 + $0x60] sm:$0xf0] }
 0x2eb   :  { %730 = vmatmul.bf16.vlgmr.msrb.gmra.mxu2 %v494_v19  ;;  %744 = vmatmul.bf16.vlgmr.msrb.gmra.mxu3 %v495_v20  ;;  %v4618_v19 = vld [vmem:[#allocation6 + $0x11c] sm:$0xf0] }
 0x2ec   :  { %v3810_v20 = vld [vmem:[#allocation6 + $0x300] sm:$0xf]  ;;  %1632 = vmatpush.bf16.msra.mxu1 %v3843_v15  ;;  %1660 = vmatpush.bf16.msra.mxu3 %v3847_v22 }
 0x2ed   :  { %v3714_v10 = vld [vmem:[#allocation6 + $0x240] sm:$0xf] }
 0x2ee   :  { %v4658_v12 = vld [vmem:[#allocation6 + $0x25c] sm:$0xf0] }
 0x2ef   :  { %v3715_v15 = vor.u32 %v4658_v12, %v3714_v10  ;;  %v3426_v22 = vld [vmem:[#allocation6] sm:$0xf]  ;;  %v4619_v10 = vld [vmem:[#allocation6 + $0x124] sm:$0xf0] }
 0x367   :  { %v703_v24 = vpop.f32.mrf.mxu0  ;;  %v717_v27 = vpop.f32.mrf.mxu1 }
 0x368   :  { %v704_v25 = vadd.f32 %v703_v24, %v530_v23  ;;  %v4614_v24 = vld [vmem:[#allocation6 + $0x104] sm:$0xf] }
 0x36a   :  { %v718_v32 = vadd.f32 %v717_v27, %v704_v25  ;;  %v3556_v25 = vld [vmem:[#allocation6 + $0x120] sm:$0xf0] }
 0x36b   :  { %v3812_v27 = vld [vmem:[#allocation6 + $0x320] sm:$0xf0] }
 0x36c   :  { %v5166_v39 = vadd.f32 %v718_v32, %v5097_v29 }
 0x36e   :  { %v731_v28 = vpop.f32.mrf.mxu2  ;;  %v745_v31 = vpop.f32.mrf.mxu3 }
 0x36f   :  { %v732_v35 = vadd.f32 %v731_v28, %v531_v26  ;;  %v705_v36 = vpop.f32.mrf.mxu0  ;;  %v719_v42 = vpop.f32.mrf.mxu1  ;;  %v3555_v28 = vor.u32 %v4618_v19, %v3554_v17  ;;  %v4654_v17 = vld [vmem:[#allocation6 + $0x244] sm:$0xf] }
 0x370   :  { %v706_v38 = vadd.f32 %v705_v36, %v530_v23  ;;  %v4682_v23 = vld [vmem:[#allocation6 + $0x31c] sm:$0xf0]  ;;  %v3716_v19 = vld [vmem:[#allocation6 + $0x260] sm:$0xf0] }
 0x371   :  { %v746_v37 = vadd.f32 %v745_v31, %v732_v35  ;;  %v3522_v31 = vld [vmem:[#allocation6 + $0xc0] sm:$0xf]  ;;  %v3811_v32 = vor.u32 %v4682_v23, %v3810_v20  ;;  %v3559_v35 = vor.u32 %v4614_v24, %v3556_v25  ;;  %v3719_v20 = vor.u32 %v4654_v17, %v3716_v19  ;;  %v4679_v19 = vld [vmem:[#allocation6 + $0x30c] sm:$0xf] }
 0x372   :  { %v720_v44 = vadd.f32 %v719_v42, %v706_v38  ;;  %v4610_v36 = vld [vmem:[#allocation6 + $0xdc] sm:$0xf0] }
 0x373   :  { %v5169_v40 = vadd.f32 %v746_v37, %v5107_v33  ;;  %v5182_v33 = vadd.s32 128, %v5133_v2  ;;  %v3778_v37 = vld [vmem:[#allocation6 + $0x2c0] sm:$0xf]  ;;  %v3523_v51 = vor.u32 %v4610_v36, %v3522_v31  ;;  %1633 = vmatpush.bf16.msra.mxu1 %v3811_v32  ;;  %v3684_v36 = vld [vmem:[#allocation6 + $0x220] sm:$0xf0] }
 0x374   :  { %v5174_v48 = vadd.f32 %v720_v44, %v5102_v30  ;;  %v3655_v30 = vor.u32 %v4638_v18, %v3652_v21  ;;  %v4674_v38 = vld [vmem:[#allocation6 + $0x2dc] sm:$0xf0]  ;;  %v3524_v44 = vld [vmem:[#allocation6 + $0xe0] sm:$0xf0] }
 0x375   :  { %v756_v41 = vadd.f32 %v5169_v40, %v5166_v39  ;;  %vm115_vm2 = vcmp.lt.s32.totalorder %v5182_v33, 200  ;;  %v3779_v52 = vor.u32 %v4674_v38, %v3778_v37  ;;  %v4586_v23 = vld [vmem:[#allocation6 + $0x1c] sm:$0xf0]  ;;  %v3658_v37 = vld [vmem:[#allocation6 + $0x1c8] sm:$0xf] }
 0x376   :  { %v733_v43 = vpop.f32.mrf.mxu2  ;;  %v747_v46 = vpop.f32.mrf.mxu3  ;;  %1644 = vmatpush.bf16.msra.mxu2 %v3655_v30  ;;  %v3682_v24 = vld [vmem:[#allocation6 + $0x200] sm:$0xf]  ;;  %v3427_v25 = vor.u32 %v4586_v23, %v3426_v22  ;;  %v3530_v23 = vld [vmem:[#allocation6 + $0xc8] sm:$0xf] }
 0x377   :  { %v734_v45 = vadd.f32 %v733_v43, %v531_v26  ;;  %757 = vadd.xlane.f32.xlu2 %v756_v41  ;;  %v4678_v26 = vld [vmem:[#allocation6 + $0x304] sm:$0xf]  ;;  %1634 = vmatpush.bf16.msra.mxu1 %v3779_v52  ;;  %v3916_v52 = vld [vmem:[#allocation6 + $0x3e8] sm:$0xf0] }
 0x378   :  { %v3815_v42 = vor.u32 %v4678_v26, %v3812_v27  ;;  %v4606_v43 = vld [vmem:[#allocation6 + $0xc4] sm:$0xf]  ;;  %v4650_v26 = vld [vmem:[#allocation6 + $0x21c] sm:$0xf0] }
 0x379   :  { %v748_v47 = vadd.f32 %v747_v46, %v734_v45  ;;  %v4670_v46 = vld [vmem:[#allocation6 + $0x2c4] sm:$0xf]  ;;  %v3527_v18 = vor.u32 %v4606_v43, %v3524_v44  ;;  %v3683_v31 = vor.u32 %v4650_v26, %v3682_v24  ;;  %v4707_v43 = vld [vmem:[#allocation6 + $0x3e4] sm:$0xf0] }
 0x37a   :  { %1645 = vmatpush.bf16.msra.mxu2 %v3623_v3  ;;  %1661 = vmatpush.bf16.msra.mxu3 %v3815_v42  ;;  %v3492_v3 = vld [vmem:[#allocation6 + $0xa0] sm:$0xf0]  ;;  %v3914_v42 = vld [vmem:[#allocation6 + $0x3c8] sm:$0xf] }
 0x37b   :  { %v5177_v49 = vadd.f32 %v748_v47, %v5112_v34  ;;  %v3618_v34 = vld [vmem:[#allocation6 + $0x180] sm:$0xf]  ;;  %v3780_v47 = vld [vmem:[#allocation6 + $0x2e0] sm:$0xf0]  ;;  %v3495_v4 = vor.u32 %v4598_v1, %v3492_v3  ;;  %v4691_v1 = vld [vmem:[#allocation6 + $0x364] sm:$0xf0] }
 0x37c   :  { %v3619_v2 = vor.u32 %v4634_v59, %v3618_v34  ;;  %v3783_v21 = vor.u32 %v4670_v46, %v3780_v47  ;;  %v4582_v27 = vld [vmem:[#allocation6 + $0x4] sm:$0xf]  ;;  %v4639_v46 = vld [vmem:[#allocation6 + $0x1cc] sm:$0xf]  ;;  %v4611_v24 = vld [vmem:[#allocation6 + $0xe4] sm:$0xf0] }
 0x37d   :  { %v759_v29 = vadd.f32 %v5177_v49, %v5174_v48  ;;  %v3660_v47 = vld [vmem:[#allocation6 + $0x1e8] sm:$0xf0]  ;;  %v3531_v26 = vor.u32 %v4611_v24, %v3530_v23 }
 0x37e   :  { %1617 = vmatpush.bf16.msra.mxu0 %v3619_v2  ;;  %1646 = vmatpush.bf16.msra.mxu2 %v3591_v16  ;;  %v3490_v2 = vld [vmem:[#allocation6 + $0x80] sm:$0xf]  ;;  %v3463_v16 = vor.u32 %v4590_v13, %v3460_v14  ;;  %v4623_v3 = vld [vmem:[#allocation6 + $0x14c] sm:$0xf]  ;;  %v4683_v13 = vld [vmem:[#allocation6 + $0x324] sm:$0xf0] }
 0x37f   :  { %760 = vadd.xlane.f32.xlu2 %v759_v29  ;;  %v5028_v29 = vmov 0.0   ;;  %1662 = vmatpush.bf16.msra.mxu3 %v3783_v21  ;;  %v3491_v0 = vor.u32 %v4602_v62, %v3490_v2  ;;  %v3594_v62 = vld [vmem:[#allocation6 + $0x148] sm:$0xf]  ;;  %v4615_v14 = vld [vmem:[#allocation6 + $0x10c] sm:$0xf] }
 0x380   :  { %v5187_v50 = vsel %vm115_vm2, 1.0, %v5028_v29  ;;  %v4703_v29 = vld [vmem:[#allocation6 + $0x3cc] sm:$0xf] }
 0x381   :  { %v3919_v21 = vor.u32 %v4703_v29, %v3916_v52  ;;  %v4663_v52 = vld [vmem:[#allocation6 + $0x28c] sm:$0xf] }
 0x382   :  { %1618 = vmatpush.bf16.msra.mxu0 %v3587_v11  ;;  %1647 = vmatpush.bf16.msra.mxu2 %v3559_v35  ;;  %v3459_v11 = vor.u32 %v4594_v9, %v3458_v8  ;;  %v4646_v35 = vld [vmem:[#allocation6 + $0x204] sm:$0xf]  ;;  %v3562_v9 = vld [vmem:[#allocation6 + $0x108] sm:$0xf] }
 0x383   :  { %1663 = vmatpush.bf16.msra.mxu3 %v3751_v7  ;;  %v3687_v38 = vor.u32 %v4646_v35, %v3684_v36  ;;  %v3852_v7 = vld [vmem:[#allocation6 + $0x368] sm:$0xf0]  ;;  %v3563_v12 = vor.u32 %v4619_v10, %v3562_v9 }
 0x384   :  { %v3855_v8 = vor.u32 %v4687_v6, %v3852_v7  ;;  %v4671_v36 = vld [vmem:[#allocation6 + $0x2cc] sm:$0xf] }
 0x385   :  { %v4583_v6 = vld [vmem:[#allocation6 + $0xc] sm:$0xf] }
 0x386   :  { %1619 = vmatpush.bf16.msra.mxu0 %v3555_v28  ;;  %1648 = vmatpush.bf16.msra.mxu2 %v3527_v18  ;;  %v3428_v28 = vld [vmem:[#allocation6 + $0x20] sm:$0xf0]  ;;  %v4635_v18 = vld [vmem:[#allocation6 + $0x1a4] sm:$0xf0]  ;;  %v4647_v9 = vld [vmem:[#allocation6 + $0x20c] sm:$0xf] }
 0x387   :  { %1664 = vmatpush.bf16.msra.mxu3 %v3719_v20  ;;  %v3431_v32 = vor.u32 %v4582_v27, %v3428_v28  ;;  %v3820_v20 = vld [vmem:[#allocation6 + $0x328] sm:$0xf0]  ;;  %v4675_v27 = vld [vmem:[#allocation6 + $0x2e4] sm:$0xf0] }
 0x388   :  { %v3823_v22 = vor.u32 %v4679_v19, %v3820_v20  ;;  %v4607_v28 = vld [vmem:[#allocation6 + $0xcc] sm:$0xf] }
 0x389   :  { %v3692_v10 = vld [vmem:[#allocation6 + $0x228] sm:$0xf0] }
 0x38a   :  { %1620 = vmatpush.bf16.msra.mxu0 %v3523_v51  ;;  %1649 = vmatpush.bf16.msra.mxu2 %v3495_v4  ;;  %v3663_v51 = vor.u32 %v4639_v46, %v3660_v47  ;;  %v4599_v46 = vld [vmem:[#allocation6 + $0x8c] sm:$0xf] }
 0x38b   :  { %1665 = vmatpush.bf16.msra.mxu3 %v3687_v38  ;;  %v3500_v47 = vld [vmem:[#allocation6 + $0xa8] sm:$0xf0] }
 0x38e   :  { %1621 = vmatpush.bf16.msra.mxu0 %v3491_v0  ;;  %1650 = vmatpush.bf16.msra.mxu2 %v3463_v16  ;;  %v3850_v0 = vld [vmem:[#allocation6 + $0x348] sm:$0xf] }
 0x38f   :  { %1714 = vmatpush.bf16.msrb.mxu3 %v3919_v21  ;;  %v3851_v4 = vor.u32 %v4691_v1, %v3850_v0  ;;  %v3466_v21 = vld [vmem:[#allocation6 + $0x48] sm:$0xf] }
 0x390   :  { %v3434_v1 = vld [vmem:[#allocation6 + $0x8] sm:$0xf] }
 0x392   :  { %1622 = vmatpush.bf16.msra.mxu0 %v3459_v11  ;;  %1651 = vmatpush.bf16.msra.mxu2 %v3431_v32  ;;  %v3818_v11 = vld [vmem:[#allocation6 + $0x308] sm:$0xf] }
 0x393   :  { %v3819_v16 = vor.u32 %v4683_v13, %v3818_v11 }
 0x396   :  { %1623 = vmatpush.bf16.msra.mxu0 %v3427_v25  ;;  %1700 = vmatpush.bf16.msrb.mxu2 %v3663_v51  ;;  %v3786_v25 = vld [vmem:[#allocation6 + $0x2c8] sm:$0xf]  ;;  %v3503_v51 = vor.u32 %v4599_v46, %v3500_v47 }
 0x397   :  { %v3787_v32 = vor.u32 %v4675_v27, %v3786_v25  ;;  %v754_v27 = vld [vmem:[%s5346_s8 + $0x4] sm:$0x3] }
 0x3ea   :  { %v758_v41 = vpop.xlane.xlu2 %757 }
 0x3eb   :  { %v762_v45 = vmul.f32 0.005, %v758_v41  ;;  %v4643_v41 = vld [vmem:[#allocation6 + $0x1e4] sm:$0xf0] }
 0x3ec   :  { %v3659_v44 = vor.u32 %v4643_v41, %v3658_v37  ;;  %v3788_v37 = vld [vmem:[#allocation6 + $0x2e8] sm:$0xf0]  ;;  %v3498_v41 = vld [vmem:[#allocation6 + $0x88] sm:$0xf] }
 0x3ed   :  { %v5190_v53 = vsub.f32 %v5166_v39, %v762_v45  ;;  %v765_v54 = vsub.f32 %v5169_v40, %v762_v45  ;;  %v3915_v45 = vor.u32 %v4707_v43, %v3914_v42  ;;  %v3791_v38 = vor.u32 %v4671_v36, %v3788_v37  ;;  %v4603_v42 = vld [vmem:[#allocation6 + $0xa4] sm:$0xf0] }
 0x3ee   :  { %1672 = vmatpush.bf16.msrb.mxu0 %v3659_v44  ;;  %v3754_v43 = vld [vmem:[#allocation6 + $0x288] sm:$0xf]  ;;  %v3499_v44 = vor.u32 %v4603_v42, %v3498_v41  ;;  %v811_v36 = vperm.slane %v754_v27, 0  ;;  %v812_v37 = vperm.slane %v754_v27, 1  ;;  %v3826_v27 = vld [vmem:[#allocation6 + $0x310] sm:$0xf] }
 0x3ef   :  { %v5194_v55 = vmul.f32 %v5187_v50, %v765_v54  ;;  %v772_v33 = vmul.f32 %v5190_v53, %v5190_v53  ;;  %v3626_v54 = vld [vmem:[#allocation6 + $0x188] sm:$0xf] }
 0x3f1   :  { %v773_v30 = vmul.f32 %v5194_v55, %v5194_v55 }
 0x3f2   :  { %v761_v39 = vpop.xlane.xlu2 %760 }
 0x3f3   :  { %v763_v40 = vmul.f32 0.005, %v761_v39  ;;  %v776_v56 = vadd.f32 %v773_v30, %v772_v33  ;;  %v3627_v33 = vor.u32 %v4635_v18, %v3626_v54  ;;  %v3882_v30 = vld [vmem:[#allocation6 + $0x388] sm:$0xf]  ;;  %v3756_v54 = vld [vmem:[#allocation6 + $0x2a8] sm:$0xf0] }
 0x3f4   :  { %v4699_v39 = vld [vmem:[#allocation6 + $0x3a4] sm:$0xf0]  ;;  %v3759_v18 = vor.u32 %v4663_v52, %v3756_v54 }
 0x3f5   :  { %v5201_v57 = vsub.f32 %v5174_v48, %v763_v40  ;;  %v767_v34 = vsub.f32 %v5177_v49, %v763_v40  ;;  %777 = vadd.xlane.f32.xlu0 %v776_v56  ;;  %v4666_v48 = vld [vmem:[#allocation6 + $0x29c] sm:$0xf0]  ;;  %v4631_v40 = vld [vmem:[#allocation6 + $0x18c] sm:$0xf]  ;;  %v3883_v56 = vor.u32 %v4699_v39, %v3882_v30  ;;  %1673 = vmatpush.bf16.msrb.mxu0 %v3627_v33  ;;  %v4595_v33 = vld [vmem:[#allocation6 + $0x64] sm:$0xf0] }
 0x3f6   :  { %v3747_v49 = vor.u32 %v4666_v48, %v3746_v63  ;;  %v4627_v63 = vld [vmem:[#allocation6 + $0x164] sm:$0xf0] }
 0x3f7   :  { %v5205_v58 = vmul.f32 %v5187_v50, %v767_v34  ;;  %v774_v59 = vmul.f32 %v5201_v57, %v5201_v57  ;;  %v3628_v34 = vld [vmem:[#allocation6 + $0x1a8] sm:$0xf0]  ;;  %v3595_v48 = vor.u32 %v4627_v63, %v3594_v62  ;;  %v3722_v30 = vld [vmem:[#allocation6 + $0x248] sm:$0xf] }
 0x3f8   :  { %1635 = vmatpush.bf16.msra.mxu1 %v3747_v49  ;;  %v3596_v49 = vld [vmem:[#allocation6 + $0x168] sm:$0xf0] }
 0x3f9   :  { %v775_v60 = vmul.f32 %v5205_v58, %v5205_v58  ;;  %v3599_v5 = vor.u32 %v4623_v3, %v3596_v49  ;;  %1674 = vmatpush.bf16.msrb.mxu0 %v3595_v48  ;;  %v4655_v62 = vld [vmem:[#allocation6 + $0x24c] sm:$0xf]  ;;  %v4587_v3 = vld [vmem:[#allocation6 + $0x24] sm:$0xf0] }
 0x3fa   :  { %v3724_v63 = vld [vmem:[#allocation6 + $0x268] sm:$0xf0]  ;;  %v3435_v49 = vor.u32 %v4587_v3, %v3434_v1  ;;  %v3890_v1 = vld [vmem:[#allocation6 + $0x390] sm:$0xf] }
 0x3fb   :  { %v779_v61 = vadd.f32 %v775_v60, %v774_v59  ;;  %v4695_v59 = vld [vmem:[#allocation6 + $0x38c] sm:$0xf]  ;;  %v3727_v0 = vor.u32 %v4655_v62, %v3724_v63  ;;  %v3634_v62 = vld [vmem:[#allocation6 + $0x190] sm:$0xf] }
 0x3fc   :  { %1636 = vmatpush.bf16.msra.mxu1 %v3715_v15  ;;  %v3884_v60 = vld [vmem:[#allocation6 + $0x3a8] sm:$0xf0]  ;;  %v4636_v63 = vld [vmem:[#allocation6 + $0x1ac] sm:$0xf0] }
 0x3fd   :  { %780 = vadd.xlane.f32.xlu1 %v779_v61  ;;  %v3631_v61 = vor.u32 %v4631_v40, %v3628_v34  ;;  %v3887_v2 = vor.u32 %v4695_v59, %v3884_v60  ;;  %v3564_v15 = vld [vmem:[#allocation6 + $0x128] sm:$0xf0]  ;;  %1675 = vmatpush.bf16.msrb.mxu0 %v3563_v12  ;;  %v3467_v40 = vor.u32 %v4595_v33, %v3466_v21  ;;  %v4644_v21 = vld [vmem:[#allocation6 + $0x1ec] sm:$0xf0] }
 0x3fe   :  { %v3567_v17 = vor.u32 %v4615_v14, %v3564_v15  ;;  %v4591_v34 = vld [vmem:[#allocation6 + $0x4c] sm:$0xf]  ;;  %v3695_v12 = vor.u32 %v4647_v9, %v3692_v10  ;;  %v3922_v33 = vld [vmem:[#allocation6 + $0x3d0] sm:$0xf] }
 0x3ff   :  { %1701 = vmatpush.bf16.msrb.mxu2 %v3631_v61  ;;  %1715 = vmatpush.bf16.msrb.mxu3 %v3887_v2  ;;  %v3468_v59 = vld [vmem:[#allocation6 + $0x68] sm:$0xf0]  ;;  %v4700_v3 = vld [vmem:[#allocation6 + $0x3ac] sm:$0xf0] }
 0x400   :  { %1637 = vmatpush.bf16.msra.mxu1 %v3683_v31  ;;  %v3532_v31 = vld [vmem:[#allocation6 + $0xe8] sm:$0xf0]  ;;  %v3471_v2 = vor.u32 %v4591_v34, %v3468_v59  ;;  %v3668_v34 = vld [vmem:[#allocation6 + $0x1f0] sm:$0xf0]  ;;  %v3602_v9 = vld [vmem:[#allocation6 + $0x150] sm:$0xf] }
 0x401   :  { %v3535_v35 = vor.u32 %v4607_v28, %v3532_v31  ;;  %1676 = vmatpush.bf16.msrb.mxu0 %v3531_v26  ;;  %v4704_v59 = vld [vmem:[#allocation6 + $0x3d4] sm:$0xf]  ;;  %v4628_v10 = vld [vmem:[#allocation6 + $0x16c] sm:$0xf0] }
 0x403   :  { %1702 = vmatpush.bf16.msrb.mxu2 %v3599_v5  ;;  %1716 = vmatpush.bf16.msrb.mxu3 %v3855_v8  ;;  %v4651_v5 = vld [vmem:[#allocation6 + $0x224] sm:$0xf0]  ;;  %v3436_v8 = vld [vmem:[#allocation6 + $0x28] sm:$0xf0] }
 0x404   :  { %1686 = vmatpush.bf16.msrb.mxu1 %v3915_v45  ;;  %v4667_v45 = vld [vmem:[#allocation6 + $0x2a4] sm:$0xf0]  ;;  %v3439_v11 = vor.u32 %v4583_v6, %v3436_v8  ;;  %v3892_v6 = vld [vmem:[#allocation6 + $0x3b0] sm:$0xf0]  ;;  %v3891_v8 = vor.u32 %v4700_v3, %v3890_v1  ;;  %v4596_v1 = vld [vmem:[#allocation6 + $0x6c] sm:$0xf0] }
 0x405   :  { %v3755_v29 = vor.u32 %v4667_v45, %v3754_v43  ;;  %1677 = vmatpush.bf16.msrb.mxu0 %v3499_v44 }
 0x407   :  { %1703 = vmatpush.bf16.msrb.mxu2 %v3567_v17  ;;  %1717 = vmatpush.bf16.msrb.mxu3 %v3823_v22 }
 0x408   :  { %1687 = vmatpush.bf16.msrb.mxu1 %v3883_v56  ;;  %v4659_v56 = vld [vmem:[#allocation6 + $0x264] sm:$0xf0] }
 0x409   :  { %v3723_v61 = vor.u32 %v4659_v56, %v3722_v30  ;;  %1678 = vmatpush.bf16.msrb.mxu0 %v3467_v40  ;;  %v4640_v30 = vld [vmem:[#allocation6 + $0x1d4] sm:$0xf] }
 0x40b   :  { %1704 = vmatpush.bf16.msrb.mxu2 %v3535_v35  ;;  %1718 = vmatpush.bf16.msrb.mxu3 %v3791_v38  ;;  %v755_v35 = vld [vmem:[%s5346_s8 + $0x6] sm:$0x3] }
 0x40c   :  { %1688 = vmatpush.bf16.msrb.mxu1 %v3851_v4  ;;  %v3690_v4 = vld [vmem:[#allocation6 + $0x208] sm:$0xf]  ;;  %v820_v43 = vperm.slane %v755_v35, 0  ;;  %v821_v44 = vperm.slane %v755_v35, 1  ;;  %v4680_v35 = vld [vmem:[#allocation6 + $0x314] sm:$0xf] }
 0x40d   :  { %v3691_v7 = vor.u32 %v4651_v5, %v3690_v4  ;;  %1679 = vmatpush.bf16.msrb.mxu0 %v3435_v49  ;;  %v4632_v49 = vld [vmem:[#allocation6 + $0x194] sm:$0xf] }
 0x40e   :  { %v3636_v4 = vld [vmem:[#allocation6 + $0x1b0] sm:$0xf0] }
 0x40f   :  { %1705 = vmatpush.bf16.msrb.mxu2 %v3503_v51  ;;  %1719 = vmatpush.bf16.msrb.mxu3 %v3759_v18  ;;  %v3666_v18 = vld [vmem:[#allocation6 + $0x1d0] sm:$0xf]  ;;  %v4696_v5 = vld [vmem:[#allocation6 + $0x394] sm:$0xf] }
 0x410   :  { %1689 = vmatpush.bf16.msrb.mxu1 %v3819_v16 }
 0x413   :  { %1706 = vmatpush.bf16.msrb.mxu2 %v3471_v2  ;;  %1720 = vmatpush.bf16.msrb.mxu3 %v3727_v0  ;;  %v3671_v0 = vor.u32 %v4640_v30, %v3668_v34  ;;  %v3762_v34 = vld [vmem:[#allocation6 + $0x290] sm:$0xf] }
 0x414   :  { %1690 = vmatpush.bf16.msrb.mxu1 %v3787_v32 }
 0x417   :  { %1707 = vmatpush.bf16.msrb.mxu2 %v3439_v11  ;;  %1721 = vmatpush.bf16.msrb.mxu3 %v3695_v12  ;;  %v3639_v11 = vor.u32 %v4632_v49, %v3636_v4  ;;  %v3895_v12 = vor.u32 %v4696_v5, %v3892_v6  ;;  %v3730_v4 = vld [vmem:[#allocation6 + $0x250] sm:$0xf]  ;;  %v4592_v6 = vld [vmem:[#allocation6 + $0x54] sm:$0xf] }
 0x418   :  { %1691 = vmatpush.bf16.msrb.mxu1 %v3755_v29  ;;  %v4660_v5 = vld [vmem:[#allocation6 + $0x26c] sm:$0xf0] }
 0x41c   :  { %1692 = vmatpush.bf16.msrb.mxu1 %v3723_v61  ;;  %v3667_v61 = vor.u32 %v4644_v21, %v3666_v18  ;;  %v3506_v21 = vld [vmem:[#allocation6 + $0x90] sm:$0xf] }
 0x420   :  { %1693 = vmatpush.bf16.msrb.mxu1 %v3691_v7  ;;  %v3635_v7 = vor.u32 %v4636_v63, %v3634_v62  ;;  %v3764_v62 = vld [vmem:[#allocation6 + $0x2b0] sm:$0xf0] }
 0x468   :  { %v778_v39 = vpop.xlane.xlu0 %777 }
 0x469   :  { %v782_v60 = vmul.f32 0.005, %v778_v39 }
 0x46b   :  { %v784_v48 = vadd.f32 1e-05, %v782_v60 }
 0x46d   :  { %4875 = vrsqrt.f32 %v784_v48  ;;  %vm792_vm4 = vweird.f32 %v784_v48 }
 0x470   :  { %v781_v13 = vpop.xlane.xlu1 %780 }
 0x471   :  { %v783_v14 = vmul.f32 0.005, %v781_v13  ;;  %v3858_v13 = vld [vmem:[#allocation6 + $0x350] sm:$0xf] }
 0x473   :  { %v4876_v15 = vpop.eup %4875  ;;  %v785_v16 = vadd.f32 1e-05, %v783_v14  ;;  %v4692_v14 = vld [vmem:[#allocation6 + $0x36c] sm:$0xf0] }
 0x474   :  { %v787_v17 = vmul.f32 %v4876_v15, %v784_v48  ;;  %vm793_vm3 = vweird.f32 %v4876_v15 }
 0x475   :  { %4877 = vrsqrt.f32 %v785_v16  ;;  %vm794_vm5 = vmor %vm792_vm4, %vm793_vm3  ;;  %vm802_vm7 = vweird.f32 %v785_v16 }
 0x476   :  { %v788_v19 = vmul.f32 %v4876_v15, %v787_v17  ;;  %v4688_v17 = vld [vmem:[#allocation6 + $0x354] sm:$0xf] }
 0x478   :  { %v789_v20 = vmul.f32 0.5, %v788_v19  ;;  %v3860_v19 = vld [vmem:[#allocation6 + $0x370] sm:$0xf0] }
 0x47a   :  { %v790_v22 = vsub.f32 1.5, %v789_v20  ;;  %v3603_v20 = vor.u32 %v4628_v10, %v3602_v9  ;;  %v3732_v9 = vld [vmem:[#allocation6 + $0x270] sm:$0xf0]  ;;  %v3442_v10 = vld [vmem:[#allocation6 + $0x10] sm:$0xf] }
 0x47b   :  { %v4878_v23 = vpop.eup %4877 }
 0x47c   :  { %v791_v24 = vmul.f32 %v4876_v15, %v790_v22  ;;  %v797_v25 = vmul.f32 %v4878_v23, %v785_v16  ;;  %vm803_vm6 = vweird.f32 %v4878_v23  ;;  %v3604_v16 = vld [vmem:[#allocation6 + $0x170] sm:$0xf0]  ;;  %v3859_v22 = vor.u32 %v4692_v14, %v3858_v13  ;;  %v4588_v13 = vld [vmem:[#allocation6 + $0x2c] sm:$0xf0] }
 0x47d   :  { %vm804_vm8 = vmor %vm802_vm7, %vm803_vm6  ;;  %v3698_v14 = vld [vmem:[#allocation6 + $0x210] sm:$0xf] }
 0x47e   :  { %v798_v26 = vmul.f32 %v4878_v23, %v797_v25  ;;  %v795_v28 = vsel %vm794_vm5, %v4876_v15, %v791_v24  ;;  %v4624_v15 = vld [vmem:[#allocation6 + $0x154] sm:$0xf]  ;;  %v4620_v24 = vld [vmem:[#allocation6 + $0x12c] sm:$0xf0] }
 0x47f   :  { %v806_v38 = vmul.f32 %v795_v28, %v5190_v53  ;;  %v807_v41 = vmul.f32 %v795_v28, %v5194_v55  ;;  %v4708_v53 = vld [vmem:[#allocation6 + $0x3ec] sm:$0xf0]  ;;  %v3607_v25 = vor.u32 %v4624_v15, %v3604_v16 }
 0x480   :  { %v799_v31 = vmul.f32 0.5, %v798_v26  ;;  %v3923_v2 = vor.u32 %v4708_v53, %v3922_v33  ;;  %v3863_v26 = vor.u32 %v4688_v17, %v3860_v19  ;;  %v4684_v28 = vld [vmem:[#allocation6 + $0x32c] sm:$0xf0]  ;;  %v4584_v19 = vld [vmem:[#allocation6 + $0x14] sm:$0xf] }
 0x481   :  { %v815_v46 = vmul.f32 %v811_v36, %v806_v38  ;;  %v816_v47 = vmul.f32 %v812_v37, %v807_v41  ;;  %v3827_v38 = vor.u32 %v4684_v28, %v3826_v27  ;;  %v3538_v41 = vld [vmem:[#allocation6 + $0xd0] sm:$0xf]  ;;  %v4709_v27 = vld [vmem:[#allocation6 + $0x3f4] sm:$0xf0]  ;;  %v4641_v28 = vld [vmem:[#allocation6 + $0x1dc] sm:$0xf] }
 0x482   :  { %v800_v32 = vsub.f32 1.5, %v799_v31  ;;  %v4616_v31 = vld [vmem:[#allocation6 + $0x114] sm:$0xf]  ;;  %v4604_v33 = vld [vmem:[#allocation6 + $0xac] sm:$0xf0] }
 0x483   :  { %v5221_v55 = vadd.f32 %v820_v43, %v815_v46  ;;  %v5223_v39 = vadd.f32 %v821_v44, %v816_v47  ;;  %v4676_v46 = vld [vmem:[#allocation6 + $0x2ec] sm:$0xf0]  ;;  %v4608_v47 = vld [vmem:[#allocation6 + $0xd4] sm:$0xf]  ;;  %v3507_v63 = vor.u32 %v4604_v33, %v3506_v21  ;;  %v3900_v21 = vld [vmem:[#allocation6 + $0x3b8] sm:$0xf0] }
 0x484   :  { %v801_v42 = vmul.f32 %v4878_v23, %v800_v32  ;;  %v3572_v32 = vld [vmem:[#allocation6 + $0x130] sm:$0xf0]  ;;  %v4652_v15 = vld [vmem:[#allocation6 + $0x22c] sm:$0xf0] }
 0x486   :  { %v805_v45 = vsel %vm804_vm8, %v4878_v23, %v801_v42  ;;  %v3570_v23 = vld [vmem:[#allocation6 + $0x110] sm:$0xf] }
 0x487   :  { %v808_v29 = vmul.f32 %v805_v45, %v5201_v57  ;;  %v809_v51 = vmul.f32 %v805_v45, %v5205_v58  ;;  %v3924_v57 = vld [vmem:[#allocation6 + $0x3f0] sm:$0xf0]  ;;  %v4612_v42 = vld [vmem:[#allocation6 + $0xec] sm:$0xf0] }
 0x488   :  { %v3927_v48 = vor.u32 %v4704_v59, %v3924_v57  ;;  %v3794_v45 = vld [vmem:[#allocation6 + $0x2d0] sm:$0xf]  ;;  %v4600_v57 = vld [vmem:[#allocation6 + $0x94] sm:$0xf] }
 0x489   :  { %v817_v52 = vmul.f32 %v811_v36, %v808_v29  ;;  %v818_v54 = vmul.f32 %v812_v37, %v809_v51  ;;  %v3828_v36 = vld [vmem:[#allocation6 + $0x330] sm:$0xf0]  ;;  %v3571_v37 = vor.u32 %v4620_v24, %v3570_v23  ;;  %v3795_v18 = vor.u32 %v4676_v46, %v3794_v45  ;;  %v4668_v59 = vld [vmem:[#allocation6 + $0x2ac] sm:$0xf0]  ;;  %v3674_v24 = vld [vmem:[#allocation6 + $0x1d8] sm:$0xf] }
 0x48a   :  { %v3540_v29 = vld [vmem:[#allocation6 + $0xf0] sm:$0xf0]  ;;  %v4637_v45 = vld [vmem:[#allocation6 + $0x1b4] sm:$0xf0] }
 0x48b   :  { %v5225_v40 = vadd.f32 %v820_v43, %v817_v52  ;;  %v5227_v56 = vadd.f32 %v821_v44, %v818_v54  ;;  %v3575_v43 = vor.u32 %v4616_v31, %v3572_v32  ;;  %v3831_v44 = vor.u32 %v4680_v35, %v3828_v36  ;;  %v4672_v51 = vld [vmem:[#allocation6 + $0x2d4] sm:$0xf]  ;;  %v3676_v35 = vld [vmem:[#allocation6 + $0x1f8] sm:$0xf0] }
 0x48c   :  { %v3796_v52 = vld [vmem:[#allocation6 + $0x2f0] sm:$0xf0]  ;;  %v3539_v54 = vor.u32 %v4612_v42, %v3538_v41  ;;  %v3543_v53 = vor.u32 %v4608_v47, %v3540_v29  ;;  %v3443_v31 = vor.u32 %v4588_v13, %v3442_v10  ;;  %v3699_v32 = vor.u32 %v4652_v15, %v3698_v14  ;;  %v4705_v36 = vld [vmem:[#allocation6 + $0x3dc] sm:$0xf]  ;;  %v3898_v29 = vld [vmem:[#allocation6 + $0x398] sm:$0xf] }
 0x48d   :  { %v5231_v58 = vpack.c.bf16 %v5225_v40, %v5221_v55  ;;  %v5235_v60 = vpack.c.bf16 %v5227_v56, %v5223_v39  ;;  %v3799_v30 = vor.u32 %v4672_v51, %v3796_v52  ;;  %v3700_v23 = vld [vmem:[#allocation6 + $0x230] sm:$0xf0]  ;;  %v3679_v46 = vor.u32 %v4641_v28, %v3676_v35  ;;  %v4701_v51 = vld [vmem:[#allocation6 + $0x3b4] sm:$0xf0]  ;;  %v4633_v52 = vld [vmem:[#allocation6 + $0x19c] sm:$0xf] }
 0x48e   :  { %v3580_v10 = vld [vmem:[#allocation6 + $0x138] sm:$0xf0]  ;;  %v3546_v15 = vld [vmem:[#allocation6 + $0xd8] sm:$0xf] }
 0x48f   :  { %1624 = vmatmul.bf16.vlgmr.msra.gmra.mxu0 %v5231_v58  ;;  %1638 = vmatmul.bf16.vlgmr.msra.gmra.mxu1 %v5235_v60 }
 0x490   :  { %1652 = vmatmul.bf16.vlgmr.msra.gmra.mxu2 %v5231_v58  ;;  %1666 = vmatmul.bf16.vlgmr.msra.gmra.mxu3 %v5235_v60 }
 0x491   :  { %1728 = vmatpush.bf16.msra.mxu0 %v3667_v61  ;;  %1742 = vmatpush.bf16.msra.mxu1 %v3923_v2  ;;  %v3508_v61 = vld [vmem:[#allocation6 + $0xb0] sm:$0xf0] }
 0x492   :  { %1756 = vmatpush.bf16.msra.mxu2 %v3671_v0  ;;  %1770 = vmatpush.bf16.msra.mxu3 %v3927_v48  ;;  %v4664_v2 = vld [vmem:[#allocation6 + $0x294] sm:$0xf]  ;;  %v3763_v0 = vor.u32 %v4668_v59, %v3762_v34  ;;  %v3474_v48 = vld [vmem:[#allocation6 + $0x50] sm:$0xf]  ;;  %v3511_v3 = vor.u32 %v4600_v57, %v3508_v61  ;;  %v4629_v34 = vld [vmem:[#allocation6 + $0x174] sm:$0xf0] }
 0x493   :  { %v3767_v49 = vor.u32 %v4664_v2, %v3764_v62  ;;  %v3866_v61 = vld [vmem:[#allocation6 + $0x358] sm:$0xf]  ;;  %v4625_v62 = vld [vmem:[#allocation6 + $0x15c] sm:$0xf] }
 0x494   :  { %v4693_v2 = vld [vmem:[#allocation6 + $0x374] sm:$0xf0] }
 0x495   :  { %1729 = vmatpush.bf16.msra.mxu0 %v3635_v7  ;;  %1743 = vmatpush.bf16.msra.mxu1 %v3891_v8  ;;  %v3476_v7 = vld [vmem:[#allocation6 + $0x70] sm:$0xf0] }
 0x496   :  { %1757 = vmatpush.bf16.msra.mxu2 %v3639_v11  ;;  %1771 = vmatpush.bf16.msra.mxu3 %v3895_v12  ;;  %v4656_v8 = vld [vmem:[#allocation6 + $0x254] sm:$0xf]  ;;  %v3475_v11 = vor.u32 %v4596_v1, %v3474_v48  ;;  %v3731_v12 = vor.u32 %v4660_v5, %v3730_v4  ;;  %v3479_v16 = vor.u32 %v4592_v6, %v3476_v7  ;;  %v3868_v48 = vld [vmem:[#allocation6 + $0x378] sm:$0xf0]  ;;  %v4621_v4 = vld [vmem:[#allocation6 + $0x134] sm:$0xf0] }
 0x497   :  { %v3735_v17 = vor.u32 %v4656_v8, %v3732_v9  ;;  %v3834_v7 = vld [vmem:[#allocation6 + $0x318] sm:$0xf]  ;;  %v4617_v9 = vld [vmem:[#allocation6 + $0x11c] sm:$0xf] }
 0x498   :  { %v4685_v8 = vld [vmem:[#allocation6 + $0x334] sm:$0xf0] }
 0x499   :  { %1730 = vmatpush.bf16.msra.mxu0 %v3603_v20  ;;  %1744 = vmatpush.bf16.msra.mxu1 %v3859_v22  ;;  %v3444_v20 = vld [vmem:[#allocation6 + $0x30] sm:$0xf0]  ;;  %v3835_v14 = vor.u32 %v4685_v8, %v3834_v7  ;;  %v4741_v7 = vld [vmem:[#allocation7 + $0xf4] sm:$0xf0] }
 0x49a   :  { %1758 = vmatpush.bf16.msra.mxu2 %v3607_v25  ;;  %1772 = vmatpush.bf16.msra.mxu3 %v3863_v26  ;;  %v4648_v22 = vld [vmem:[#allocation6 + $0x214] sm:$0xf]  ;;  %v4645_v25 = vld [vmem:[#allocation6 + $0x1f4] sm:$0xf0] }
 0x49b   :  { %v3930_v26 = vld [vmem:[#allocation6 + $0x3d8] sm:$0xf]  ;;  %v3703_v41 = vor.u32 %v4648_v22, %v3700_v23  ;;  %v3675_v42 = vor.u32 %v4645_v25, %v3674_v24  ;;  %v4609_v23 = vld [vmem:[#allocation6 + $0xdc] sm:$0xf] }
 0x49c   :  { %v4677_v22 = vld [vmem:[#allocation6 + $0x2f4] sm:$0xf0]  ;;  %v3548_v24 = vld [vmem:[#allocation6 + $0xf8] sm:$0xf0] }
 0x49d   :  { %1731 = vmatpush.bf16.msra.mxu0 %v3571_v37  ;;  %1745 = vmatpush.bf16.msra.mxu1 %v3827_v38  ;;  %v3932_v37 = vld [vmem:[#allocation6 + $0x3f8] sm:$0xf0]  ;;  %v3447_v38 = vor.u32 %v4584_v19, %v3444_v20  ;;  %v3802_v20 = vld [vmem:[#allocation6 + $0x2d8] sm:$0xf]  ;;  %v3551_v35 = vor.u32 %v4609_v23, %v3548_v24 }
 0x49e   :  { %1759 = vmatpush.bf16.msra.mxu2 %v3575_v43  ;;  %1773 = vmatpush.bf16.msra.mxu3 %v3831_v44  ;;  %v3931_v43 = vor.u32 %v4709_v27, %v3930_v26  ;;  %v3642_v44 = vld [vmem:[#allocation6 + $0x198] sm:$0xf]  ;;  %v3935_v47 = vor.u32 %v4705_v36, %v3932_v37  ;;  %v4673_v25 = vld [vmem:[#allocation6 + $0x2dc] sm:$0xf]  ;;  %v3803_v28 = vor.u32 %v4677_v22, %v3802_v20  ;;  %v4739_v20 = vld [vmem:[#allocation7 + $0xe4] sm:$0xf0] }
 0x49f   :  { %1680 = vmatmul.bf16.vlgmr.msrb.gmra.mxu0 %v5231_v58  ;;  %1694 = vmatmul.bf16.vlgmr.msrb.gmra.mxu1 %v5235_v60  ;;  %v3643_v33 = vor.u32 %v4637_v45, %v3642_v44  ;;  %v3804_v26 = vld [vmem:[#allocation6 + $0x2f8] sm:$0xf0]  ;;  %v3770_v37 = vld [vmem:[#allocation6 + $0x298] sm:$0xf]  ;;  %v3978_v22 = vld [vmem:[#allocation7 + $0x50] sm:$0xf] }
 0x4a0   :  { %1708 = vmatmul.bf16.vlgmr.msrb.gmra.mxu2 %v5231_v58  ;;  %1722 = vmatmul.bf16.vlgmr.msrb.gmra.mxu3 %v5235_v60  ;;  %v3807_v36 = vor.u32 %v4673_v25, %v3804_v26  ;;  %v3772_v44 = vld [vmem:[#allocation6 + $0x2b8] sm:$0xf0]  ;;  %v4721_v25 = vld [vmem:[#allocation7 + $0x54] sm:$0xf0] }
 0x4a1   :  { %1732 = vmatpush.bf16.msra.mxu0 %v3539_v54  ;;  %1746 = vmatpush.bf16.msra.mxu1 %v3795_v18  ;;  %v3644_v54 = vld [vmem:[#allocation6 + $0x1b8] sm:$0xf0] }
 0x4a2   :  { %1760 = vmatpush.bf16.msra.mxu2 %v3543_v53  ;;  %1774 = vmatpush.bf16.msra.mxu3 %v3799_v30  ;;  %v4697_v18 = vld [vmem:[#allocation6 + $0x39c] sm:$0xf]  ;;  %v3899_v53 = vor.u32 %v4701_v51, %v3898_v29  ;;  %v3610_v30 = vld [vmem:[#allocation6 + $0x158] sm:$0xf]  ;;  %v3647_v59 = vor.u32 %v4633_v52, %v3644_v54 }
 0x4a3   :  { %v3903_v57 = vor.u32 %v4697_v18, %v3900_v21  ;;  %v3611_v1 = vor.u32 %v4629_v34, %v3610_v30  ;;  %v4597_v29 = vld [vmem:[#allocation6 + $0x74] sm:$0xf0]  ;;  %v4593_v21 = vld [vmem:[#allocation6 + $0x5c] sm:$0xf] }
 0x4a4   :  { %v3738_v54 = vld [vmem:[#allocation6 + $0x258] sm:$0xf]  ;;  %v3740_v30 = vld [vmem:[#allocation6 + $0x278] sm:$0xf0] }
 0x4a5   :  { %1733 = vmatpush.bf16.msra.mxu0 %v3507_v63  ;;  %1747 = vmatpush.bf16.msra.mxu1 %v3763_v0  ;;  %v3612_v63 = vld [vmem:[#allocation6 + $0x178] sm:$0xf0]  ;;  %v4661_v18 = vld [vmem:[#allocation6 + $0x274] sm:$0xf0] }
 0x4a6   :  { %1761 = vmatpush.bf16.msra.mxu2 %v3511_v3  ;;  %1775 = vmatpush.bf16.msra.mxu3 %v3767_v49  ;;  %v4689_v0 = vld [vmem:[#allocation6 + $0x35c] sm:$0xf]  ;;  %v3867_v3 = vor.u32 %v4693_v2, %v3866_v61  ;;  %v3578_v49 = vld [vmem:[#allocation6 + $0x118] sm:$0xf]  ;;  %v3615_v5 = vor.u32 %v4625_v62, %v3612_v63 }
 0x4a7   :  { %v3871_v6 = vor.u32 %v4689_v0, %v3868_v48  ;;  %v3579_v13 = vor.u32 %v4621_v4, %v3578_v49  ;;  %v4589_v61 = vld [vmem:[#allocation6 + $0x34] sm:$0xf0]  ;;  %v4585_v48 = vld [vmem:[#allocation6 + $0x1c] sm:$0xf]  ;;  %v3994_v4 = vld [vmem:[#allocation7 + $0x70] sm:$0xf] }
 0x4a8   :  { %v3706_v2 = vld [vmem:[#allocation6 + $0x218] sm:$0xf]  ;;  %v3708_v49 = vld [vmem:[#allocation6 + $0x238] sm:$0xf0] }
 0x4a9   :  { %1734 = vmatpush.bf16.msra.mxu0 %v3475_v11  ;;  %1748 = vmatpush.bf16.msra.mxu1 %v3731_v12  ;;  %v4681_v11 = vld [vmem:[#allocation6 + $0x31c] sm:$0xf]  ;;  %v4653_v0 = vld [vmem:[#allocation6 + $0x234] sm:$0xf0] }
 0x4aa   :  { %1762 = vmatpush.bf16.msra.mxu2 %v3479_v16  ;;  %1776 = vmatpush.bf16.msra.mxu3 %v3735_v17  ;;  %v3836_v12 = vld [vmem:[#allocation6 + $0x338] sm:$0xf0]  ;;  %v4613_v16 = vld [vmem:[#allocation6 + $0xf4] sm:$0xf0]  ;;  %v3583_v17 = vor.u32 %v4617_v9, %v3580_v10  ;;  %v3707_v9 = vor.u32 %v4653_v0, %v3706_v2  ;;  %v3946_v2 = vld [vmem:[#allocation7 + $0x10] sm:$0xf] }
 0x4ab   :  { %v3839_v19 = vor.u32 %v4681_v11, %v3836_v12  ;;  %v3547_v27 = vor.u32 %v4613_v16, %v3546_v15  ;;  %v4122_v15 = vld [vmem:[#allocation7 + $0x170] sm:$0xf]  ;;  %v4757_v16 = vld [vmem:[#allocation7 + $0x174] sm:$0xf0] }
 0x4ac   :  { %v4123_v23 = vor.u32 %v4757_v16, %v4122_v15  ;;  %v4010_v0 = vld [vmem:[#allocation7 + $0x90] sm:$0xf]  ;;  %v4242_v15 = vld [vmem:[#allocation7 + $0x260] sm:$0xf]  ;;  %v4787_v16 = vld [vmem:[#allocation7 + $0x264] sm:$0xf0] }
 0x4ad   :  { %1735 = vmatpush.bf16.msra.mxu0 %v3443_v31  ;;  %1749 = vmatpush.bf16.msra.mxu1 %v3699_v32  ;;  %v3514_v31 = vld [vmem:[#allocation6 + $0x98] sm:$0xf] }
 0x4ae   :  { %1763 = vmatpush.bf16.msra.mxu2 %v3447_v38  ;;  %1777 = vmatpush.bf16.msra.mxu3 %v3703_v41  ;;  %v4605_v32 = vld [vmem:[#allocation6 + $0xb4] sm:$0xf0]  ;;  %v4601_v41 = vld [vmem:[#allocation6 + $0x9c] sm:$0xf] }
 0x4af   :  { %v4669_v38 = vld [vmem:[#allocation6 + $0x2b4] sm:$0xf0]  ;;  %v3515_v45 = vor.u32 %v4605_v32, %v3514_v31  ;;  %v4042_v31 = vld [vmem:[#allocation7 + $0xd0] sm:$0xf] }
 0x4b0   :  { %1736 = vmatmul.bf16.vlgmr.msra.gmra.mxu0 %v5231_v58  ;;  %1750 = vmatmul.bf16.vlgmr.msra.gmra.mxu1 %v5235_v60  ;;  %v4737_v32 = vld [vmem:[#allocation7 + $0xd4] sm:$0xf0] }
 0x4b1   :  { %1784 = vmatpush.bf16.msrb.mxu0 %v3675_v42  ;;  %1798 = vmatpush.bf16.msrb.mxu1 %v3931_v43  ;;  %v3516_v42 = vld [vmem:[#allocation6 + $0xb8] sm:$0xf0] }
 0x4b2   :  { %1812 = vmatpush.bf16.msrb.mxu2 %v3679_v46  ;;  %1826 = vmatpush.bf16.msrb.mxu3 %v3935_v47  ;;  %v4665_v43 = vld [vmem:[#allocation6 + $0x29c] sm:$0xf]  ;;  %v3771_v46 = vor.u32 %v4669_v38, %v3770_v37  ;;  %v3482_v47 = vld [vmem:[#allocation6 + $0x58] sm:$0xf]  ;;  %v3519_v51 = vor.u32 %v4601_v41, %v3516_v42  ;;  %v3979_v41 = vor.u32 %v4721_v25, %v3978_v22  ;;  %v3970_v42 = vld [vmem:[#allocation7 + $0x40] sm:$0xf] }
 0x4b3   :  { %1764 = vmatmul.bf16.vlgmr.msra.gmra.mxu2 %v5231_v58  ;;  %1778 = vmatmul.bf16.vlgmr.msra.gmra.mxu3 %v5235_v60  ;;  %v3775_v52 = vor.u32 %v4665_v43, %v3772_v44  ;;  %v3483_v34 = vor.u32 %v4597_v29, %v3482_v47  ;;  %v4043_v43 = vor.u32 %v4737_v32, %v4042_v31  ;;  %v4106_v44 = vld [vmem:[#allocation7 + $0x150] sm:$0xf]  ;;  %v4034_v47 = vld [vmem:[#allocation7 + $0xc0] sm:$0xf]  ;;  %v4735_v29 = vld [vmem:[#allocation7 + $0xc4] sm:$0xf0] }
 0x4b4   :  { %v4098_v31 = vld [vmem:[#allocation7 + $0x140] sm:$0xf]  ;;  %v4751_v32 = vld [vmem:[#allocation7 + $0x144] sm:$0xf0] }
 0x4b5   :  { %1785 = vmatpush.bf16.msrb.mxu0 %v3643_v33  ;;  %1799 = vmatpush.bf16.msrb.mxu1 %v3899_v53  ;;  %v3484_v33 = vld [vmem:[#allocation6 + $0x78] sm:$0xf0] }
 0x4b6   :  { %1813 = vmatpush.bf16.msrb.mxu2 %v3647_v59  ;;  %1827 = vmatpush.bf16.msrb.mxu3 %v3903_v57  ;;  %v4657_v53 = vld [vmem:[#allocation6 + $0x25c] sm:$0xf]  ;;  %v3739_v59 = vor.u32 %v4661_v18, %v3738_v54  ;;  %v3450_v57 = vld [vmem:[#allocation6 + $0x18] sm:$0xf]  ;;  %v3487_v62 = vor.u32 %v4593_v21, %v3484_v33  ;;  %v4026_v18 = vld [vmem:[#allocation7 + $0xb0] sm:$0xf] }
 0x4b7   :  { %v3743_v63 = vor.u32 %v4657_v53, %v3740_v30  ;;  %v3451_v8 = vor.u32 %v4589_v61, %v3450_v57  ;;  %v4717_v54 = vld [vmem:[#allocation7 + $0x34] sm:$0xf0]  ;;  %v3954_v53 = vld [vmem:[#allocation7 + $0x20] sm:$0xf]  ;;  %v4731_v57 = vld [vmem:[#allocation7 + $0xa4] sm:$0xf0] }
 0x4b8   :  { %v4733_v21 = vld [vmem:[#allocation7 + $0xb4] sm:$0xf0] }
 0x4b9   :  { %1786 = vmatpush.bf16.msrb.mxu0 %v3611_v1  ;;  %1800 = vmatpush.bf16.msrb.mxu1 %v3867_v3  ;;  %v3452_v1 = vld [vmem:[#allocation6 + $0x38] sm:$0xf0]  ;;  %v4027_v30 = vor.u32 %v4733_v21, %v4026_v18  ;;  %v4767_v18 = vld [vmem:[#allocation7 + $0x1c4] sm:$0xf0] }
 0x4ba   :  { %1814 = vmatpush.bf16.msrb.mxu2 %v3615_v5  ;;  %1828 = vmatpush.bf16.msrb.mxu3 %v3871_v6  ;;  %v4649_v3 = vld [vmem:[#allocation6 + $0x21c] sm:$0xf]  ;;  %v4725_v5 = vld [vmem:[#allocation7 + $0x74] sm:$0xf0]  ;;  %v4058_v6 = vld [vmem:[#allocation7 + $0xf0] sm:$0xf]  ;;  %v3455_v10 = vor.u32 %v4585_v48, %v3452_v1 }
 0x4bb   :  { %v3711_v11 = vor.u32 %v4649_v3, %v3708_v49  ;;  %v3995_v12 = vor.u32 %v4725_v5, %v3994_v4  ;;  %v4729_v48 = vld [vmem:[#allocation7 + $0x94] sm:$0xf0]  ;;  %v3938_v3 = vld [vmem:[#allocation7] sm:$0xf]  ;;  %v4711_v49 = vld [vmem:[#allocation7 + $0x4] sm:$0xf0] }
 0x4bc   :  { %v4011_v4 = vor.u32 %v4729_v48, %v4010_v0  ;;  %v4250_v5 = vld [vmem:[#allocation7 + $0x270] sm:$0xf]  ;;  %v4765_v0 = vld [vmem:[#allocation7 + $0x1b4] sm:$0xf0] }
 0x4bd   :  { %1787 = vmatpush.bf16.msrb.mxu0 %v3579_v13  ;;  %1801 = vmatpush.bf16.msrb.mxu1 %v3835_v14  ;;  %v3986_v13 = vld [vmem:[#allocation7 + $0x60] sm:$0xf]  ;;  %v4059_v14 = vor.u32 %v4741_v7, %v4058_v6  ;;  %v4727_v7 = vld [vmem:[#allocation7 + $0x84] sm:$0xf0] }
 0x4be   :  { %1815 = vmatpush.bf16.msrb.mxu2 %v3583_v17  ;;  %1829 = vmatpush.bf16.msrb.mxu3 %v3839_v19  ;;  %v4723_v17 = vld [vmem:[#allocation7 + $0x64] sm:$0xf0]  ;;  %v4050_v19 = vld [vmem:[#allocation7 + $0xe0] sm:$0xf] }
 0x4bf   :  { %v3987_v24 = vor.u32 %v4723_v17, %v3986_v13  ;;  %v4051_v26 = vor.u32 %v4739_v20, %v4050_v19  ;;  %v4002_v6 = vld [vmem:[#allocation7 + $0x80] sm:$0xf]  ;;  %v4243_v17 = vor.u32 %v4787_v16, %v4242_v15  ;;  %v4234_v19 = vld [vmem:[#allocation7 + $0x250] sm:$0xf]  ;;  %v4785_v20 = vld [vmem:[#allocation7 + $0x254] sm:$0xf0] }
 0x4c0   :  { %v4235_v22 = vor.u32 %v4785_v20, %v4234_v19  ;;  %v4066_v16 = vld [vmem:[#allocation7 + $0x100] sm:$0xf] }
 0x4c1   :  { %1788 = vmatpush.bf16.msrb.mxu0 %v3547_v27  ;;  %1802 = vmatpush.bf16.msrb.mxu1 %v3803_v28  ;;  %v4114_v27 = vld [vmem:[#allocation7 + $0x160] sm:$0xf]  ;;  %v4755_v28 = vld [vmem:[#allocation7 + $0x164] sm:$0xf0] }
 0x4c2   :  { %1816 = vmatpush.bf16.msrb.mxu2 %v3551_v35  ;;  %1830 = vmatpush.bf16.msrb.mxu3 %v3807_v36  ;;  %v4186_v35 = vld [vmem:[#allocation7 + $0x1f0] sm:$0xf]  ;;  %v4773_v36 = vld [vmem:[#allocation7 + $0x1f4] sm:$0xf0]  ;;  %v4115_v37 = vor.u32 %v4755_v28, %v4114_v27  ;;  %v4803_v27 = vld [vmem:[#allocation7 + $0x2e4] sm:$0xf0] }
 0x4c3   :  { %v4187_v38 = vor.u32 %v4773_v36, %v4186_v35  ;;  %v4099_v35 = vor.u32 %v4751_v32, %v4098_v31  ;;  %v4226_v36 = vld [vmem:[#allocation7 + $0x240] sm:$0xf]  ;;  %v4266_v32 = vld [vmem:[#allocation7 + $0x290] sm:$0xf] }
 0x4c4   :  { %v4194_v20 = vld [vmem:[#allocation7 + $0x200] sm:$0xf] }
 0x4c5   :  { %1789 = vmatpush.bf16.msrb.mxu0 %v3515_v45  ;;  %1803 = vmatpush.bf16.msrb.mxu1 %v3771_v46  ;;  %v4753_v45 = vld [vmem:[#allocation7 + $0x154] sm:$0xf0]  ;;  %v4719_v46 = vld [vmem:[#allocation7 + $0x44] sm:$0xf0] }
 0x4c6   :  { %1817 = vmatpush.bf16.msrb.mxu2 %v3519_v51  ;;  %1831 = vmatpush.bf16.msrb.mxu3 %v3775_v52  ;;  %v4107_v51 = vor.u32 %v4753_v45, %v4106_v44  ;;  %v4035_v52 = vor.u32 %v4735_v29, %v4034_v47  ;;  %v4298_v44 = vld [vmem:[#allocation7 + $0x2d0] sm:$0xf]  ;;  %v4801_v45 = vld [vmem:[#allocation7 + $0x2d4] sm:$0xf0] }
 0x4c7   :  { %v4090_v47 = vld [vmem:[#allocation7 + $0x130] sm:$0xf]  ;;  %v4749_v29 = vld [vmem:[#allocation7 + $0x134] sm:$0xf0] }
 0x4c9   :  { %1790 = vmatpush.bf16.msrb.mxu0 %v3483_v34  ;;  %1804 = vmatpush.bf16.msrb.mxu1 %v3739_v59  ;;  %v4715_v34 = vld [vmem:[#allocation7 + $0x24] sm:$0xf0]  ;;  %v4018_v59 = vld [vmem:[#allocation7 + $0xa0] sm:$0xf] }
 0x4ca   :  { %1818 = vmatpush.bf16.msrb.mxu2 %v3487_v62  ;;  %1832 = vmatpush.bf16.msrb.mxu3 %v3743_v63  ;;  %v3955_v61 = vor.u32 %v4715_v34, %v3954_v53  ;;  %v4019_v62 = vor.u32 %v4731_v57, %v4018_v59  ;;  %v4713_v63 = vld [vmem:[#allocation7 + $0x14] sm:$0xf0]  ;;  %v4799_v53 = vld [vmem:[#allocation7 + $0x2c4] sm:$0xf0]  ;;  %v4082_v34 = vld [vmem:[#allocation7 + $0x120] sm:$0xf] }
 0x4cb   :  { %v3947_v1 = vor.u32 %v4713_v63, %v3946_v2  ;;  %v4747_v59 = vld [vmem:[#allocation7 + $0x124] sm:$0xf0]  ;;  %v4154_v63 = vld [vmem:[#allocation7 + $0x1b0] sm:$0xf] }
 0x4cc   :  { %v4083_v57 = vor.u32 %v4747_v59, %v4082_v34  ;;  %v4779_v2 = vld [vmem:[#allocation7 + $0x224] sm:$0xf0]  ;;  %v4155_v48 = vor.u32 %v4765_v0, %v4154_v63  ;;  %v4833_v63 = vld [vmem:[#allocation7 + $0x3d4] sm:$0xf0] }
 0x4cd   :  { %1791 = vmatpush.bf16.msrb.mxu0 %v3451_v8  ;;  %1805 = vmatpush.bf16.msrb.mxu1 %v3707_v9  ;;  %v4789_v8 = vld [vmem:[#allocation7 + $0x274] sm:$0xf0]  ;;  %v4314_v9 = vld [vmem:[#allocation7 + $0x2f0] sm:$0xf] }
 0x4ce   :  { %1819 = vmatpush.bf16.msrb.mxu2 %v3455_v10  ;;  %1833 = vmatpush.bf16.msrb.mxu3 %v3711_v11  ;;  %v4805_v10 = vld [vmem:[#allocation7 + $0x2f4] sm:$0xf0]  ;;  %v3939_v11 = vor.u32 %v4711_v49, %v3938_v3  ;;  %v4251_v13 = vor.u32 %v4789_v8, %v4250_v5 }
 0x4cf   :  { %v4797_v3 = vld [vmem:[#allocation7 + $0x2b4] sm:$0xf0] }
 0x4d0   :  { %1792 = vmatmul.bf16.vlgmr.msrb.gmra.mxu0 %v5231_v58  ;;  %1806 = vmatmul.bf16.vlgmr.msrb.gmra.mxu1 %v5235_v60  ;;  %v4745_v5 = vld [vmem:[#allocation7 + $0x114] sm:$0xf0] }
 0x4d1   :  { %2638 = vmatpush.bf16.msra.mxu0 %v3995_v12  ;;  %2652 = vmatpush.bf16.msra.mxu1 %v4059_v14  ;;  %v4003_v12 = vor.u32 %v4727_v7, %v4002_v6  ;;  %v4315_v14 = vor.u32 %v4805_v10, %v4314_v9  ;;  %v4202_v7 = vld [vmem:[#allocation7 + $0x210] sm:$0xf]  ;;  %v4777_v8 = vld [vmem:[#allocation7 + $0x214] sm:$0xf0]  ;;  %v4146_v10 = vld [vmem:[#allocation7 + $0x1a0] sm:$0xf] }
 0x4d2   :  { %1820 = vmatmul.bf16.vlgmr.msrb.gmra.mxu2 %v5231_v58  ;;  %1834 = vmatmul.bf16.vlgmr.msrb.gmra.mxu3 %v5235_v60  ;;  %v3971_v58 = vor.u32 %v4719_v46, %v3970_v42  ;;  %v3962_v60 = vld [vmem:[#allocation7 + $0x30] sm:$0xf]  ;;  %v4769_v42 = vld [vmem:[#allocation7 + $0x1d4] sm:$0xf0]  ;;  %v4299_v46 = vor.u32 %v4801_v45, %v4298_v44  ;;  %v4203_v9 = vor.u32 %v4777_v8, %v4202_v7  ;;  %v4258_v45 = vld [vmem:[#allocation7 + $0x280] sm:$0xf] }
 0x4d3   :  { %2666 = vmatpush.bf16.msra.mxu2 %v4123_v23  ;;  %2680 = vmatpush.bf16.msra.mxu3 %v4187_v38  ;;  %v3963_v33 = vor.u32 %v4717_v54, %v3962_v60  ;;  %v4178_v23 = vld [vmem:[#allocation7 + $0x1e0] sm:$0xf]  ;;  %v4170_v38 = vld [vmem:[#allocation7 + $0x1d0] sm:$0xf]  ;;  %v4781_v60 = vld [vmem:[#allocation7 + $0x234] sm:$0xf0] }
 0x4d4   :  { %v4162_v54 = vld [vmem:[#allocation7 + $0x1c0] sm:$0xf]  ;;  %v4831_v7 = vld [vmem:[#allocation7 + $0x3c4] sm:$0xf0] }
 0x4d5   :  { %2639 = vmatpush.bf16.msra.mxu0 %v3987_v24  ;;  %2653 = vmatpush.bf16.msra.mxu1 %v4051_v26  ;;  %v4771_v24 = vld [vmem:[#allocation7 + $0x1e4] sm:$0xf0]  ;;  %v4306_v26 = vld [vmem:[#allocation7 + $0x2e0] sm:$0xf]  ;;  %v4163_v21 = vor.u32 %v4767_v18, %v4162_v54 }
 0x4d6   :  { %v4179_v25 = vor.u32 %v4771_v24, %v4178_v23  ;;  %v4307_v28 = vor.u32 %v4803_v27, %v4306_v26  ;;  %v4378_v23 = vld [vmem:[#allocation7 + $0x370] sm:$0xf]  ;;  %v4761_v27 = vld [vmem:[#allocation7 + $0x194] sm:$0xf0]  ;;  %v5256_v54 = vld [vmem:[%s5346_s8 + $0x8] sm:$0xff] }
 0x4d7   :  { %2667 = vmatpush.bf16.msra.mxu2 %v4115_v37  ;;  %v4783_v37 = vld [vmem:[#allocation7 + $0x244] sm:$0xf0]  ;;  %v4138_v26 = vld [vmem:[#allocation7 + $0x190] sm:$0xf]  ;;  %v960_v59 = vperm.slane %v5256_v54, 0  ;;  %v961_v8 = vperm.slane %v5256_v54, 1 }
 0x4d8   :  { %2681 = vmatpush.bf16.msra.mxu3 %v4179_v25  ;;  %v4821_v25 = vld [vmem:[#allocation7 + $0x374] sm:$0xf0]  ;;  %v4139_v31 = vor.u32 %v4761_v27, %v4138_v26 }
 0x4d9   :  { %2640 = vmatpush.bf16.msra.mxu0 %v3979_v41  ;;  %2654 = vmatpush.bf16.msra.mxu1 %v4043_v43  ;;  %v4227_v41 = vor.u32 %v4783_v37, %v4226_v36  ;;  %v4171_v43 = vor.u32 %v4769_v42, %v4170_v38  ;;  %v4370_v37 = vld [vmem:[#allocation7 + $0x360] sm:$0xf]  ;;  %v4819_v38 = vld [vmem:[#allocation7 + $0x364] sm:$0xf0] }
 0x4da   :  { %v4130_v42 = vld [vmem:[#allocation7 + $0x180] sm:$0xf] }
 0x4db   :  { %2668 = vmatpush.bf16.msra.mxu2 %v4107_v51  ;;  %v4091_v51 = vor.u32 %v4749_v29, %v4090_v47  ;;  %v4442_v29 = vld [vmem:[#allocation7 + $0x3f0] sm:$0xf] }
 0x4dc   :  { %2682 = vmatpush.bf16.msra.mxu3 %v4171_v43  ;;  %v4759_v43 = vld [vmem:[#allocation7 + $0x184] sm:$0xf0] }
 0x4dd   :  { %2641 = vmatpush.bf16.msra.mxu0 %v3971_v58  ;;  %2655 = vmatpush.bf16.msra.mxu1 %v4035_v52  ;;  %v4218_v58 = vld [vmem:[#allocation7 + $0x230] sm:$0xf]  ;;  %v4131_v44 = vor.u32 %v4759_v43, %v4130_v42  ;;  %v3988_v42 = vld [vmem:[#allocation7 + $0x68] sm:$0xf0]  ;;  %v4402_v43 = vld [vmem:[#allocation7 + $0x3a0] sm:$0xf] }
 0x4de   :  { %v4219_v52 = vor.u32 %v4781_v60, %v4218_v58  ;;  %v4362_v60 = vld [vmem:[#allocation7 + $0x350] sm:$0xf] }
 0x4df   :  { %2669 = vmatpush.bf16.msra.mxu2 %v4099_v35  ;;  %v4793_v35 = vld [vmem:[#allocation7 + $0x294] sm:$0xf0] }
 0x4e0   :  { %2683 = vmatpush.bf16.msra.mxu3 %v4163_v21  ;;  %v4267_v36 = vor.u32 %v4793_v35, %v4266_v32  ;;  %v4434_v21 = vld [vmem:[#allocation7 + $0x3e0] sm:$0xf]  ;;  %v4722_v35 = vld [vmem:[#allocation7 + $0x64] sm:$0xf] }
 0x4e1   :  { %2642 = vmatpush.bf16.msra.mxu0 %v3963_v33  ;;  %2656 = vmatpush.bf16.msra.mxu1 %v4027_v30  ;;  %v4290_v33 = vld [vmem:[#allocation7 + $0x2c0] sm:$0xf] }
 0x4e2   :  { %v4291_v30 = vor.u32 %v4799_v53, %v4290_v33  ;;  %v4835_v33 = vld [vmem:[#allocation7 + $0x3e4] sm:$0xf0] }
 0x4e3   :  { %2670 = vmatpush.bf16.msra.mxu2 %v4091_v51  ;;  %v4837_v51 = vld [vmem:[#allocation7 + $0x3f4] sm:$0xf0]  ;;  %v4435_v34 = vor.u32 %v4835_v33, %v4434_v21  ;;  %v3991_v21 = vor.u32 %v4722_v35, %v3988_v42  ;;  %v4740_v33 = vld [vmem:[#allocation7 + $0xf4] sm:$0xf]  ;;  %v4714_v42 = vld [vmem:[#allocation7 + $0x24] sm:$0xf] }
 0x4e4   :  { %2684 = vmatpush.bf16.msra.mxu3 %v4155_v48  ;;  %v4443_v58 = vor.u32 %v4837_v51, %v4442_v29 }
 0x4e5   :  { %2643 = vmatpush.bf16.msra.mxu0 %v3955_v61  ;;  %2657 = vmatpush.bf16.msra.mxu1 %v4019_v62  ;;  %v4210_v61 = vld [vmem:[#allocation7 + $0x220] sm:$0xf] }
 0x4e6   :  { %v4211_v62 = vor.u32 %v4779_v2, %v4210_v61  ;;  %v4815_v61 = vld [vmem:[#allocation7 + $0x344] sm:$0xf0] }
 0x4e7   :  { %2671 = vmatpush.bf16.msra.mxu2 %v4083_v57  ;;  %v4354_v57 = vld [vmem:[#allocation7 + $0x340] sm:$0xf] }
 0x4e8   :  { %v4355_v2 = vor.u32 %v4815_v61, %v4354_v57  ;;  %v4394_v57 = vld [vmem:[#allocation7 + $0x390] sm:$0xf]  ;;  %v4825_v61 = vld [vmem:[#allocation7 + $0x394] sm:$0xf0] }
 0x4e9   :  { %2644 = vmatpush.bf16.msra.mxu0 %v3947_v1  ;;  %2658 = vmatpush.bf16.msra.mxu1 %v4011_v4  ;;  %v4282_v1 = vld [vmem:[#allocation7 + $0x2b0] sm:$0xf] }
 0x4ea   :  { %v4283_v49 = vor.u32 %v4797_v3, %v4282_v1  ;;  %v4074_v4 = vld [vmem:[#allocation7 + $0x110] sm:$0xf]  ;;  %v4813_v3 = vld [vmem:[#allocation7 + $0x334] sm:$0xf0] }
 0x4eb   :  { %v4075_v6 = vor.u32 %v4745_v5, %v4074_v4  ;;  %v4346_v1 = vld [vmem:[#allocation7 + $0x330] sm:$0xf] }
 0x4ed   :  { %2645 = vmatpush.bf16.msra.mxu0 %v3939_v11  ;;  %2659 = vmatpush.bf16.msra.mxu1 %v4003_v12  ;;  %v4763_v11 = vld [vmem:[#allocation7 + $0x1a4] sm:$0xf0] }
 0x4ee   :  { %2672 = vmatpush.bf16.msra.mxu2 %v4075_v6  ;;  %v4147_v12 = vor.u32 %v4763_v11, %v4146_v10  ;;  %v4418_v6 = vld [vmem:[#allocation7 + $0x3c0] sm:$0xf] }
 0x4ef   :  { %v4419_v11 = vor.u32 %v4831_v7, %v4418_v6 }
 0x4f0   :  { %2685 = vmatpush.bf16.msra.mxu3 %v4147_v12 }
 0x4f1   :  { %2694 = vmatpush.bf16.msrb.mxu0 %v4251_v13  ;;  %2708 = vmatpush.bf16.msrb.mxu1 %v4315_v14  ;;  %v4274_v13 = vld [vmem:[#allocation7 + $0x2a0] sm:$0xf]  ;;  %v4795_v14 = vld [vmem:[#allocation7 + $0x2a4] sm:$0xf0] }
 0x4f2   :  { %v4275_v15 = vor.u32 %v4795_v14, %v4274_v13  ;;  %v4338_v14 = vld [vmem:[#allocation7 + $0x320] sm:$0xf] }
 0x4f4   :  { %2686 = vmatpush.bf16.msra.mxu3 %v4139_v31  ;;  %v4809_v31 = vld [vmem:[#allocation7 + $0x314] sm:$0xf0] }
 0x4f5   :  { %2695 = vmatpush.bf16.msrb.mxu0 %v4243_v17  ;;  %2709 = vmatpush.bf16.msrb.mxu1 %v4307_v28  ;;  %v4743_v17 = vld [vmem:[#allocation7 + $0x104] sm:$0xf0]  ;;  %v4379_v28 = vor.u32 %v4821_v25, %v4378_v23  ;;  %v4829_v23 = vld [vmem:[#allocation7 + $0x3b4] sm:$0xf0] }
 0x4f6   :  { %v4067_v19 = vor.u32 %v4743_v17, %v4066_v16  ;;  %v4724_v16 = vld [vmem:[#allocation7 + $0x74] sm:$0xf] }
 0x4f8   :  { %2673 = vmatpush.bf16.msra.mxu2 %v4067_v19  ;;  %2687 = vmatpush.bf16.msra.mxu3 %v4131_v44  ;;  %v4827_v44 = vld [vmem:[#allocation7 + $0x3a4] sm:$0xf0] }
 0x4f9   :  { %2696 = vmatpush.bf16.msrb.mxu0 %v4235_v22  ;;  %2710 = vmatpush.bf16.msrb.mxu1 %v4299_v46  ;;  %v4775_v22 = vld [vmem:[#allocation7 + $0x204] sm:$0xf0]  ;;  %v4403_v51 = vor.u32 %v4827_v44, %v4402_v43 }
 0x4fa   :  { %v4195_v24 = vor.u32 %v4775_v22, %v4194_v20  ;;  %v4791_v46 = vld [vmem:[#allocation7 + $0x284] sm:$0xf0]  ;;  %v3996_v20 = vld [vmem:[#allocation7 + $0x78] sm:$0xf0]  ;;  %v4410_v22 = vld [vmem:[#allocation7 + $0x3b0] sm:$0xf] }
 0x4fb   :  { %v4259_v47 = vor.u32 %v4791_v46, %v4258_v45  ;;  %v4411_v25 = vor.u32 %v4829_v23, %v4410_v22  ;;  %v3999_v32 = vor.u32 %v4724_v16, %v3996_v20  ;;  %v4736_v20 = vld [vmem:[#allocation7 + $0xd4] sm:$0xf]  ;;  %v4044_v22 = vld [vmem:[#allocation7 + $0xd8] sm:$0xf0] }
 0x4fc   :  { %2722 = vmatpush.bf16.msrb.mxu2 %v4379_v28  ;;  %2736 = vmatpush.bf16.msrb.mxu3 %v4443_v58  ;;  %v4330_v28 = vld [vmem:[#allocation7 + $0x310] sm:$0xf]  ;;  %v962_v58 = vperm.slane %v5256_v54, 2  ;;  %v4716_v23 = vld [vmem:[#allocation7 + $0x34] sm:$0xf]  ;;  %v4047_v35 = vor.u32 %v4736_v20, %v4044_v22 }
 0x4fd   :  { %2697 = vmatpush.bf16.msrb.mxu0 %v4227_v41  ;;  %2711 = vmatpush.bf16.msrb.mxu1 %v4291_v30  ;;  %v4371_v41 = vor.u32 %v4819_v38, %v4370_v37 }
 0x500   :  { %2723 = vmatpush.bf16.msrb.mxu2 %v4371_v41  ;;  %2737 = vmatpush.bf16.msrb.mxu3 %v4435_v34 }
 0x501   :  { %2698 = vmatpush.bf16.msrb.mxu0 %v4219_v52  ;;  %2712 = vmatpush.bf16.msrb.mxu1 %v4283_v49  ;;  %v4817_v52 = vld [vmem:[#allocation7 + $0x354] sm:$0xf0]  ;;  %v4347_v49 = vor.u32 %v4813_v3, %v4346_v1 }
 0x502   :  { %v4363_v18 = vor.u32 %v4817_v52, %v4362_v60  ;;  %v4322_v60 = vld [vmem:[#allocation7 + $0x300] sm:$0xf]  ;;  %v4807_v52 = vld [vmem:[#allocation7 + $0x304] sm:$0xf0] }
 0x503   :  { %v4323_v34 = vor.u32 %v4807_v52, %v4322_v60  ;;  %v964_v52 = vperm.slane %v5256_v54, 4 }
 0x504   :  { %2724 = vmatpush.bf16.msrb.mxu2 %v4363_v18 }
 0x505   :  { %2699 = vmatpush.bf16.msrb.mxu0 %v4211_v62  ;;  %2713 = vmatpush.bf16.msrb.mxu1 %v4275_v15  ;;  %v4426_v62 = vld [vmem:[#allocation7 + $0x3d0] sm:$0xf]  ;;  %v4811_v15 = vld [vmem:[#allocation7 + $0x324] sm:$0xf0] }
 0x506   :  { %v4427_v0 = vor.u32 %v4833_v63, %v4426_v62  ;;  %v4339_v17 = vor.u32 %v4811_v15, %v4338_v14  ;;  %v4395_v63 = vor.u32 %v4825_v61, %v4394_v57  ;;  %v4712_v57 = vld [vmem:[#allocation7 + $0x14] sm:$0xf] }
 0x508   :  { %2725 = vmatpush.bf16.msrb.mxu2 %v4355_v2  ;;  %2738 = vmatpush.bf16.msrb.mxu3 %v4427_v0 }
 0x509   :  { %2700 = vmatpush.bf16.msrb.mxu0 %v4203_v9  ;;  %2714 = vmatpush.bf16.msrb.mxu1 %v4267_v36  ;;  %v4331_v36 = vor.u32 %v4809_v31, %v4330_v28 }
 0x50c   :  { %v1625_v53 = vpop.f32.mrf.mxu0  ;;  %v1639_v30 = vpop.f32.mrf.mxu1  ;;  %2726 = vmatpush.bf16.msrb.mxu2 %v4347_v49  ;;  %2739 = vmatpush.bf16.msrb.mxu3 %v4419_v11  ;;  %v4738_v49 = vld [vmem:[#allocation7 + $0xe4] sm:$0xf]  ;;  %v963_v11 = vperm.slane %v5256_v54, 3 }
 0x50d   :  { %2701 = vmatpush.bf16.msrb.mxu0 %v4195_v24  ;;  %2715 = vmatpush.bf16.msrb.mxu1 %v4259_v47  ;;  %v1626_v48 = vadd.f32 %v1625_v53, %v960_v59  ;;  %v4060_v53 = vld [vmem:[#allocation7 + $0xf8] sm:$0xf0] }
 0x50f   :  { %v1640_v12 = vadd.f32 %v1639_v30, %v1626_v48  ;;  %v4720_v30 = vld [vmem:[#allocation7 + $0x54] sm:$0xf]  ;;  %v4063_v48 = vor.u32 %v4740_v33, %v4060_v53  ;;  %v4028_v33 = vld [vmem:[#allocation7 + $0xb8] sm:$0xf0] }
 0x510   :  { %2727 = vmatpush.bf16.msrb.mxu2 %v4339_v17  ;;  %2740 = vmatpush.bf16.msrb.mxu3 %v4411_v25  ;;  %v3964_v25 = vld [vmem:[#allocation7 + $0x38] sm:$0xf0] }
 0x511   :  { %v1840_v26 = vmax.f32 %v1640_v12, 0.0 }
 0x513   :  { %v1653_v4 = vpop.f32.mrf.mxu2  ;;  %v1667_v5 = vpop.f32.mrf.mxu3 }
 0x514   :  { %v1627_v9 = vpop.f32.mrf.mxu0  ;;  %v1641_v10 = vpop.f32.mrf.mxu1  ;;  %v1654_v24 = vadd.f32 %v1653_v4, %v961_v8  ;;  %2728 = vmatpush.bf16.msrb.mxu2 %v4331_v36  ;;  %2741 = vmatpush.bf16.msrb.mxu3 %v4403_v51  ;;  %v4052_v4 = vld [vmem:[#allocation7 + $0xe8] sm:$0xf0]  ;;  %v3967_v36 = vor.u32 %v4716_v23, %v3964_v25 }
 0x515   :  { %v1628_v13 = vadd.f32 %v1627_v9, %v960_v59  ;;  %v3980_v59 = vld [vmem:[#allocation7 + $0x58] sm:$0xf0]  ;;  %v4386_v9 = vld [vmem:[#allocation7 + $0x380] sm:$0xf]  ;;  %v4055_v17 = vor.u32 %v4738_v49, %v4052_v4  ;;  %v4116_v51 = vld [vmem:[#allocation7 + $0x168] sm:$0xf0] }
 0x516   :  { %v1668_v45 = vadd.f32 %v1667_v5, %v1654_v24  ;;  %v3983_v3 = vor.u32 %v4720_v30, %v3980_v59  ;;  %v4718_v5 = vld [vmem:[#allocation7 + $0x44] sm:$0xf] }
 0x517   :  { %v1642_v19 = vadd.f32 %v1641_v10, %v1628_v13  ;;  %v4823_v10 = vld [vmem:[#allocation7 + $0x384] sm:$0xf0] }
 0x518   :  { %v1841_v2 = vmax.f32 %v1668_v45, 0.0  ;;  %2729 = vmatpush.bf16.msrb.mxu2 %v4323_v34  ;;  %2742 = vmatpush.bf16.msrb.mxu3 %v4395_v63  ;;  %v4387_v14 = vor.u32 %v4823_v10, %v4386_v9  ;;  %v3948_v63 = vld [vmem:[#allocation7 + $0x18] sm:$0xf0]  ;;  %v4710_v10 = vld [vmem:[#allocation7 + $0x4] sm:$0xf] }
 0x519   :  { %v1848_v27 = vmax.f32 %v1642_v19, 0.0  ;;  %v3951_v9 = vor.u32 %v4712_v57, %v3948_v63  ;;  %v4244_v63 = vld [vmem:[#allocation7 + $0x268] sm:$0xf0] }
 0x51b   :  { %v5260_v37 = vpack.c.bf16 %v1848_v27, %v1840_v26  ;;  %v1655_v38 = vpop.f32.mrf.mxu2  ;;  %v1669_v41 = vpop.f32.mrf.mxu3  ;;  %v4756_v26 = vld [vmem:[#allocation7 + $0x174] sm:$0xf]  ;;  %v4124_v27 = vld [vmem:[#allocation7 + $0x178] sm:$0xf0] }
 0x51c   :  { %v1656_v46 = vadd.f32 %v1655_v38, %v961_v8  ;;  %v1681_v47 = vpop.f32.mrf.mxu0  ;;  %v1695_v29 = vpop.f32.mrf.mxu1  ;;  %v3972_v8 = vld [vmem:[#allocation7 + $0x48] sm:$0xf0]  ;;  %2743 = vmatpush.bf16.msrb.mxu3 %v4387_v14  ;;  %v4734_v38 = vld [vmem:[#allocation7 + $0xc4] sm:$0xf]  ;;  %v4127_v43 = vor.u32 %v4756_v26, %v4124_v27 }
 0x51d   :  { %2646 = vmatmul.bf16.vlgmr.msra.gmra.mxu0 %v5260_v37  ;;  %v1682_v0 = vadd.f32 %v1681_v47, %v962_v58  ;;  %v3975_v19 = vor.u32 %v4718_v5, %v3972_v8  ;;  %v3956_v47 = vld [vmem:[#allocation7 + $0x28] sm:$0xf0]  ;;  %v4730_v5 = vld [vmem:[#allocation7 + $0xa4] sm:$0xf] }
 0x51e   :  { %v1670_v18 = vadd.f32 %v1669_v41, %v1656_v46  ;;  %2750 = vmatpush.bf16.msra.mxu0 %v3999_v32  ;;  %v4036_v41 = vld [vmem:[#allocation7 + $0xc8] sm:$0xf0]  ;;  %v3959_v59 = vor.u32 %v4714_v42, %v3956_v47  ;;  %v4092_v42 = vld [vmem:[#allocation7 + $0x138] sm:$0xf0] }
 0x51f   :  { %v1696_v15 = vadd.f32 %v1695_v29, %v1682_v0  ;;  %v4754_v29 = vld [vmem:[#allocation7 + $0x164] sm:$0xf]  ;;  %v4752_v0 = vld [vmem:[#allocation7 + $0x154] sm:$0xf]  ;;  %v4252_v47 = vld [vmem:[#allocation7 + $0x278] sm:$0xf0] }
 0x520   :  { %v1849_v62 = vmax.f32 %v1670_v18, 0.0  ;;  %v4039_v18 = vor.u32 %v4734_v38, %v4036_v41  ;;  %v4119_v61 = vor.u32 %v4754_v29, %v4116_v51  ;;  %v4748_v41 = vld [vmem:[#allocation7 + $0x134] sm:$0xf]  ;;  %v4726_v51 = vld [vmem:[#allocation7 + $0x84] sm:$0xf] }
 0x521   :  { %v1842_v31 = vmax.f32 %v1696_v15, 0.0  ;;  %v3940_v15 = vld [vmem:[#allocation7 + $0x8] sm:$0xf0] }
 0x522   :  { %v5264_v1 = vpack.c.bf16 %v1849_v62, %v1841_v2  ;;  %2751 = vmatpush.bf16.msra.mxu0 %v3991_v21  ;;  %v4732_v21 = vld [vmem:[#allocation7 + $0xb4] sm:$0xf]  ;;  %v4188_v62 = vld [vmem:[#allocation7 + $0x1f8] sm:$0xf0]  ;;  %v3943_v27 = vor.u32 %v4710_v10, %v3940_v15 }
 0x523   :  { %v1709_v6 = vpop.f32.mrf.mxu2  ;;  %v1723_v7 = vpop.f32.mrf.mxu3  ;;  %v4772_v2 = vld [vmem:[#allocation7 + $0x1f4] sm:$0xf]  ;;  %v4031_v4 = vor.u32 %v4732_v21, %v4028_v33  ;;  %v4095_v21 = vor.u32 %v4748_v41, %v4092_v42  ;;  %v4766_v33 = vld [vmem:[#allocation7 + $0x1c4] sm:$0xf]  ;;  %v4076_v10 = vld [vmem:[#allocation7 + $0x118] sm:$0xf0] }
 0x524   :  { %2660 = vmatmul.bf16.vlgmr.msra.gmra.mxu1 %v5264_v1  ;;  %v1683_v12 = vpop.f32.mrf.mxu0  ;;  %v1697_v13 = vpop.f32.mrf.mxu1  ;;  %v1710_v28 = vadd.f32 %v1709_v6, %v963_v11  ;;  %v4020_v6 = vld [vmem:[#allocation7 + $0xa8] sm:$0xf0]  ;;  %v4784_v15 = vld [vmem:[#allocation7 + $0x254] sm:$0xf] }
 0x525   :  { %v1684_v16 = vadd.f32 %v1683_v12, %v962_v58  ;;  %2764 = vmatpush.bf16.msra.mxu1 %v4063_v48  ;;  %v4108_v48 = vld [vmem:[#allocation7 + $0x158] sm:$0xf0]  ;;  %v4770_v12 = vld [vmem:[#allocation7 + $0x1e4] sm:$0xf]  ;;  %v4023_v23 = vor.u32 %v4730_v5, %v4020_v6  ;;  %v4764_v5 = vld [vmem:[#allocation7 + $0x1b4] sm:$0xf] }
 0x526   :  { %2752 = vmatpush.bf16.msra.mxu0 %v3983_v3  ;;  %v1724_v58 = vadd.f32 %v1723_v7, %v1710_v28  ;;  %v4191_v7 = vor.u32 %v4772_v2, %v4188_v62  ;;  %v4012_v28 = vld [vmem:[#allocation7 + $0x98] sm:$0xf0]  ;;  %v4786_v62 = vld [vmem:[#allocation7 + $0x264] sm:$0xf] }
 0x527   :  { %v1698_v24 = vadd.f32 %v1697_v13, %v1684_v16  ;;  %v4180_v13 = vld [vmem:[#allocation7 + $0x1e8] sm:$0xf0]  ;;  %v4750_v16 = vld [vmem:[#allocation7 + $0x144] sm:$0xf]  ;;  %v4156_v6 = vld [vmem:[#allocation7 + $0x1b8] sm:$0xf0] }
 0x528   :  { %v1843_v3 = vmax.f32 %v1724_v58, 0.0  ;;  %v4183_v25 = vor.u32 %v4770_v12, %v4180_v13  ;;  %v4247_v12 = vor.u32 %v4786_v62, %v4244_v63  ;;  %v4804_v13 = vld [vmem:[#allocation7 + $0x2f4] sm:$0xf]  ;;  %v4778_v62 = vld [vmem:[#allocation7 + $0x224] sm:$0xf] }
 0x529   :  { %v1850_v32 = vmax.f32 %v1698_v24, 0.0  ;;  %2765 = vmatpush.bf16.msra.mxu1 %v4055_v17  ;;  %v4100_v17 = vld [vmem:[#allocation7 + $0x148] sm:$0xf0]  ;;  %v4728_v24 = vld [vmem:[#allocation7 + $0x94] sm:$0xf] }
 0x52a   :  { %2753 = vmatpush.bf16.msra.mxu0 %v3975_v19  ;;  %v965_v19 = vperm.slane %v5256_v54, 5  ;;  %v4015_v29 = vor.u32 %v4728_v24, %v4012_v28  ;;  %v4148_v24 = vld [vmem:[#allocation7 + $0x1a8] sm:$0xf0] }
 0x52b   :  { %v5268_v44 = vpack.c.bf16 %v1850_v32, %v1842_v31  ;;  %v1711_v45 = vpop.f32.mrf.mxu2  ;;  %v1725_v46 = vpop.f32.mrf.mxu3  ;;  %v4103_v31 = vor.u32 %v4750_v16, %v4100_v17  ;;  %v4768_v32 = vld [vmem:[#allocation7 + $0x1d4] sm:$0xf]  ;;  %v4236_v16 = vld [vmem:[#allocation7 + $0x258] sm:$0xf0]  ;;  %v4159_v17 = vor.u32 %v4764_v5, %v4156_v6  ;;  %v4212_v63 = vld [vmem:[#allocation7 + $0x228] sm:$0xf0] }
 0x52c   :  { %v1712_v60 = vadd.f32 %v1711_v45, %v963_v11  ;;  %v4111_v11 = vor.u32 %v4752_v0, %v4108_v48  ;;  %v4284_v5 = vld [vmem:[#allocation7 + $0x2b8] sm:$0xf0]  ;;  %v4776_v6 = vld [vmem:[#allocation7 + $0x214] sm:$0xf] }
 0x52d   :  { %2674 = vmatmul.bf16.vlgmr.msra.gmra.mxu2 %v5268_v44  ;;  %2766 = vmatpush.bf16.msra.mxu1 %v4047_v35  ;;  %v1737_v30 = vpop.f32.mrf.mxu0  ;;  %v1751_v34 = vpop.f32.mrf.mxu1  ;;  %v4172_v35 = vld [vmem:[#allocation7 + $0x1d8] sm:$0xf0] }
 0x52e   :  { %v1726_v53 = vadd.f32 %v1725_v46, %v1712_v60  ;;  %2754 = vmatpush.bf16.msra.mxu0 %v3967_v36  ;;  %2778 = vmatpush.bf16.msra.mxu2 %v4127_v43  ;;  %v1738_v14 = vadd.f32 %v1737_v30, %v964_v52  ;;  %v4788_v46 = vld [vmem:[#allocation7 + $0x274] sm:$0xf]  ;;  %v4175_v58 = vor.u32 %v4768_v32, %v4172_v35  ;;  %v4802_v32 = vld [vmem:[#allocation7 + $0x2e4] sm:$0xf]  ;;  %v4308_v35 = vld [vmem:[#allocation7 + $0x2e8] sm:$0xf0] }
 0x52f   :  { %v4255_v57 = vor.u32 %v4788_v46, %v4252_v47  ;;  %v4311_v46 = vor.u32 %v4802_v32, %v4308_v35  ;;  %v4792_v35 = vld [vmem:[#allocation7 + $0x294] sm:$0xf] }
 0x530   :  { %v1851_v49 = vmax.f32 %v1726_v53, 0.0  ;;  %v1752_v36 = vadd.f32 %v1751_v34, %v1738_v14  ;;  %v4164_v53 = vld [vmem:[#allocation7 + $0x1c8] sm:$0xf0]  ;;  %v4746_v34 = vld [vmem:[#allocation7 + $0x124] sm:$0xf] }
 0x531   :  { %2767 = vmatpush.bf16.msra.mxu1 %v4039_v18  ;;  %v4004_v18 = vld [vmem:[#allocation7 + $0x88] sm:$0xf0]  ;;  %v4167_v48 = vor.u32 %v4766_v33, %v4164_v53  ;;  %v4316_v14 = vld [vmem:[#allocation7 + $0x2f8] sm:$0xf0] }
 0x532   :  { %v5272_v8 = vpack.c.bf16 %v1851_v49, %v1843_v3  ;;  %2755 = vmatpush.bf16.msra.mxu0 %v3959_v59  ;;  %2779 = vmatpush.bf16.msra.mxu2 %v4119_v61  ;;  %v1844_v30 = vmax.f32 %v1752_v36, 0.0  ;;  %v4084_v59 = vld [vmem:[#allocation7 + $0x128] sm:$0xf0]  ;;  %v4007_v0 = vor.u32 %v4726_v51, %v4004_v18  ;;  %v4782_v36 = vld [vmem:[#allocation7 + $0x244] sm:$0xf] }
 0x533   :  { %v4300_v51 = vld [vmem:[#allocation7 + $0x2d8] sm:$0xf0]  ;;  %v4132_v33 = vld [vmem:[#allocation7 + $0x188] sm:$0xf0] }
 0x534   :  { %2688 = vmatmul.bf16.vlgmr.msra.gmra.mxu3 %v5272_v8 }
 0x535   :  { %2768 = vmatpush.bf16.msra.mxu1 %v4031_v4  ;;  %2792 = vmatpush.bf16.msra.mxu3 %v4191_v7  ;;  %v1739_v26 = vpop.f32.mrf.mxu0  ;;  %v1753_v43 = vpop.f32.mrf.mxu1  ;;  %v4087_v4 = vor.u32 %v4746_v34, %v4084_v59  ;;  %v966_v34 = vperm.slane %v5256_v54, 6 }
 0x536   :  { %v1765_v20 = vpop.f32.mrf.mxu2  ;;  %v1779_v22 = vpop.f32.mrf.mxu3  ;;  %2756 = vmatpush.bf16.msra.mxu0 %v3951_v9  ;;  %2780 = vmatpush.bf16.msra.mxu2 %v4111_v11  ;;  %v1740_v38 = vadd.f32 %v1739_v26, %v964_v52  ;;  %v4744_v9 = vld [vmem:[#allocation7 + $0x114] sm:$0xf]  ;;  %v4742_v26 = vld [vmem:[#allocation7 + $0x104] sm:$0xf] }
 0x537   :  { %v1766_v60 = vadd.f32 %v1765_v20, %v965_v19 }
 0x538   :  { %v1754_v45 = vadd.f32 %v1753_v43, %v1740_v38  ;;  %v4228_v38 = vld [vmem:[#allocation7 + $0x248] sm:$0xf0]  ;;  %v4760_v43 = vld [vmem:[#allocation7 + $0x194] sm:$0xf] }
 0x539   :  { %2769 = vmatpush.bf16.msra.mxu1 %v4023_v23  ;;  %2793 = vmatpush.bf16.msra.mxu3 %v4183_v25  ;;  %v1780_v3 = vadd.f32 %v1779_v22, %v1766_v60  ;;  %v4079_v22 = vor.u32 %v4744_v9, %v4076_v10  ;;  %v4762_v23 = vld [vmem:[#allocation7 + $0x1a4] sm:$0xf]  ;;  %v4319_v25 = vor.u32 %v4804_v13, %v4316_v14  ;;  %v4220_v60 = vld [vmem:[#allocation7 + $0x238] sm:$0xf0] }
 0x53a   :  { %2757 = vmatpush.bf16.msra.mxu0 %v3943_v27  ;;  %2781 = vmatpush.bf16.msra.mxu2 %v4103_v31  ;;  %v1852_v52 = vmax.f32 %v1754_v45, 0.0  ;;  %v4068_v27 = vld [vmem:[#allocation7 + $0x108] sm:$0xf0]  ;;  %v4239_v31 = vor.u32 %v4784_v15, %v4236_v16  ;;  %v4151_v41 = vor.u32 %v4762_v23, %v4148_v24  ;;  %v4140_v45 = vld [vmem:[#allocation7 + $0x198] sm:$0xf0]  ;;  %v4231_v47 = vor.u32 %v4782_v36, %v4228_v38 }
 0x53b   :  { %v4071_v42 = vor.u32 %v4742_v26, %v4068_v27  ;;  %v4143_v18 = vor.u32 %v4760_v43, %v4140_v45  ;;  %v4794_v16 = vld [vmem:[#allocation7 + $0x2a4] sm:$0xf]  ;;  %v4820_v24 = vld [vmem:[#allocation7 + $0x374] sm:$0xf]  ;;  %v4268_v36 = vld [vmem:[#allocation7 + $0x298] sm:$0xf0] }
 0x53c   :  { %v5276_v61 = vpack.c.bf16 %v1852_v52, %v1844_v30  ;;  %v4818_v43 = vld [vmem:[#allocation7 + $0x364] sm:$0xf]  ;;  %v4372_v45 = vld [vmem:[#allocation7 + $0x368] sm:$0xf0] }
 0x53d   :  { %2770 = vmatpush.bf16.msra.mxu1 %v4015_v29  ;;  %2794 = vmatpush.bf16.msra.mxu3 %v4175_v58  ;;  %v4800_v29 = vld [vmem:[#allocation7 + $0x2d4] sm:$0xf] }
 0x53e   :  { %v1767_v2 = vpop.f32.mrf.mxu2  ;;  %2782 = vmatpush.bf16.msra.mxu2 %v4095_v21  ;;  %v1781_v7 = vpop.f32.mrf.mxu3  ;;  %2702 = vmatmul.bf16.vlgmr.msrb.gmra.mxu0 %v5276_v61  ;;  %v4780_v58 = vld [vmem:[#allocation7 + $0x234] sm:$0xf]  ;;  %v4758_v21 = vld [vmem:[#allocation7 + $0x184] sm:$0xf]  ;;  %v4303_v52 = vor.u32 %v4800_v29, %v4300_v51 }
 0x53f   :  { %v1768_v49 = vadd.f32 %v1767_v2, %v965_v19  ;;  %2806 = vmatpush.bf16.msrb.mxu0 %v4255_v57  ;;  %v1845_v19 = vmax.f32 %v1780_v3, 0.0  ;;  %v4223_v59 = vor.u32 %v4780_v58, %v4220_v60  ;;  %v4798_v57 = vld [vmem:[#allocation7 + $0x2c4] sm:$0xf]  ;;  %v4292_v2 = vld [vmem:[#allocation7 + $0x2c8] sm:$0xf0] }
 0x540   :  { %v4790_v51 = vld [vmem:[#allocation7 + $0x284] sm:$0xf]  ;;  %v4260_v58 = vld [vmem:[#allocation7 + $0x288] sm:$0xf0] }
 0x541   :  { %v1782_v11 = vadd.f32 %v1781_v7, %v1768_v49  ;;  %2771 = vmatpush.bf16.msra.mxu1 %v4007_v0  ;;  %2795 = vmatpush.bf16.msra.mxu3 %v4167_v48  ;;  %v4135_v0 = vor.u32 %v4758_v21, %v4132_v33  ;;  %v4295_v48 = vor.u32 %v4798_v57, %v4292_v2  ;;  %v4204_v7 = vld [vmem:[#allocation7 + $0x218] sm:$0xf0]  ;;  %v4836_v21 = vld [vmem:[#allocation7 + $0x3f4] sm:$0xf] }
 0x542   :  { %2783 = vmatpush.bf16.msra.mxu2 %v4087_v4  ;;  %v4215_v49 = vor.u32 %v4778_v62, %v4212_v63  ;;  %v4796_v4 = vld [vmem:[#allocation7 + $0x2b4] sm:$0xf]  ;;  %v4444_v33 = vld [vmem:[#allocation7 + $0x3f8] sm:$0xf0]  ;;  %v4834_v63 = vld [vmem:[#allocation7 + $0x3e4] sm:$0xf] }
 0x543   :  { %v1853_v20 = vmax.f32 %v1782_v11, 0.0  ;;  %2807 = vmatpush.bf16.msrb.mxu0 %v4247_v12  ;;  %v967_v11 = vperm.slane %v5256_v54, 7  ;;  %v4287_v13 = vor.u32 %v4796_v4, %v4284_v5  ;;  %v4447_v57 = vor.u32 %v4836_v21, %v4444_v33  ;;  %v4832_v5 = vld [vmem:[#allocation7 + $0x3d4] sm:$0xf] }
 0x545   :  { %v5279_v28 = vpack.c.bf16 %v1853_v20, %v1845_v19  ;;  %2796 = vmatpush.bf16.msra.mxu3 %v4159_v17  ;;  %v4276_v17 = vld [vmem:[#allocation7 + $0x2a8] sm:$0xf0]  ;;  %v4774_v20 = vld [vmem:[#allocation7 + $0x204] sm:$0xf] }
 0x546   :  { %2784 = vmatpush.bf16.msra.mxu2 %v4079_v22  ;;  %v4196_v22 = vld [vmem:[#allocation7 + $0x208] sm:$0xf0]  ;;  %v4279_v54 = vor.u32 %v4794_v16, %v4276_v17  ;;  %v4828_v16 = vld [vmem:[#allocation7 + $0x3b4] sm:$0xf]  ;;  %v4412_v17 = vld [vmem:[#allocation7 + $0x3b8] sm:$0xf0] }
 0x547   :  { %2716 = vmatmul.bf16.vlgmr.msrb.gmra.mxu1 %v5279_v28  ;;  %2808 = vmatpush.bf16.msrb.mxu0 %v4239_v31  ;;  %v4199_v32 = vor.u32 %v4774_v20, %v4196_v22  ;;  %v4415_v20 = vor.u32 %v4828_v16, %v4412_v17 }
 0x548   :  { %2820 = vmatpush.bf16.msrb.mxu1 %v4319_v25  ;;  %v4380_v25 = vld [vmem:[#allocation7 + $0x378] sm:$0xf0] }
 0x549   :  { %2797 = vmatpush.bf16.msra.mxu3 %v4151_v41  ;;  %v4383_v38 = vor.u32 %v4820_v24, %v4380_v25  ;;  %v4404_v24 = vld [vmem:[#allocation7 + $0x3a8] sm:$0xf0]  ;;  %v4806_v25 = vld [vmem:[#allocation7 + $0x304] sm:$0xf] }
 0x54a   :  { %2785 = vmatpush.bf16.msra.mxu2 %v4071_v42 }
 0x54b   :  { %2809 = vmatpush.bf16.msrb.mxu0 %v4231_v47 }
 0x54c   :  { %2821 = vmatpush.bf16.msrb.mxu1 %v4311_v46 }
 0x54d   :  { %v1793_v53 = vpop.f32.mrf.mxu0  ;;  %v1807_v30 = vpop.f32.mrf.mxu1  ;;  %2798 = vmatpush.bf16.msra.mxu3 %v4143_v18  ;;  %v4375_v18 = vor.u32 %v4818_v43, %v4372_v45 }
 0x54e   :  { %2758 = vmatmul.bf16.vlgmr.msra.gmra.mxu0 %v5260_v37  ;;  %v1794_v3 = vadd.f32 %v1793_v53, %v966_v34  ;;  %v4207_v37 = vor.u32 %v4776_v6, %v4204_v7  ;;  %v4816_v53 = vld [vmem:[#allocation7 + $0x354] sm:$0xf]  ;;  %v4428_v6 = vld [vmem:[#allocation7 + $0x3d8] sm:$0xf0] }
 0x54f   :  { %2810 = vmatpush.bf16.msrb.mxu0 %v4223_v59  ;;  %v4263_v59 = vor.u32 %v4790_v51, %v4260_v58  ;;  %v4348_v7 = vld [vmem:[#allocation7 + $0x338] sm:$0xf0] }
 0x550   :  { %2822 = vmatpush.bf16.msrb.mxu1 %v4303_v52  ;;  %v1808_v14 = vadd.f32 %v1807_v30, %v1794_v3  ;;  %v4364_v30 = vld [vmem:[#allocation7 + $0x358] sm:$0xf0]  ;;  %v4356_v3 = vld [vmem:[#allocation7 + $0x348] sm:$0xf0] }
 0x551   :  { %2799 = vmatpush.bf16.msra.mxu3 %v4135_v0  ;;  %v4367_v62 = vor.u32 %v4816_v53, %v4364_v30  ;;  %v4436_v0 = vld [vmem:[#allocation7 + $0x3e8] sm:$0xf0] }
 0x552   :  { %v1846_v27 = vmax.f32 %v1808_v14, 0.0  ;;  %v4340_v14 = vld [vmem:[#allocation7 + $0x328] sm:$0xf0] }
 0x553   :  { %2811 = vmatpush.bf16.msrb.mxu0 %v4215_v49  ;;  %v4439_v49 = vor.u32 %v4834_v63, %v4436_v0 }
 0x554   :  { %2823 = vmatpush.bf16.msrb.mxu1 %v4295_v48  ;;  %v4814_v48 = vld [vmem:[#allocation7 + $0x344] sm:$0xf] }
 0x555   :  { %v1821_v9 = vpop.f32.mrf.mxu2  ;;  %v1835_v10 = vpop.f32.mrf.mxu3  ;;  %v4359_v4 = vor.u32 %v4814_v48, %v4356_v3 }
 0x556   :  { %v1795_v12 = vpop.f32.mrf.mxu0  ;;  %v1809_v19 = vpop.f32.mrf.mxu1  ;;  %v1822_v26 = vadd.f32 %v1821_v9, %v967_v11  ;;  %v4431_v9 = vor.u32 %v4832_v5, %v4428_v6 }
 0x557   :  { %v1796_v15 = vadd.f32 %v1795_v12, %v966_v34  ;;  %2772 = vmatmul.bf16.vlgmr.msra.gmra.mxu1 %v5264_v1  ;;  %2812 = vmatpush.bf16.msrb.mxu0 %v4207_v37  ;;  %v4271_v1 = vor.u32 %v4792_v35, %v4268_v36  ;;  %v4420_v12 = vld [vmem:[#allocation7 + $0x3c8] sm:$0xf0]  ;;  %v4822_v35 = vld [vmem:[#allocation7 + $0x384] sm:$0xf] }
 0x558   :  { %2824 = vmatpush.bf16.msrb.mxu1 %v4287_v13  ;;  %v1836_v46 = vadd.f32 %v1835_v10, %v1822_v26  ;;  %v4810_v13 = vld [vmem:[#allocation7 + $0x324] sm:$0xf]  ;;  %v4324_v26 = vld [vmem:[#allocation7 + $0x308] sm:$0xf0] }
 0x559   :  { %v1810_v23 = vadd.f32 %v1809_v19, %v1796_v15  ;;  %v4343_v37 = vor.u32 %v4810_v13, %v4340_v14  ;;  %v4808_v19 = vld [vmem:[#allocation7 + $0x314] sm:$0xf]  ;;  %v4388_v36 = vld [vmem:[#allocation7 + $0x388] sm:$0xf0] }
 0x55a   :  { %v1847_v52 = vmax.f32 %v1836_v46, 0.0 }
 0x55b   :  { %v1854_v31 = vmax.f32 %v1810_v23, 0.0  ;;  %2813 = vmatpush.bf16.msrb.mxu0 %v4199_v32  ;;  %v4826_v23 = vld [vmem:[#allocation7 + $0x3a4] sm:$0xf] }
 0x55c   :  { %2825 = vmatpush.bf16.msrb.mxu1 %v4279_v54  ;;  %v4407_v54 = vor.u32 %v4826_v23, %v4404_v24 }
 0x55d   :  { %v5286_v41 = vpack.c.bf16 %v1854_v31, %v1846_v27  ;;  %v1823_v42 = vpop.f32.mrf.mxu2  ;;  %v1837_v29 = vpop.f32.mrf.mxu3  ;;  %v4824_v27 = vld [vmem:[#allocation7 + $0x394] sm:$0xf]  ;;  %v4396_v31 = vld [vmem:[#allocation7 + $0x398] sm:$0xf0] }
 0x55e   :  { %v1824_v47 = vadd.f32 %v1823_v42, %v967_v11  ;;  %2814 = vmatmul.bf16.vlgmr.msrb.gmra.mxu0 %v5276_v61  ;;  %v4812_v61 = vld [vmem:[#allocation7 + $0x334] sm:$0xf]  ;;  %v4830_v11 = vld [vmem:[#allocation7 + $0x3c4] sm:$0xf]  ;;  %v4399_v32 = vor.u32 %v4824_v27, %v4396_v31 }
 0x55f   :  { %2730 = vmatmul.bf16.vlgmr.msrb.gmra.mxu2 %v5286_v41  ;;  %v4351_v10 = vor.u32 %v4812_v61, %v4348_v7  ;;  %v4423_v15 = vor.u32 %v4830_v11, %v4420_v12 }
 0x560   :  { %v1838_v60 = vadd.f32 %v1837_v29, %v1824_v47  ;;  %2834 = vmatpush.bf16.msrb.mxu2 %v4383_v38  ;;  %2826 = vmatpush.bf16.msrb.mxu1 %v4271_v1  ;;  %v4391_v38 = vor.u32 %v4822_v35, %v4388_v36 }
 0x562   :  { %v1855_v34 = vmax.f32 %v1838_v60, 0.0 }
 0x564   :  { %v1863_v2 = vpack.c.bf16 %v1855_v34, %v1847_v52  ;;  %2835 = vmatpush.bf16.msrb.mxu2 %v4375_v18  ;;  %2827 = vmatpush.bf16.msrb.mxu1 %v4263_v59  ;;  %v1992_v59 = vld [vmem:[%s5346_s8 + $0x10] sm:$0x3] }
 0x566   :  { %2744 = vmatmul.bf16.vlgmr.msrb.gmra.mxu3 %v1863_v2 }
 0x567   :  { %2848 = vmatpush.bf16.msrb.mxu3 %v4447_v57  ;;  %2828 = vmatmul.bf16.vlgmr.msrb.gmra.mxu1 %v5279_v28  ;;  %v4332_v28 = vld [vmem:[#allocation7 + $0x318] sm:$0xf0]  ;;  %v1995_v57 = vperm.slane %v1992_v59, 1 }
 0x568   :  { %2836 = vmatpush.bf16.msrb.mxu2 %v4367_v62  ;;  %v4335_v22 = vor.u32 %v4808_v19, %v4332_v28  ;;  %v1994_v62 = vperm.slane %v1992_v59, 0 }
 0x56b   :  { %2849 = vmatpush.bf16.msrb.mxu3 %v4439_v49 }
 0x56c   :  { %2837 = vmatpush.bf16.msrb.mxu2 %v4359_v4 }
 0x56f   :  { %2850 = vmatpush.bf16.msrb.mxu3 %v4431_v9  ;;  %2786 = vmatmul.bf16.vlgmr.msra.gmra.mxu2 %v5268_v44  ;;  %v4327_v44 = vor.u32 %v4806_v25, %v4324_v26 }
 0x570   :  { %2838 = vmatpush.bf16.msrb.mxu2 %v4351_v10 }
 0x573   :  { %2851 = vmatpush.bf16.msrb.mxu3 %v4423_v15 }
 0x574   :  { %2839 = vmatpush.bf16.msrb.mxu2 %v4343_v37 }
 0x576   :  { %2800 = vmatmul.bf16.vlgmr.msra.gmra.mxu3 %v5272_v8 }
 0x577   :  { %2852 = vmatpush.bf16.msrb.mxu3 %v4415_v20 }
 0x578   :  { %2840 = vmatpush.bf16.msrb.mxu2 %v4335_v22 }
 0x57b   :  { %2853 = vmatpush.bf16.msrb.mxu3 %v4407_v54 }
 0x57c   :  { %2841 = vmatpush.bf16.msrb.mxu2 %v4327_v44 }
 0x57f   :  { %2854 = vmatpush.bf16.msrb.mxu3 %v4399_v32  ;;  %2842 = vmatmul.bf16.vlgmr.msrb.gmra.mxu2 %v5286_v41 }
 0x583   :  { %2855 = vmatpush.bf16.msrb.mxu3 %v4391_v38 }
 0x586   :  { %2856 = vmatmul.bf16.vlgmr.msrb.gmra.mxu3 %v1863_v2 }
 0x59a   :  { %v2647_v42 = vpop.f32.mrf.mxu0 }
 0x59b   :  { %v2648_v3 = vadd.f32 %v2647_v42, %v1994_v62 }
 0x5a1   :  { %v2661_v43 = vpop.f32.mrf.mxu1 }
 0x5a2   :  { %v2649_v8 = vpop.f32.mrf.mxu0  ;;  %v2662_v5 = vadd.f32 %v2661_v43, %v2648_v3  ;;  %v4845_v3 = vld [vmem:[#allocation9 + $0x38] sm:$0xff] }
 0x5a3   :  { %v2650_v13 = vadd.f32 %v2649_v8, %v1994_v62  ;;  %3074 = vmatpush.bf16.msra.mxu0 %v4845_v3 }
 0x5a9   :  { %v2663_v46 = vpop.f32.mrf.mxu1 }
 0x5aa   :  { %v2664_v19 = vadd.f32 %v2663_v46, %v2650_v13  ;;  %v4839_v13 = vld [vmem:[#allocation9 + $0x8] sm:$0xff] }
 0x5b0   :  { %v2675_v45 = vpop.f32.mrf.mxu2 }
 0x5b1   :  { %v2676_v61 = vadd.f32 %v2675_v45, %v2662_v5  ;;  %v4852_v5 = vld [vmem:[#allocation9 + $0x70] sm:$0xff] }
 0x5b7   :  { %v2689_v47 = vpop.f32.mrf.mxu3 }
 0x5b8   :  { %v2677_v29 = vpop.f32.mrf.mxu2  ;;  %v2690_v10 = vadd.f32 %v2689_v47, %v2676_v61  ;;  %v4851_v61 = vld [vmem:[#allocation9 + $0x68] sm:$0xff] }
 0x5b9   :  { %v2678_v22 = vadd.f32 %v2677_v29, %v2664_v19 }
 0x5bb   :  { %v2703_v1 = vpop.f32.mrf.mxu0 }
 0x5bc   :  { %v2704_v14 = vadd.f32 %v2703_v1, %v2690_v10  ;;  %v4849_v10 = vld [vmem:[#allocation9 + $0x58] sm:$0xff] }
 0x5bf   :  { %v2691_v58 = vpop.f32.mrf.mxu3 }
 0x5c0   :  { %v2692_v26 = vadd.f32 %v2691_v58, %v2678_v22 }
 0x5c3   :  { %v2705_v60 = vpop.f32.mrf.mxu0 }
 0x5c4   :  { %v2717_v51 = vpop.f32.mrf.mxu1  ;;  %v2706_v32 = vadd.f32 %v2705_v60, %v2692_v26 }
 0x5c5   :  { %v2718_v28 = vadd.f32 %v2717_v51, %v2704_v14  ;;  %v4847_v14 = vld [vmem:[#allocation9 + $0x48] sm:$0xff] }
 0x5cb   :  { %v2759_v30 = vpop.f32.mrf.mxu0 }
 0x5cc   :  { %v2719_v21 = vpop.f32.mrf.mxu1  ;;  %v2760_v63 = vadd.f32 %v2759_v30, %v1995_v57 }
 0x5cd   :  { %v2720_v38 = vadd.f32 %v2719_v21, %v2706_v32 }
 0x5d3   :  { %v2761_v2 = vpop.f32.mrf.mxu0 }
 0x5d4   :  { %v2773_v41 = vpop.f32.mrf.mxu1  ;;  %v2762_v11 = vadd.f32 %v2761_v2, %v1995_v57 }
 0x5d5   :  { %v2774_v49 = vadd.f32 %v2773_v41, %v2760_v63 }
 0x5db   :  { %v2815_v9 = vpop.f32.mrf.mxu0 }
 0x5dc   :  { %v2775_v0 = vpop.f32.mrf.mxu1 }
 0x5dd   :  { %v2776_v15 = vadd.f32 %v2775_v0, %v2762_v11  ;;  %v4840_v11 = vld [vmem:[#allocation9 + $0x10] sm:$0xff] }
 0x5e2   :  { %v2731_v18 = vpop.f32.mrf.mxu2 }
 0x5e3   :  { %v2732_v23 = vadd.f32 %v2731_v18, %v2718_v28  ;;  %v2817_v27 = vpop.f32.mrf.mxu0 }
 0x5e4   :  { %v2829_v16 = vpop.f32.mrf.mxu1 }
 0x5e9   :  { %v2745_v33 = vpop.f32.mrf.mxu3 }
 0x5ea   :  { %v2733_v53 = vpop.f32.mrf.mxu2  ;;  %v2746_v54 = vadd.f32 %v2745_v33, %v2732_v23 }
 0x5eb   :  { %v2734_v46 = vadd.f32 %v2733_v53, %v2720_v38 }
 0x5ec   :  { %v2862_v42 = vadd.f32 %v2746_v54, %v5221_v55  ;;  %v2831_v8 = vpop.f32.mrf.mxu1 }
 0x5f1   :  { %v2747_v52 = vpop.f32.mrf.mxu3 }
 0x5f2   :  { %v2787_v34 = vpop.f32.mrf.mxu2  ;;  %v2748_v29 = vadd.f32 %v2747_v52, %v2734_v46 }
 0x5f3   :  { %v2788_v6 = vadd.f32 %v2787_v34, %v2774_v49  ;;  %v4853_v49 = vld [vmem:[#allocation9 + $0x78] sm:$0xff] }
 0x5f4   :  { %v2864_v33 = vadd.f32 %v2748_v29, %v5225_v40  ;;  %3088 = vmatpush.bf16.msra.mxu1 %v4853_v49 }
 0x5f8   :  { %3089 = vmatpush.bf16.msra.mxu1 %v4852_v5 }
 0x5f9   :  { %v2801_v48 = vpop.f32.mrf.mxu3 }
 0x5fa   :  { %v2789_v4 = vpop.f32.mrf.mxu2  ;;  %v2802_v7 = vadd.f32 %v2801_v48, %v2788_v6  ;;  %v4843_v6 = vld [vmem:[#allocation9 + $0x28] sm:$0xff] }
 0x5fb   :  { %v2790_v20 = vadd.f32 %v2789_v4, %v2776_v15  ;;  %v4844_v4 = vld [vmem:[#allocation9 + $0x30] sm:$0xff] }
 0x5fc   :  { %v2816_v37 = vadd.f32 %v2815_v9, %v2802_v7  ;;  %3075 = vmatpush.bf16.msra.mxu0 %v4844_v4  ;;  %3090 = vmatpush.bf16.msra.mxu1 %v4851_v61  ;;  %v4850_v7 = vld [vmem:[#allocation9 + $0x60] sm:$0xff]  ;;  %v4841_v9 = vld [vmem:[#allocation9 + $0x18] sm:$0xff] }
 0x5fe   :  { %v2830_v25 = vadd.f32 %v2829_v16, %v2816_v37  ;;  %v4838_v16 = vld [vmem:[#allocation9] sm:$0xff] }
 0x600   :  { %3076 = vmatpush.bf16.msra.mxu0 %v4843_v6  ;;  %3091 = vmatpush.bf16.msra.mxu1 %v4850_v7 }
 0x601   :  { %v2803_v12 = vpop.f32.mrf.mxu3 }
 0x602   :  { %v2843_v17 = vpop.f32.mrf.mxu2  ;;  %v2804_v24 = vadd.f32 %v2803_v12, %v2790_v20  ;;  %v4848_v12 = vld [vmem:[#allocation9 + $0x50] sm:$0xff] }
 0x603   :  { %v2844_v44 = vadd.f32 %v2843_v17, %v2830_v25  ;;  %v4846_v17 = vld [vmem:[#allocation9 + $0x40] sm:$0xff] }
 0x604   :  { %v2818_v35 = vadd.f32 %v2817_v27, %v2804_v24  ;;  %3092 = vmatpush.bf16.msra.mxu1 %v4849_v10 }
 0x606   :  { %v2832_v47 = vadd.f32 %v2831_v8, %v2818_v35  ;;  %v2866_v35 = vld [vmem:[%s5346_s8 + $0x12] sm:$0x3] }
 0x607   :  { %v2924_v8 = vperm.slane %v2866_v35, 1 }
 0x608   :  { %3093 = vmatpush.bf16.msra.mxu1 %v4848_v12 }
 0x609   :  { %v2857_v31 = vpop.f32.mrf.mxu3 }
 0x60a   :  { %v2858_v36 = vadd.f32 %v2857_v31, %v2844_v44  ;;  %v2845_v45 = vpop.f32.mrf.mxu2 }
 0x60b   :  { %v2846_v51 = vadd.f32 %v2845_v45, %v2832_v47  ;;  %v2867_v47 = vld [vmem:[%s5346_s8 + $0x14] sm:$0x3] }
 0x60c   :  { %v2863_v43 = vadd.f32 %v2858_v36, %v5223_v39  ;;  %3094 = vmatpush.bf16.msra.mxu1 %v4847_v14 }
 0x60e   :  { %v2868_v1 = vadd.f32 %v2863_v43, %v2862_v42 }
 0x610   :  { %2869 = vadd.xlane.f32.xlu2 %v2868_v1  ;;  %3095 = vmatpush.bf16.msra.mxu1 %v4846_v17 }
 0x611   :  { %v2859_v58 = vpop.f32.mrf.mxu3 }
 0x612   :  { %v2860_v18 = vadd.f32 %v2859_v58, %v2846_v51  ;;  %v2932_v51 = vperm.slane %v2867_v47, 0  ;;  %v2933_v58 = vperm.slane %v2867_v47, 1 }
 0x614   :  { %v2865_v60 = vadd.f32 %v2860_v18, %v5227_v56 }
 0x616   :  { %v2871_v30 = vadd.f32 %v2865_v60, %v2864_v33 }
 0x618   :  { %2872 = vadd.xlane.f32.xlu0 %v2871_v30 }
 0x683   :  { %v2870_v21 = vpop.xlane.xlu2 %2869 }
 0x684   :  { %v2874_v55 = vmul.f32 0.005, %v2870_v21 }
 0x686   :  { %v5301_v41 = vsub.f32 %v2862_v42, %v2874_v55  ;;  %v2877_v39 = vsub.f32 %v2863_v43, %v2874_v55  ;;  %v2923_v43 = vperm.slane %v2866_v35, 0 }
 0x688   :  { %v5304_v53 = vmul.f32 %v5187_v50, %v2877_v39  ;;  %v2884_v52 = vmul.f32 %v5301_v41, %v5301_v41 }
 0x68a   :  { %v2885_v34 = vmul.f32 %v5304_v53, %v5304_v53 }
 0x68b   :  { %v2873_v59 = vpop.xlane.xlu0 %2872 }
 0x68c   :  { %v2875_v40 = vmul.f32 0.005, %v2873_v59  ;;  %v2888_v57 = vadd.f32 %v2885_v34, %v2884_v52 }
 0x68e   :  { %v5310_v56 = vsub.f32 %v2864_v33, %v2875_v40  ;;  %v2879_v2 = vsub.f32 %v2865_v60, %v2875_v40  ;;  %2889 = vadd.xlane.f32.xlu1 %v2888_v57  ;;  %v4866_v40 = vld [vmem:[%s5346_s8 + $0x16] ss:$0 sm:$0xff] }
 0x690   :  { %v5313_v62 = vmul.f32 %v5187_v50, %v2879_v2  ;;  %v2886_v63 = vmul.f32 %v5310_v56, %v5310_v56  ;;  %v4842_v50 = vld [vmem:[#allocation9 + $0x20] sm:$0xff] }
 0x691   :  { %3077 = vmatpush.bf16.msra.mxu0 %v4842_v50 }
 0x692   :  { %v2887_v0 = vmul.f32 %v5313_v62, %v5313_v62 }
 0x694   :  { %v2891_v48 = vadd.f32 %v2887_v0, %v2886_v63 }
 0x695   :  { %3078 = vmatpush.bf16.msra.mxu0 %v4841_v9 }
 0x696   :  { %2892 = vadd.xlane.f32.xlu2 %v2891_v48 }
 0x699   :  { %3079 = vmatpush.bf16.msra.mxu0 %v4840_v11 }
 0x69d   :  { %3080 = vmatpush.bf16.msra.mxu0 %v4839_v13 }
 0x6a1   :  { %3081 = vmatpush.bf16.msra.mxu0 %v4838_v16 }
 0x701   :  { %v2890_v15 = vpop.xlane.xlu1 %2889 }
 0x702   :  { %v2894_v37 = vmul.f32 0.005, %v2890_v15 }
 0x704   :  { %v2896_v19 = vadd.f32 1e-05, %v2894_v37 }
 0x706   :  { %4879 = vrsqrt.f32 %v2896_v19  ;;  %vm2904_vm10 = vweird.f32 %v2896_v19 }
 0x709   :  { %v2893_v28 = vpop.xlane.xlu2 %2892 }
 0x70a   :  { %v2895_v20 = vmul.f32 0.005, %v2893_v28 }
 0x70c   :  { %v4880_v22 = vpop.eup %4879  ;;  %v2897_v23 = vadd.f32 1e-05, %v2895_v20 }
 0x70d   :  { %v2899_v24 = vmul.f32 %v4880_v22, %v2896_v19  ;;  %vm2905_vm9 = vweird.f32 %v4880_v22 }
 0x70e   :  { %4881 = vrsqrt.f32 %v2897_v23  ;;  %vm2906_vm11 = vmor %vm2904_vm10, %vm2905_vm9  ;;  %vm2914_vm13 = vweird.f32 %v2897_v23 }
 0x70f   :  { %v2900_v25 = vmul.f32 %v4880_v22, %v2899_v24 }
 0x711   :  { %v2901_v26 = vmul.f32 0.5, %v2900_v25 }
 0x713   :  { %v2902_v54 = vsub.f32 1.5, %v2901_v26 }
 0x714   :  { %v4882_v44 = vpop.eup %4881 }
 0x715   :  { %v2903_v27 = vmul.f32 %v4880_v22, %v2902_v54  ;;  %v2909_v31 = vmul.f32 %v4882_v44, %v2897_v23  ;;  %vm2915_vm12 = vweird.f32 %v4882_v44 }
 0x716   :  { %vm2916_vm14 = vmor %vm2914_vm13, %vm2915_vm12 }
 0x717   :  { %v2910_v32 = vmul.f32 %v4882_v44, %v2909_v31  ;;  %v2907_v36 = vsel %vm2906_vm11, %v4880_v22, %v2903_v27 }
 0x718   :  { %v2918_v45 = vmul.f32 %v2907_v36, %v5301_v41  ;;  %v2919_v46 = vmul.f32 %v2907_v36, %v5304_v53 }
 0x719   :  { %v2911_v38 = vmul.f32 0.5, %v2910_v32 }
 0x71a   :  { %v2927_v18 = vmul.f32 %v2923_v43, %v2918_v45  ;;  %v2928_v33 = vmul.f32 %v2924_v8, %v2919_v46 }
 0x71b   :  { %v2912_v42 = vsub.f32 1.5, %v2911_v38 }
 0x71c   :  { %v2936_v41 = vadd.f32 %v2932_v51, %v2927_v18  ;;  %v2937_v53 = vadd.f32 %v2933_v58, %v2928_v33 }
 0x71d   :  { %v2913_v1 = vmul.f32 %v4882_v44, %v2912_v42 }
 0x71f   :  { %v2917_v29 = vsel %vm2916_vm14, %v4882_v44, %v2913_v1 }
 0x720   :  { %v2920_v60 = vmul.f32 %v2917_v29, %v5310_v56  ;;  %v2921_v30 = vmul.f32 %v2917_v29, %v5313_v62 }
 0x722   :  { %v2929_v21 = vmul.f32 %v2923_v43, %v2920_v60  ;;  %v2930_v55 = vmul.f32 %v2924_v8, %v2921_v30 }
 0x724   :  { %v2938_v39 = vadd.f32 %v2932_v51, %v2929_v21  ;;  %v2939_v52 = vadd.f32 %v2933_v58, %v2930_v55 }
 0x726   :  { %v2940_v34 = vpack.c.bf16 %v2938_v39, %v2936_v41  ;;  %v2941_v59 = vpack.c.bf16 %v2939_v52, %v2937_v53 }
 0x728   :  { %3082 = vmatmul.bf16.vlgmr.msra.gmra.mxu0 %v2940_v34  ;;  %3096 = vmatmul.bf16.vlgmr.msra.gmra.mxu1 %v2941_v59 }
 0x7a5   :  { %v3083_v57 = vpop.f32.mrf.mxu0  ;;  %v3097_v2 = vpop.f32.mrf.mxu1 }
 0x7a6   :  { %v3084_v63 = vadd.f32 %v4866_v40, %v3083_v57 }
 0x7a8   :  { %v3098_v56 = vadd.f32 %v3097_v2, %v3084_v63 }
 0x7aa   :  { %v4512_v0 = vmul.f32 -1.442695, %v3098_v56 }
 0x7ac   :  { %4883 = vpow2.f32 %v4512_v0 }
 0x7ad   :  { %v3085_v62 = vpop.f32.mrf.mxu0  ;;  %v3099_v3 = vpop.f32.mrf.mxu1 }
 0x7ae   :  { %v3086_v48 = vadd.f32 %v4866_v40, %v3085_v62 }
 0x7b0   :  { %v3100_v49 = vadd.f32 %v3099_v3, %v3086_v48 }
 0x7b2   :  { %v4884_v4 = vpop.eup %4883  ;;  %v4513_v5 = vmul.f32 -1.442695, %v3100_v49 }
 0x7b3   :  { %v3108_v6 = vadd.f32 1.0, %v4884_v4 }
 0x7b4   :  { %4885 = vpow2.f32 %v4513_v5 }
 0x7b5   :  { %4887 = vrcp.f32 %v3108_v6  ;;  %v3121_v11 = vand.u32 2147483648, %v3108_v6  ;;  %v3119_v13 = vand.u32 2147483647, %v3108_v6  ;;  %vm3115_vm0 = vweird.f32 %v3108_v6 }
 0x7b7   :  { %v3122_v37 = vor.u32 1.1754944e-38, %v3121_v11  ;;  %vm3120_vm2 = vcmp.eq.f32.partialorder %v3119_v13, 8.507059e+37 }
 0x7ba   :  { %v4886_v61 = vpop.eup %4885 }
 0x7bb   :  { %v4888_v50 = vpop.eup %4887  ;;  %v3109_v7 = vadd.f32 1.0, %v4886_v61 }
 0x7bc   :  { %v3111_v9 = vmul.f32 %v4888_v50, %v3108_v6  ;;  %vm3116_vm15 = vweird.f32 %v4888_v50 }
 0x7bd   :  { %4889 = vrcp.f32 %v3109_v7  ;;  %vm3117_vm1 = vmor %vm3115_vm0, %vm3116_vm15  ;;  %v3136_v20 = vand.u32 2147483648, %v3109_v7  ;;  %v3134_v23 = vand.u32 2147483647, %v3109_v7  ;;  %vm3130_vm4 = vweird.f32 %v3109_v7 }
 0x7be   :  { %v3112_v10 = vsub.f32 1.0, %v3111_v9 }
 0x7bf   :  { %v3137_v25 = vor.u32 1.1754944e-38, %v3136_v20  ;;  %vm3135_vm6 = vcmp.eq.f32.partialorder %v3134_v23, 8.507059e+37 }
 0x7c0   :  { %v3113_v12 = vmul.f32 %v4888_v50, %v3112_v10 }
 0x7c2   :  { %v3114_v14 = vadd.f32 %v4888_v50, %v3113_v12 }
 0x7c3   :  { %v4890_v15 = vpop.eup %4889 }
 0x7c4   :  { %v3118_v16 = vsel %vm3117_vm1, %v4888_v50, %v3114_v14  ;;  %v3126_v17 = vmul.f32 %v4890_v15, %v3109_v7  ;;  %vm3131_vm3 = vweird.f32 %v4890_v15 }
 0x7c5   :  { %v3123_v19 = vsel %vm3120_vm2, %v3122_v37, %v3118_v16  ;;  %vm3132_vm5 = vmor %vm3130_vm4, %vm3131_vm3 }
 0x7c6   :  { %3140 = vst [vmem:[%s5347_s9] sm:$0xff] %v3123_v19  ;;  %v3127_v28 = vsub.f32 1.0, %v3126_v17 }
 0x7c8   :  { %v3128_v22 = vmul.f32 %v4890_v15, %v3127_v28 }
 0x7ca   :  { %v3129_v24 = vadd.f32 %v4890_v15, %v3128_v22 }
 0x7cc   :  { %v3133_v26 = vsel %vm3132_vm5, %v4890_v15, %v3129_v24 }
 0x7cd   :  { %v3138_v54 = vsel %vm3135_vm6, %v3137_v25, %v3133_v26 }
 0x7ce   :  { %3141 = vst [vmem:[%s5347_s9 + $0x8] sm:$0xff] %v3138_v54 }
 0x7cf   :  { %3146 = vsyncpa [#allocation3], 1 }
 0x7d0   :  { %3147 = vsyncpa [#allocation5], 1 }
 0x7d1   :  { %3148 = vsyncpa [#allocation8], 1 }

</bundles_post_ra>
